<compile_context>
chip_gen: v7x
topology: tpu7x:2x2x1
jax: 0.10.0
libtpu: 0.0.40
codegen_flags: <defaults>
</compile_context>

<pallas_src>
import functools

import jax
import jax.numpy as jnp
from jax import lax
from jax.experimental import pallas as pl
from jax.experimental.pallas import tpu as pltpu


# ------------------------------ fused kernel --------------------------------

def fused_s2t_kernel(
    # scalar-prefetch refs (SMEM)
    pt_tok_ref, en_tok_ref, pt_len_ref, en_len_ref,
    # inputs
    src_emb_hbm, tgt_emb_hbm,
    src_w_ref, src_b_ref,
    tgt_w_in_ref, tgt_w_ctx_ref, tgt_b_ref,
    tgt_w_out_ref, tgt_b_out_ref,
    # output
    out_ref,
    # scratch
    pt_buf, en_buf, pt_sem, en_sem,
    *, mxu_dtype,
):
    b = pl.program_id(0)
    S_pt, H = pt_buf.shape
    S_en = en_buf.shape[0]
    f32 = jnp.float32

    # -------- DMA row-gather of embedding tables (tokens read from SMEM) ----
    def start_gather(tok_ref, table_hbm, buf, sem, S):
        for s in range(S):
            tok = tok_ref[b, s]
            pltpu.make_async_copy(
                table_hbm.at[pl.ds(tok, 1), :],
                buf.at[pl.ds(s, 1), :],
                sem.at[s]).start()

    def wait_gather(table_hbm, buf, sem, S):
        for s in range(S):
            pltpu.make_async_copy(
                table_hbm.at[pl.ds(0, 1), :],
                buf.at[pl.ds(s, 1), :],
                sem.at[s]).wait()

    # Issue both gathers up front so the en-side DMA overlaps the
    # source-encoder compute.
    start_gather(pt_tok_ref, src_emb_hbm, pt_buf, pt_sem, S_pt)
    start_gather(en_tok_ref, tgt_emb_hbm, en_buf, en_sem, S_en)

    def masked_mean(h, length, S):
        # h: (S, H) f32; length: scalar int32 (SMEM). VPU mask + XLU sum.
        pos = lax.broadcasted_iota(jnp.int32, (S, H), 0)
        mask = (pos < length).astype(f32)
        len_f = jnp.minimum(length, S).astype(f32)
        total = jnp.sum(h * mask, axis=0, keepdims=True)          # (1, H)
        return total * (1.0 / jnp.maximum(len_f, 1.0))

    # ---- source encoder (pt side) -> (1, H) context -------------------------
    wait_gather(src_emb_hbm, pt_buf, pt_sem, S_pt)
    emb_pt = pt_buf[...]                                          # (S_pt, H)
    h_pt = jnp.tanh(
        jnp.dot(emb_pt, src_w_ref[...], preferred_element_type=f32)
        + src_b_ref[...])                                         # f32 elementwise
    ctx = masked_mean(h_pt, pt_len_ref[b], S_pt)                  # (1, H)

    # ---- target encoder (en side) -------------------------------------------
    ctx_proj = jnp.dot(ctx.astype(mxu_dtype), tgt_w_ctx_ref[...],
                       preferred_element_type=f32)                # (1, H)
    wait_gather(tgt_emb_hbm, en_buf, en_sem, S_en)
    emb_en = en_buf[...]                                          # (S_en, H)
    h_en = jnp.tanh(
        jnp.dot(emb_en, tgt_w_in_ref[...], preferred_element_type=f32)
        + ctx_proj + tgt_b_ref[...])                              # VPU broadcast add
    pooled = masked_mean(h_en, en_len_ref[b], S_en)               # (1, H)

    out = jnp.tanh(
        jnp.dot(pooled.astype(mxu_dtype), tgt_w_out_ref[...],
                preferred_element_type=f32)
        + tgt_b_out_ref[...])                                     # (1, H)
    out_ref[...] = out.reshape(out_ref.shape)


# ------------------------------- wrapper -------------------------------------

def source2target_forward(params,
                          src_en_tokens, src_en_lengths,
                          src_pt_tokens, src_pt_lengths,
                          mxu_dtype=jnp.float32):
    # Mirrors Source2TargetModel.forward:
    #   source_encoder_out = source_encoder(src_pt_tokens, src_pt_lengths)
    #   return target_encoder(source_encoder_out, src_en_tokens, src_en_lengths)
    B, S_en = src_en_tokens.shape
    B2, S_pt = src_pt_tokens.shape
    assert B == B2
    V, H = params["src_emb"].shape

    # Clamp token ids (matches jnp.take / safe-Embedding behavior).
    pt_tok = jnp.clip(src_pt_tokens.astype(jnp.int32), 0, V - 1)
    en_tok = jnp.clip(src_en_tokens.astype(jnp.int32), 0, V - 1)
    pt_len = src_pt_lengths.astype(jnp.int32).reshape(B)
    en_len = src_en_lengths.astype(jnp.int32).reshape(B)

    wdt = mxu_dtype
    src_emb = params["src_emb"].astype(wdt)
    tgt_emb = params["tgt_emb"].astype(wdt)
    src_w = params["src_w"].astype(wdt)
    tgt_w_in = params["tgt_w_in"].astype(wdt)
    tgt_w_ctx = params["tgt_w_ctx"].astype(wdt)
    tgt_w_out = params["tgt_w_out"].astype(wdt)
    # Biases stay f32 (elementwise work stays f32 on every chip, esp. v5e).
    src_b = params["src_b"].reshape(1, H).astype(jnp.float32)
    tgt_b = params["tgt_b"].reshape(1, H).astype(jnp.float32)
    tgt_b_out = params["tgt_b_out"].reshape(1, H).astype(jnp.float32)

    def resident(shape):
        # Constant index_map -> block stays resident in VMEM across the grid.
        return pl.BlockSpec(shape, lambda b, *_prefetch: (0,) * len(shape))

    grid_spec = pltpu.PrefetchScalarGridSpec(
        num_scalar_prefetch=4,                 # pt_tok, en_tok, pt_len, en_len
        grid=(B,),
        in_specs=[
            pl.BlockSpec(memory_space=pl.ANY),     # src embedding table (HBM)
            pl.BlockSpec(memory_space=pl.ANY),     # tgt embedding table (HBM)
            resident((H, H)),                      # src_w
            resident((1, H)),                      # src_b
            resident((H, H)),                      # tgt_w_in
            resident((H, H)),                      # tgt_w_ctx
            resident((1, H)),                      # tgt_b
            resident((H, H)),                      # tgt_w_out
            resident((1, H)),                      # tgt_b_out
        ],
        out_specs=pl.BlockSpec((1, 1, H), lambda b, *_prefetch: (b, 0, 0)),
        scratch_shapes=[
            pltpu.VMEM((S_pt, H), wdt),            # gathered pt embeddings
            pltpu.VMEM((S_en, H), wdt),            # gathered en embeddings
            pltpu.SemaphoreType.DMA((S_pt,)),
            pltpu.SemaphoreType.DMA((S_en,)),
        ],
    )

    out = pl.pallas_call(
        functools.partial(fused_s2t_kernel, mxu_dtype=wdt),
        out_shape=jax.ShapeDtypeStruct((B, 1, H), jnp.float32),
        grid_spec=grid_spec,
        compiler_params=pltpu.CompilerParams(
            dimension_semantics=("parallel",),     # batch steps are independent
            vmem_limit_bytes=32 * 1024 * 1024,     # explicit, safe on 64 MiB v7x
        ),
    )(pt_tok, en_tok, pt_len, en_len,
      src_emb, tgt_emb,
      src_w, src_b, tgt_w_in, tgt_w_ctx, tgt_b, tgt_w_out, tgt_b_out)

    return out.reshape(B, H)


# ------------------------------ reference ------------------------------------

def reference_forward(params, src_en_tokens, src_en_lengths,
                      src_pt_tokens, src_pt_lengths):
    def masked_mean(h, lengths):
        S = h.shape[1]
        m = (jnp.arange(S)[None, :] < lengths[:, None]).astype(jnp.float32)[..., None]
        return jnp.sum(h * m, axis=1) / jnp.maximum(jnp.sum(m, axis=1), 1.0)

    emb_pt = jnp.take(params["src_emb"], src_pt_tokens, axis=0)
    h_pt = jnp.tanh(emb_pt @ params["src_w"] + params["src_b"])
    ctx = masked_mean(h_pt, src_pt_lengths)

    emb_en = jnp.take(params["tgt_emb"], src_en_tokens, axis=0)
    h_en = jnp.tanh(emb_en @ params["tgt_w_in"]
                    + (ctx @ params["tgt_w_ctx"])[:, None, :]
                    + params["tgt_b"])
    pooled = masked_mean(h_en, src_en_lengths)
    return jnp.tanh(pooled @ params["tgt_w_out"] + params["tgt_b_out"])


# --------------------------------- main ---------------------------------------

if __name__ == "__main__":
    B, S_EN, S_PT, H, V = 4, 16, 8, 128, 64    # H lane-dense (multiple of 128)

    key = jax.random.PRNGKey(0)
    ks = jax.random.split(key, 12)
    params = {
        "src_emb":   0.02 * jax.random.normal(ks[0], (V, H), jnp.float32),
        "src_w":     0.05 * jax.random.normal(ks[1], (H, H), jnp.float32),
        "src_b":     0.01 * jax.random.normal(ks[2], (H,), jnp.float32),
        "tgt_emb":   0.02 * jax.random.normal(ks[3], (V, H), jnp.float32),
        "tgt_w_in":  0.05 * jax.random.normal(ks[4], (H, H), jnp.float32),
        "tgt_w_ctx": 0.05 * jax.random.normal(ks[5], (H, H), jnp.float32),
        "tgt_b":     0.01 * jax.random.normal(ks[6], (H,), jnp.float32),
        "tgt_w_out": 0.05 * jax.random.normal(ks[7], (H, H), jnp.float32),
        "tgt_b_out": 0.01 * jax.random.normal(ks[8], (H,), jnp.float32),
    }

    src_en_tokens = jax.random.randint(ks[9], (B, S_EN), 0, V, dtype=jnp.int32)
    src_pt_tokens = jax.random.randint(ks[10], (B, S_PT), 0, V, dtype=jnp.int32)
    src_en_lengths = jnp.array([S_EN, 5, 9, 1], dtype=jnp.int32)
    src_pt_lengths = jnp.array([6, S_PT, 3, S_PT], dtype=jnp.int32)

    # Demo keeps f32 MXU operands to hold the 1e-5 check; pass
    # mxu_dtype=jnp.bfloat16 at production sizes on v5e/v6e/v7x.
    out = source2target_forward(params, src_en_tokens, src_en_lengths,
                                src_pt_tokens, src_pt_lengths)
    out = jax.block_until_ready(out)

    ref = reference_forward(params, src_en_tokens, src_en_lengths,
                            src_pt_tokens, src_pt_lengths)
    assert out.shape == (B, H)
    assert jnp.allclose(out, ref, atol=1e-5, rtol=1e-5), float(
        jnp.max(jnp.abs(out - ref)))

    print("KERNEL_OK")
</pallas_src>

<mosaic_0001>
module attributes {stable_mosaic.version = 11 : i64} {
  func.func @fused_s2t_kernel(%arg0: i32, %arg1: memref<4x8xi32, #tpu.memory_space<smem>>, %arg2: memref<4x16xi32, #tpu.memory_space<smem>>, %arg3: memref<4xi32, #tpu.memory_space<smem>>, %arg4: memref<4xi32, #tpu.memory_space<smem>>, %arg5: memref<64x128xf32, #tpu.memory_space<any>>, %arg6: memref<64x128xf32, #tpu.memory_space<any>>, %arg7: memref<128x128xf32, #tpu.memory_space<vmem>>, %arg8: memref<1x128xf32, #tpu.memory_space<vmem>>, %arg9: memref<128x128xf32, #tpu.memory_space<vmem>>, %arg10: memref<128x128xf32, #tpu.memory_space<vmem>>, %arg11: memref<1x128xf32, #tpu.memory_space<vmem>>, %arg12: memref<128x128xf32, #tpu.memory_space<vmem>>, %arg13: memref<1x128xf32, #tpu.memory_space<vmem>>, %arg14: memref<1x1x128xf32, #tpu.memory_space<vmem>>, %arg15: memref<8x128xf32, #tpu.memory_space<vmem>>, %arg16: memref<16x128xf32, #tpu.memory_space<vmem>>, %arg17: memref<8x!tpu.dma_semaphore, #tpu.memory_space<semaphore_mem>>, %arg18: memref<16x!tpu.dma_semaphore, #tpu.memory_space<semaphore_mem>>) attributes {dimension_semantics = [#tpu.dimension_semantics<parallel>], iteration_bounds = array<i64: 4>, scalar_prefetch = 4 : i64, scratch_operands = 4 : i64, tpu.core_type = #tpu.core_type<tc>, window_params = [{}, {}, {pipeline_mode = #tpu.pipeline_mode<synchronous>, transform_indices = @transform_2, window_bounds = array<i64: 128, 128>}, {pipeline_mode = #tpu.pipeline_mode<synchronous>, transform_indices = @transform_3, window_bounds = array<i64: 1, 128>}, {pipeline_mode = #tpu.pipeline_mode<synchronous>, transform_indices = @transform_4, window_bounds = array<i64: 128, 128>}, {pipeline_mode = #tpu.pipeline_mode<synchronous>, transform_indices = @transform_5, window_bounds = array<i64: 128, 128>}, {pipeline_mode = #tpu.pipeline_mode<synchronous>, transform_indices = @transform_6, window_bounds = array<i64: 1, 128>}, {pipeline_mode = #tpu.pipeline_mode<synchronous>, transform_indices = @transform_7, window_bounds = array<i64: 128, 128>}, {pipeline_mode = #tpu.pipeline_mode<synchronous>, transform_indices = @transform_8, window_bounds = array<i64: 1, 128>}, {transform_indices = @transform_9, window_bounds = array<i64: 1, 1, 128>}]} {
    %0 = arith.index_cast %arg0 : i32 to index
    %c0 = arith.constant 0 : index
    %1 = memref.load %arg1[%0, %c0] : memref<4x8xi32, #tpu.memory_space<smem>>
    %c0_i32 = arith.constant 0 : i32
    %c0_i32_0 = arith.constant 0 : i32
    %2 = tpu.memref_slice %arg5[%1, %c0_i32_0] : memref<64x128xf32, #tpu.memory_space<any>> -> memref<1x128xf32, #tpu.memory_space<any>>
    %c0_i32_1 = arith.constant 0 : i32
    %c0_i32_2 = arith.constant 0 : i32
    %3 = tpu.memref_slice %arg15[%c0_i32_1, %c0_i32_2] : memref<8x128xf32, #tpu.memory_space<vmem>> -> memref<1x128xf32, #tpu.memory_space<vmem>>
    %4 = tpu.memref_slice %arg17[%c0_i32] : memref<8x!tpu.dma_semaphore, #tpu.memory_space<semaphore_mem>> -> memref<1x!tpu.dma_semaphore, #tpu.memory_space<semaphore_mem>>
    %5 = tpu.memref_squeeze %4 : memref<1x!tpu.dma_semaphore, #tpu.memory_space<semaphore_mem>> -> memref<!tpu.dma_semaphore, #tpu.memory_space<semaphore_mem>>
    tpu.enqueue_dma source(%2 : memref<1x128xf32, #tpu.memory_space<any>>) target(%3 : memref<1x128xf32, #tpu.memory_space<vmem>>) target_semaphore(%5 : memref<!tpu.dma_semaphore, #tpu.memory_space<semaphore_mem>>)
    %6 = arith.index_cast %arg0 : i32 to index
    %c1 = arith.constant 1 : index
    %7 = memref.load %arg1[%6, %c1] : memref<4x8xi32, #tpu.memory_space<smem>>
    %c1_i32 = arith.constant 1 : i32
    %c0_i32_3 = arith.constant 0 : i32
    %8 = tpu.memref_slice %arg5[%7, %c0_i32_3] : memref<64x128xf32, #tpu.memory_space<any>> -> memref<1x128xf32, #tpu.memory_space<any>>
    %c1_i32_4 = arith.constant 1 : i32
    %c0_i32_5 = arith.constant 0 : i32
    %9 = tpu.memref_slice %arg15[%c1_i32_4, %c0_i32_5] : memref<8x128xf32, #tpu.memory_space<vmem>> -> memref<1x128xf32, #tpu.memory_space<vmem>>
    %10 = tpu.memref_slice %arg17[%c1_i32] : memref<8x!tpu.dma_semaphore, #tpu.memory_space<semaphore_mem>> -> memref<1x!tpu.dma_semaphore, #tpu.memory_space<semaphore_mem>>
    %11 = tpu.memref_squeeze %10 : memref<1x!tpu.dma_semaphore, #tpu.memory_space<semaphore_mem>> -> memref<!tpu.dma_semaphore, #tpu.memory_space<semaphore_mem>>
    tpu.enqueue_dma source(%8 : memref<1x128xf32, #tpu.memory_space<any>>) target(%9 : memref<1x128xf32, #tpu.memory_space<vmem>>) target_semaphore(%11 : memref<!tpu.dma_semaphore, #tpu.memory_space<semaphore_mem>>)
    %12 = arith.index_cast %arg0 : i32 to index
    %c2 = arith.constant 2 : index
    %13 = memref.load %arg1[%12, %c2] : memref<4x8xi32, #tpu.memory_space<smem>>
    %c2_i32 = arith.constant 2 : i32
    %c0_i32_6 = arith.constant 0 : i32
    %14 = tpu.memref_slice %arg5[%13, %c0_i32_6] : memref<64x128xf32, #tpu.memory_space<any>> -> memref<1x128xf32, #tpu.memory_space<any>>
    %c2_i32_7 = arith.constant 2 : i32
    %c0_i32_8 = arith.constant 0 : i32
    %15 = tpu.memref_slice %arg15[%c2_i32_7, %c0_i32_8] : memref<8x128xf32, #tpu.memory_space<vmem>> -> memref<1x128xf32, #tpu.memory_space<vmem>>
    %16 = tpu.memref_slice %arg17[%c2_i32] : memref<8x!tpu.dma_semaphore, #tpu.memory_space<semaphore_mem>> -> memref<1x!tpu.dma_semaphore, #tpu.memory_space<semaphore_mem>>
    %17 = tpu.memref_squeeze %16 : memref<1x!tpu.dma_semaphore, #tpu.memory_space<semaphore_mem>> -> memref<!tpu.dma_semaphore, #tpu.memory_space<semaphore_mem>>
    tpu.enqueue_dma source(%14 : memref<1x128xf32, #tpu.memory_space<any>>) target(%15 : memref<1x128xf32, #tpu.memory_space<vmem>>) target_semaphore(%17 : memref<!tpu.dma_semaphore, #tpu.memory_space<semaphore_mem>>)
    %18 = arith.index_cast %arg0 : i32 to index
    %c3 = arith.constant 3 : index
    %19 = memref.load %arg1[%18, %c3] : memref<4x8xi32, #tpu.memory_space<smem>>
    %c3_i32 = arith.constant 3 : i32
    %c0_i32_9 = arith.constant 0 : i32
    %20 = tpu.memref_slice %arg5[%19, %c0_i32_9] : memref<64x128xf32, #tpu.memory_space<any>> -> memref<1x128xf32, #tpu.memory_space<any>>
    %c3_i32_10 = arith.constant 3 : i32
    %c0_i32_11 = arith.constant 0 : i32
    %21 = tpu.memref_slice %arg15[%c3_i32_10, %c0_i32_11] : memref<8x128xf32, #tpu.memory_space<vmem>> -> memref<1x128xf32, #tpu.memory_space<vmem>>
    %22 = tpu.memref_slice %arg17[%c3_i32] : memref<8x!tpu.dma_semaphore, #tpu.memory_space<semaphore_mem>> -> memref<1x!tpu.dma_semaphore, #tpu.memory_space<semaphore_mem>>
    %23 = tpu.memref_squeeze %22 : memref<1x!tpu.dma_semaphore, #tpu.memory_space<semaphore_mem>> -> memref<!tpu.dma_semaphore, #tpu.memory_space<semaphore_mem>>
    tpu.enqueue_dma source(%20 : memref<1x128xf32, #tpu.memory_space<any>>) target(%21 : memref<1x128xf32, #tpu.memory_space<vmem>>) target_semaphore(%23 : memref<!tpu.dma_semaphore, #tpu.memory_space<semaphore_mem>>)
    %24 = arith.index_cast %arg0 : i32 to index
    %c4 = arith.constant 4 : index
    %25 = memref.load %arg1[%24, %c4] : memref<4x8xi32, #tpu.memory_space<smem>>
    %c4_i32 = arith.constant 4 : i32
    %c0_i32_12 = arith.constant 0 : i32
    %26 = tpu.memref_slice %arg5[%25, %c0_i32_12] : memref<64x128xf32, #tpu.memory_space<any>> -> memref<1x128xf32, #tpu.memory_space<any>>
    %c4_i32_13 = arith.constant 4 : i32
    %c0_i32_14 = arith.constant 0 : i32
    %27 = tpu.memref_slice %arg15[%c4_i32_13, %c0_i32_14] : memref<8x128xf32, #tpu.memory_space<vmem>> -> memref<1x128xf32, #tpu.memory_space<vmem>>
    %28 = tpu.memref_slice %arg17[%c4_i32] : memref<8x!tpu.dma_semaphore, #tpu.memory_space<semaphore_mem>> -> memref<1x!tpu.dma_semaphore, #tpu.memory_space<semaphore_mem>>
    %29 = tpu.memref_squeeze %28 : memref<1x!tpu.dma_semaphore, #tpu.memory_space<semaphore_mem>> -> memref<!tpu.dma_semaphore, #tpu.memory_space<semaphore_mem>>
    tpu.enqueue_dma source(%26 : memref<1x128xf32, #tpu.memory_space<any>>) target(%27 : memref<1x128xf32, #tpu.memory_space<vmem>>) target_semaphore(%29 : memref<!tpu.dma_semaphore, #tpu.memory_space<semaphore_mem>>)
    %30 = arith.index_cast %arg0 : i32 to index
    %c5 = arith.constant 5 : index
    %31 = memref.load %arg1[%30, %c5] : memref<4x8xi32, #tpu.memory_space<smem>>
    %c5_i32 = arith.constant 5 : i32
    %c0_i32_15 = arith.constant 0 : i32
    %32 = tpu.memref_slice %arg5[%31, %c0_i32_15] : memref<64x128xf32, #tpu.memory_space<any>> -> memref<1x128xf32, #tpu.memory_space<any>>
    %c5_i32_16 = arith.constant 5 : i32
    %c0_i32_17 = arith.constant 0 : i32
    %33 = tpu.memref_slice %arg15[%c5_i32_16, %c0_i32_17] : memref<8x128xf32, #tpu.memory_space<vmem>> -> memref<1x128xf32, #tpu.memory_space<vmem>>
    %34 = tpu.memref_slice %arg17[%c5_i32] : memref<8x!tpu.dma_semaphore, #tpu.memory_space<semaphore_mem>> -> memref<1x!tpu.dma_semaphore, #tpu.memory_space<semaphore_mem>>
    %35 = tpu.memref_squeeze %34 : memref<1x!tpu.dma_semaphore, #tpu.memory_space<semaphore_mem>> -> memref<!tpu.dma_semaphore, #tpu.memory_space<semaphore_mem>>
    tpu.enqueue_dma source(%32 : memref<1x128xf32, #tpu.memory_space<any>>) target(%33 : memref<1x128xf32, #tpu.memory_space<vmem>>) target_semaphore(%35 : memref<!tpu.dma_semaphore, #tpu.memory_space<semaphore_mem>>)
    %36 = arith.index_cast %arg0 : i32 to index
    %c6 = arith.constant 6 : index
    %37 = memref.load %arg1[%36, %c6] : memref<4x8xi32, #tpu.memory_space<smem>>
    %c6_i32 = arith.constant 6 : i32
    %c0_i32_18 = arith.constant 0 : i32
    %38 = tpu.memref_slice %arg5[%37, %c0_i32_18] : memref<64x128xf32, #tpu.memory_space<any>> -> memref<1x128xf32, #tpu.memory_space<any>>
    %c6_i32_19 = arith.constant 6 : i32
    %c0_i32_20 = arith.constant 0 : i32
    %39 = tpu.memref_slice %arg15[%c6_i32_19, %c0_i32_20] : memref<8x128xf32, #tpu.memory_space<vmem>> -> memref<1x128xf32, #tpu.memory_space<vmem>>
    %40 = tpu.memref_slice %arg17[%c6_i32] : memref<8x!tpu.dma_semaphore, #tpu.memory_space<semaphore_mem>> -> memref<1x!tpu.dma_semaphore, #tpu.memory_space<semaphore_mem>>
    %41 = tpu.memref_squeeze %40 : memref<1x!tpu.dma_semaphore, #tpu.memory_space<semaphore_mem>> -> memref<!tpu.dma_semaphore, #tpu.memory_space<semaphore_mem>>
    tpu.enqueue_dma source(%38 : memref<1x128xf32, #tpu.memory_space<any>>) target(%39 : memref<1x128xf32, #tpu.memory_space<vmem>>) target_semaphore(%41 : memref<!tpu.dma_semaphore, #tpu.memory_space<semaphore_mem>>)
    %42 = arith.index_cast %arg0 : i32 to index
    %c7 = arith.constant 7 : index
    %43 = memref.load %arg1[%42, %c7] : memref<4x8xi32, #tpu.memory_space<smem>>
    %c7_i32 = arith.constant 7 : i32
    %c0_i32_21 = arith.constant 0 : i32
    %44 = tpu.memref_slice %arg5[%43, %c0_i32_21] : memref<64x128xf32, #tpu.memory_space<any>> -> memref<1x128xf32, #tpu.memory_space<any>>
    %c7_i32_22 = arith.constant 7 : i32
    %c0_i32_23 = arith.constant 0 : i32
    %45 = tpu.memref_slice %arg15[%c7_i32_22, %c0_i32_23] : memref<8x128xf32, #tpu.memory_space<vmem>> -> memref<1x128xf32, #tpu.memory_space<vmem>>
    %46 = tpu.memref_slice %arg17[%c7_i32] : memref<8x!tpu.dma_semaphore, #tpu.memory_space<semaphore_mem>> -> memref<1x!tpu.dma_semaphore, #tpu.memory_space<semaphore_mem>>
    %47 = tpu.memref_squeeze %46 : memref<1x!tpu.dma_semaphore, #tpu.memory_space<semaphore_mem>> -> memref<!tpu.dma_semaphore, #tpu.memory_space<semaphore_mem>>
    tpu.enqueue_dma source(%44 : memref<1x128xf32, #tpu.memory_space<any>>) target(%45 : memref<1x128xf32, #tpu.memory_space<vmem>>) target_semaphore(%47 : memref<!tpu.dma_semaphore, #tpu.memory_space<semaphore_mem>>)
    %48 = arith.index_cast %arg0 : i32 to index
    %c0_24 = arith.constant 0 : index
    %49 = memref.load %arg2[%48, %c0_24] : memref<4x16xi32, #tpu.memory_space<smem>>
    %c0_i32_25 = arith.constant 0 : i32
    %c0_i32_26 = arith.constant 0 : i32
    %50 = tpu.memref_slice %arg6[%49, %c0_i32_26] : memref<64x128xf32, #tpu.memory_space<any>> -> memref<1x128xf32, #tpu.memory_space<any>>
    %c0_i32_27 = arith.constant 0 : i32
    %c0_i32_28 = arith.constant 0 : i32
    %51 = tpu.memref_slice %arg16[%c0_i32_27, %c0_i32_28] : memref<16x128xf32, #tpu.memory_space<vmem>> -> memref<1x128xf32, #tpu.memory_space<vmem>>
    %52 = tpu.memref_slice %arg18[%c0_i32_25] : memref<16x!tpu.dma_semaphore, #tpu.memory_space<semaphore_mem>> -> memref<1x!tpu.dma_semaphore, #tpu.memory_space<semaphore_mem>>
    %53 = tpu.memref_squeeze %52 : memref<1x!tpu.dma_semaphore, #tpu.memory_space<semaphore_mem>> -> memref<!tpu.dma_semaphore, #tpu.memory_space<semaphore_mem>>
    tpu.enqueue_dma source(%50 : memref<1x128xf32, #tpu.memory_space<any>>) target(%51 : memref<1x128xf32, #tpu.memory_space<vmem>>) target_semaphore(%53 : memref<!tpu.dma_semaphore, #tpu.memory_space<semaphore_mem>>)
    %54 = arith.index_cast %arg0 : i32 to index
    %c1_29 = arith.constant 1 : index
    %55 = memref.load %arg2[%54, %c1_29] : memref<4x16xi32, #tpu.memory_space<smem>>
    %c1_i32_30 = arith.constant 1 : i32
    %c0_i32_31 = arith.constant 0 : i32
    %56 = tpu.memref_slice %arg6[%55, %c0_i32_31] : memref<64x128xf32, #tpu.memory_space<any>> -> memref<1x128xf32, #tpu.memory_space<any>>
    %c1_i32_32 = arith.constant 1 : i32
    %c0_i32_33 = arith.constant 0 : i32
    %57 = tpu.memref_slice %arg16[%c1_i32_32, %c0_i32_33] : memref<16x128xf32, #tpu.memory_space<vmem>> -> memref<1x128xf32, #tpu.memory_space<vmem>>
    %58 = tpu.memref_slice %arg18[%c1_i32_30] : memref<16x!tpu.dma_semaphore, #tpu.memory_space<semaphore_mem>> -> memref<1x!tpu.dma_semaphore, #tpu.memory_space<semaphore_mem>>
    %59 = tpu.memref_squeeze %58 : memref<1x!tpu.dma_semaphore, #tpu.memory_space<semaphore_mem>> -> memref<!tpu.dma_semaphore, #tpu.memory_space<semaphore_mem>>
    tpu.enqueue_dma source(%56 : memref<1x128xf32, #tpu.memory_space<any>>) target(%57 : memref<1x128xf32, #tpu.memory_space<vmem>>) target_semaphore(%59 : memref<!tpu.dma_semaphore, #tpu.memory_space<semaphore_mem>>)
    %60 = arith.index_cast %arg0 : i32 to index
    %c2_34 = arith.constant 2 : index
    %61 = memref.load %arg2[%60, %c2_34] : memref<4x16xi32, #tpu.memory_space<smem>>
    %c2_i32_35 = arith.constant 2 : i32
    %c0_i32_36 = arith.constant 0 : i32
    %62 = tpu.memref_slice %arg6[%61, %c0_i32_36] : memref<64x128xf32, #tpu.memory_space<any>> -> memref<1x128xf32, #tpu.memory_space<any>>
    %c2_i32_37 = arith.constant 2 : i32
    %c0_i32_38 = arith.constant 0 : i32
    %63 = tpu.memref_slice %arg16[%c2_i32_37, %c0_i32_38] : memref<16x128xf32, #tpu.memory_space<vmem>> -> memref<1x128xf32, #tpu.memory_space<vmem>>
    %64 = tpu.memref_slice %arg18[%c2_i32_35] : memref<16x!tpu.dma_semaphore, #tpu.memory_space<semaphore_mem>> -> memref<1x!tpu.dma_semaphore, #tpu.memory_space<semaphore_mem>>
    %65 = tpu.memref_squeeze %64 : memref<1x!tpu.dma_semaphore, #tpu.memory_space<semaphore_mem>> -> memref<!tpu.dma_semaphore, #tpu.memory_space<semaphore_mem>>
    tpu.enqueue_dma source(%62 : memref<1x128xf32, #tpu.memory_space<any>>) target(%63 : memref<1x128xf32, #tpu.memory_space<vmem>>) target_semaphore(%65 : memref<!tpu.dma_semaphore, #tpu.memory_space<semaphore_mem>>)
    %66 = arith.index_cast %arg0 : i32 to index
    %c3_39 = arith.constant 3 : index
    %67 = memref.load %arg2[%66, %c3_39] : memref<4x16xi32, #tpu.memory_space<smem>>
    %c3_i32_40 = arith.constant 3 : i32
    %c0_i32_41 = arith.constant 0 : i32
    %68 = tpu.memref_slice %arg6[%67, %c0_i32_41] : memref<64x128xf32, #tpu.memory_space<any>> -> memref<1x128xf32, #tpu.memory_space<any>>
    %c3_i32_42 = arith.constant 3 : i32
    %c0_i32_43 = arith.constant 0 : i32
    %69 = tpu.memref_slice %arg16[%c3_i32_42, %c0_i32_43] : memref<16x128xf32, #tpu.memory_space<vmem>> -> memref<1x128xf32, #tpu.memory_space<vmem>>
    %70 = tpu.memref_slice %arg18[%c3_i32_40] : memref<16x!tpu.dma_semaphore, #tpu.memory_space<semaphore_mem>> -> memref<1x!tpu.dma_semaphore, #tpu.memory_space<semaphore_mem>>
    %71 = tpu.memref_squeeze %70 : memref<1x!tpu.dma_semaphore, #tpu.memory_space<semaphore_mem>> -> memref<!tpu.dma_semaphore, #tpu.memory_space<semaphore_mem>>
    tpu.enqueue_dma source(%68 : memref<1x128xf32, #tpu.memory_space<any>>) target(%69 : memref<1x128xf32, #tpu.memory_space<vmem>>) target_semaphore(%71 : memref<!tpu.dma_semaphore, #tpu.memory_space<semaphore_mem>>)
    %72 = arith.index_cast %arg0 : i32 to index
    %c4_44 = arith.constant 4 : index
    %73 = memref.load %arg2[%72, %c4_44] : memref<4x16xi32, #tpu.memory_space<smem>>
    %c4_i32_45 = arith.constant 4 : i32
    %c0_i32_46 = arith.constant 0 : i32
    %74 = tpu.memref_slice %arg6[%73, %c0_i32_46] : memref<64x128xf32, #tpu.memory_space<any>> -> memref<1x128xf32, #tpu.memory_space<any>>
    %c4_i32_47 = arith.constant 4 : i32
    %c0_i32_48 = arith.constant 0 : i32
    %75 = tpu.memref_slice %arg16[%c4_i32_47, %c0_i32_48] : memref<16x128xf32, #tpu.memory_space<vmem>> -> memref<1x128xf32, #tpu.memory_space<vmem>>
    %76 = tpu.memref_slice %arg18[%c4_i32_45] : memref<16x!tpu.dma_semaphore, #tpu.memory_space<semaphore_mem>> -> memref<1x!tpu.dma_semaphore, #tpu.memory_space<semaphore_mem>>
    %77 = tpu.memref_squeeze %76 : memref<1x!tpu.dma_semaphore, #tpu.memory_space<semaphore_mem>> -> memref<!tpu.dma_semaphore, #tpu.memory_space<semaphore_mem>>
    tpu.enqueue_dma source(%74 : memref<1x128xf32, #tpu.memory_space<any>>) target(%75 : memref<1x128xf32, #tpu.memory_space<vmem>>) target_semaphore(%77 : memref<!tpu.dma_semaphore, #tpu.memory_space<semaphore_mem>>)
    %78 = arith.index_cast %arg0 : i32 to index
    %c5_49 = arith.constant 5 : index
    %79 = memref.load %arg2[%78, %c5_49] : memref<4x16xi32, #tpu.memory_space<smem>>
    %c5_i32_50 = arith.constant 5 : i32
    %c0_i32_51 = arith.constant 0 : i32
    %80 = tpu.memref_slice %arg6[%79, %c0_i32_51] : memref<64x128xf32, #tpu.memory_space<any>> -> memref<1x128xf32, #tpu.memory_space<any>>
    %c5_i32_52 = arith.constant 5 : i32
    %c0_i32_53 = arith.constant 0 : i32
    %81 = tpu.memref_slice %arg16[%c5_i32_52, %c0_i32_53] : memref<16x128xf32, #tpu.memory_space<vmem>> -> memref<1x128xf32, #tpu.memory_space<vmem>>
    %82 = tpu.memref_slice %arg18[%c5_i32_50] : memref<16x!tpu.dma_semaphore, #tpu.memory_space<semaphore_mem>> -> memref<1x!tpu.dma_semaphore, #tpu.memory_space<semaphore_mem>>
    %83 = tpu.memref_squeeze %82 : memref<1x!tpu.dma_semaphore, #tpu.memory_space<semaphore_mem>> -> memref<!tpu.dma_semaphore, #tpu.memory_space<semaphore_mem>>
    tpu.enqueue_dma source(%80 : memref<1x128xf32, #tpu.memory_space<any>>) target(%81 : memref<1x128xf32, #tpu.memory_space<vmem>>) target_semaphore(%83 : memref<!tpu.dma_semaphore, #tpu.memory_space<semaphore_mem>>)
    %84 = arith.index_cast %arg0 : i32 to index
    %c6_54 = arith.constant 6 : index
    %85 = memref.load %arg2[%84, %c6_54] : memref<4x16xi32, #tpu.memory_space<smem>>
    %c6_i32_55 = arith.constant 6 : i32
    %c0_i32_56 = arith.constant 0 : i32
    %86 = tpu.memref_slice %arg6[%85, %c0_i32_56] : memref<64x128xf32, #tpu.memory_space<any>> -> memref<1x128xf32, #tpu.memory_space<any>>
    %c6_i32_57 = arith.constant 6 : i32
    %c0_i32_58 = arith.constant 0 : i32
    %87 = tpu.memref_slice %arg16[%c6_i32_57, %c0_i32_58] : memref<16x128xf32, #tpu.memory_space<vmem>> -> memref<1x128xf32, #tpu.memory_space<vmem>>
    %88 = tpu.memref_slice %arg18[%c6_i32_55] : memref<16x!tpu.dma_semaphore, #tpu.memory_space<semaphore_mem>> -> memref<1x!tpu.dma_semaphore, #tpu.memory_space<semaphore_mem>>
    %89 = tpu.memref_squeeze %88 : memref<1x!tpu.dma_semaphore, #tpu.memory_space<semaphore_mem>> -> memref<!tpu.dma_semaphore, #tpu.memory_space<semaphore_mem>>
    tpu.enqueue_dma source(%86 : memref<1x128xf32, #tpu.memory_space<any>>) target(%87 : memref<1x128xf32, #tpu.memory_space<vmem>>) target_semaphore(%89 : memref<!tpu.dma_semaphore, #tpu.memory_space<semaphore_mem>>)
    %90 = arith.index_cast %arg0 : i32 to index
    %c7_59 = arith.constant 7 : index
    %91 = memref.load %arg2[%90, %c7_59] : memref<4x16xi32, #tpu.memory_space<smem>>
    %c7_i32_60 = arith.constant 7 : i32
    %c0_i32_61 = arith.constant 0 : i32
    %92 = tpu.memref_slice %arg6[%91, %c0_i32_61] : memref<64x128xf32, #tpu.memory_space<any>> -> memref<1x128xf32, #tpu.memory_space<any>>
    %c7_i32_62 = arith.constant 7 : i32
    %c0_i32_63 = arith.constant 0 : i32
    %93 = tpu.memref_slice %arg16[%c7_i32_62, %c0_i32_63] : memref<16x128xf32, #tpu.memory_space<vmem>> -> memref<1x128xf32, #tpu.memory_space<vmem>>
    %94 = tpu.memref_slice %arg18[%c7_i32_60] : memref<16x!tpu.dma_semaphore, #tpu.memory_space<semaphore_mem>> -> memref<1x!tpu.dma_semaphore, #tpu.memory_space<semaphore_mem>>
    %95 = tpu.memref_squeeze %94 : memref<1x!tpu.dma_semaphore, #tpu.memory_space<semaphore_mem>> -> memref<!tpu.dma_semaphore, #tpu.memory_space<semaphore_mem>>
    tpu.enqueue_dma source(%92 : memref<1x128xf32, #tpu.memory_space<any>>) target(%93 : memref<1x128xf32, #tpu.memory_space<vmem>>) target_semaphore(%95 : memref<!tpu.dma_semaphore, #tpu.memory_space<semaphore_mem>>)
    %96 = arith.index_cast %arg0 : i32 to index
    %c8 = arith.constant 8 : index
    %97 = memref.load %arg2[%96, %c8] : memref<4x16xi32, #tpu.memory_space<smem>>
    %c8_i32 = arith.constant 8 : i32
    %c0_i32_64 = arith.constant 0 : i32
    %98 = tpu.memref_slice %arg6[%97, %c0_i32_64] : memref<64x128xf32, #tpu.memory_space<any>> -> memref<1x128xf32, #tpu.memory_space<any>>
    %c8_i32_65 = arith.constant 8 : i32
    %c0_i32_66 = arith.constant 0 : i32
    %99 = tpu.memref_slice %arg16[%c8_i32_65, %c0_i32_66] : memref<16x128xf32, #tpu.memory_space<vmem>> -> memref<1x128xf32, #tpu.memory_space<vmem>>
    %100 = tpu.memref_slice %arg18[%c8_i32] : memref<16x!tpu.dma_semaphore, #tpu.memory_space<semaphore_mem>> -> memref<1x!tpu.dma_semaphore, #tpu.memory_space<semaphore_mem>>
    %101 = tpu.memref_squeeze %100 : memref<1x!tpu.dma_semaphore, #tpu.memory_space<semaphore_mem>> -> memref<!tpu.dma_semaphore, #tpu.memory_space<semaphore_mem>>
    tpu.enqueue_dma source(%98 : memref<1x128xf32, #tpu.memory_space<any>>) target(%99 : memref<1x128xf32, #tpu.memory_space<vmem>>) target_semaphore(%101 : memref<!tpu.dma_semaphore, #tpu.memory_space<semaphore_mem>>)
    %102 = arith.index_cast %arg0 : i32 to index
    %c9 = arith.constant 9 : index
    %103 = memref.load %arg2[%102, %c9] : memref<4x16xi32, #tpu.memory_space<smem>>
    %c9_i32 = arith.constant 9 : i32
    %c0_i32_67 = arith.constant 0 : i32
    %104 = tpu.memref_slice %arg6[%103, %c0_i32_67] : memref<64x128xf32, #tpu.memory_space<any>> -> memref<1x128xf32, #tpu.memory_space<any>>
    %c9_i32_68 = arith.constant 9 : i32
    %c0_i32_69 = arith.constant 0 : i32
    %105 = tpu.memref_slice %arg16[%c9_i32_68, %c0_i32_69] : memref<16x128xf32, #tpu.memory_space<vmem>> -> memref<1x128xf32, #tpu.memory_space<vmem>>
    %106 = tpu.memref_slice %arg18[%c9_i32] : memref<16x!tpu.dma_semaphore, #tpu.memory_space<semaphore_mem>> -> memref<1x!tpu.dma_semaphore, #tpu.memory_space<semaphore_mem>>
    %107 = tpu.memref_squeeze %106 : memref<1x!tpu.dma_semaphore, #tpu.memory_space<semaphore_mem>> -> memref<!tpu.dma_semaphore, #tpu.memory_space<semaphore_mem>>
    tpu.enqueue_dma source(%104 : memref<1x128xf32, #tpu.memory_space<any>>) target(%105 : memref<1x128xf32, #tpu.memory_space<vmem>>) target_semaphore(%107 : memref<!tpu.dma_semaphore, #tpu.memory_space<semaphore_mem>>)
    %108 = arith.index_cast %arg0 : i32 to index
    %c10 = arith.constant 10 : index
    %109 = memref.load %arg2[%108, %c10] : memref<4x16xi32, #tpu.memory_space<smem>>
    %c10_i32 = arith.constant 10 : i32
    %c0_i32_70 = arith.constant 0 : i32
    %110 = tpu.memref_slice %arg6[%109, %c0_i32_70] : memref<64x128xf32, #tpu.memory_space<any>> -> memref<1x128xf32, #tpu.memory_space<any>>
    %c10_i32_71 = arith.constant 10 : i32
    %c0_i32_72 = arith.constant 0 : i32
    %111 = tpu.memref_slice %arg16[%c10_i32_71, %c0_i32_72] : memref<16x128xf32, #tpu.memory_space<vmem>> -> memref<1x128xf32, #tpu.memory_space<vmem>>
    %112 = tpu.memref_slice %arg18[%c10_i32] : memref<16x!tpu.dma_semaphore, #tpu.memory_space<semaphore_mem>> -> memref<1x!tpu.dma_semaphore, #tpu.memory_space<semaphore_mem>>
    %113 = tpu.memref_squeeze %112 : memref<1x!tpu.dma_semaphore, #tpu.memory_space<semaphore_mem>> -> memref<!tpu.dma_semaphore, #tpu.memory_space<semaphore_mem>>
    tpu.enqueue_dma source(%110 : memref<1x128xf32, #tpu.memory_space<any>>) target(%111 : memref<1x128xf32, #tpu.memory_space<vmem>>) target_semaphore(%113 : memref<!tpu.dma_semaphore, #tpu.memory_space<semaphore_mem>>)
    %114 = arith.index_cast %arg0 : i32 to index
    %c11 = arith.constant 11 : index
    %115 = memref.load %arg2[%114, %c11] : memref<4x16xi32, #tpu.memory_space<smem>>
    %c11_i32 = arith.constant 11 : i32
    %c0_i32_73 = arith.constant 0 : i32
    %116 = tpu.memref_slice %arg6[%115, %c0_i32_73] : memref<64x128xf32, #tpu.memory_space<any>> -> memref<1x128xf32, #tpu.memory_space<any>>
    %c11_i32_74 = arith.constant 11 : i32
    %c0_i32_75 = arith.constant 0 : i32
    %117 = tpu.memref_slice %arg16[%c11_i32_74, %c0_i32_75] : memref<16x128xf32, #tpu.memory_space<vmem>> -> memref<1x128xf32, #tpu.memory_space<vmem>>
    %118 = tpu.memref_slice %arg18[%c11_i32] : memref<16x!tpu.dma_semaphore, #tpu.memory_space<semaphore_mem>> -> memref<1x!tpu.dma_semaphore, #tpu.memory_space<semaphore_mem>>
    %119 = tpu.memref_squeeze %118 : memref<1x!tpu.dma_semaphore, #tpu.memory_space<semaphore_mem>> -> memref<!tpu.dma_semaphore, #tpu.memory_space<semaphore_mem>>
    tpu.enqueue_dma source(%116 : memref<1x128xf32, #tpu.memory_space<any>>) target(%117 : memref<1x128xf32, #tpu.memory_space<vmem>>) target_semaphore(%119 : memref<!tpu.dma_semaphore, #tpu.memory_space<semaphore_mem>>)
    %120 = arith.index_cast %arg0 : i32 to index
    %c12 = arith.constant 12 : index
    %121 = memref.load %arg2[%120, %c12] : memref<4x16xi32, #tpu.memory_space<smem>>
    %c12_i32 = arith.constant 12 : i32
    %c0_i32_76 = arith.constant 0 : i32
    %122 = tpu.memref_slice %arg6[%121, %c0_i32_76] : memref<64x128xf32, #tpu.memory_space<any>> -> memref<1x128xf32, #tpu.memory_space<any>>
    %c12_i32_77 = arith.constant 12 : i32
    %c0_i32_78 = arith.constant 0 : i32
    %123 = tpu.memref_slice %arg16[%c12_i32_77, %c0_i32_78] : memref<16x128xf32, #tpu.memory_space<vmem>> -> memref<1x128xf32, #tpu.memory_space<vmem>>
    %124 = tpu.memref_slice %arg18[%c12_i32] : memref<16x!tpu.dma_semaphore, #tpu.memory_space<semaphore_mem>> -> memref<1x!tpu.dma_semaphore, #tpu.memory_space<semaphore_mem>>
    %125 = tpu.memref_squeeze %124 : memref<1x!tpu.dma_semaphore, #tpu.memory_space<semaphore_mem>> -> memref<!tpu.dma_semaphore, #tpu.memory_space<semaphore_mem>>
    tpu.enqueue_dma source(%122 : memref<1x128xf32, #tpu.memory_space<any>>) target(%123 : memref<1x128xf32, #tpu.memory_space<vmem>>) target_semaphore(%125 : memref<!tpu.dma_semaphore, #tpu.memory_space<semaphore_mem>>)
    %126 = arith.index_cast %arg0 : i32 to index
    %c13 = arith.constant 13 : index
    %127 = memref.load %arg2[%126, %c13] : memref<4x16xi32, #tpu.memory_space<smem>>
    %c13_i32 = arith.constant 13 : i32
    %c0_i32_79 = arith.constant 0 : i32
    %128 = tpu.memref_slice %arg6[%127, %c0_i32_79] : memref<64x128xf32, #tpu.memory_space<any>> -> memref<1x128xf32, #tpu.memory_space<any>>
    %c13_i32_80 = arith.constant 13 : i32
    %c0_i32_81 = arith.constant 0 : i32
    %129 = tpu.memref_slice %arg16[%c13_i32_80, %c0_i32_81] : memref<16x128xf32, #tpu.memory_space<vmem>> -> memref<1x128xf32, #tpu.memory_space<vmem>>
    %130 = tpu.memref_slice %arg18[%c13_i32] : memref<16x!tpu.dma_semaphore, #tpu.memory_space<semaphore_mem>> -> memref<1x!tpu.dma_semaphore, #tpu.memory_space<semaphore_mem>>
    %131 = tpu.memref_squeeze %130 : memref<1x!tpu.dma_semaphore, #tpu.memory_space<semaphore_mem>> -> memref<!tpu.dma_semaphore, #tpu.memory_space<semaphore_mem>>
    tpu.enqueue_dma source(%128 : memref<1x128xf32, #tpu.memory_space<any>>) target(%129 : memref<1x128xf32, #tpu.memory_space<vmem>>) target_semaphore(%131 : memref<!tpu.dma_semaphore, #tpu.memory_space<semaphore_mem>>)
    %132 = arith.index_cast %arg0 : i32 to index
    %c14 = arith.constant 14 : index
    %133 = memref.load %arg2[%132, %c14] : memref<4x16xi32, #tpu.memory_space<smem>>
    %c14_i32 = arith.constant 14 : i32
    %c0_i32_82 = arith.constant 0 : i32
    %134 = tpu.memref_slice %arg6[%133, %c0_i32_82] : memref<64x128xf32, #tpu.memory_space<any>> -> memref<1x128xf32, #tpu.memory_space<any>>
    %c14_i32_83 = arith.constant 14 : i32
    %c0_i32_84 = arith.constant 0 : i32
    %135 = tpu.memref_slice %arg16[%c14_i32_83, %c0_i32_84] : memref<16x128xf32, #tpu.memory_space<vmem>> -> memref<1x128xf32, #tpu.memory_space<vmem>>
    %136 = tpu.memref_slice %arg18[%c14_i32] : memref<16x!tpu.dma_semaphore, #tpu.memory_space<semaphore_mem>> -> memref<1x!tpu.dma_semaphore, #tpu.memory_space<semaphore_mem>>
    %137 = tpu.memref_squeeze %136 : memref<1x!tpu.dma_semaphore, #tpu.memory_space<semaphore_mem>> -> memref<!tpu.dma_semaphore, #tpu.memory_space<semaphore_mem>>
    tpu.enqueue_dma source(%134 : memref<1x128xf32, #tpu.memory_space<any>>) target(%135 : memref<1x128xf32, #tpu.memory_space<vmem>>) target_semaphore(%137 : memref<!tpu.dma_semaphore, #tpu.memory_space<semaphore_mem>>)
    %138 = arith.index_cast %arg0 : i32 to index
    %c15 = arith.constant 15 : index
    %139 = memref.load %arg2[%138, %c15] : memref<4x16xi32, #tpu.memory_space<smem>>
    %c15_i32 = arith.constant 15 : i32
    %c0_i32_85 = arith.constant 0 : i32
    %140 = tpu.memref_slice %arg6[%139, %c0_i32_85] : memref<64x128xf32, #tpu.memory_space<any>> -> memref<1x128xf32, #tpu.memory_space<any>>
    %c15_i32_86 = arith.constant 15 : i32
    %c0_i32_87 = arith.constant 0 : i32
    %141 = tpu.memref_slice %arg16[%c15_i32_86, %c0_i32_87] : memref<16x128xf32, #tpu.memory_space<vmem>> -> memref<1x128xf32, #tpu.memory_space<vmem>>
    %142 = tpu.memref_slice %arg18[%c15_i32] : memref<16x!tpu.dma_semaphore, #tpu.memory_space<semaphore_mem>> -> memref<1x!tpu.dma_semaphore, #tpu.memory_space<semaphore_mem>>
    %143 = tpu.memref_squeeze %142 : memref<1x!tpu.dma_semaphore, #tpu.memory_space<semaphore_mem>> -> memref<!tpu.dma_semaphore, #tpu.memory_space<semaphore_mem>>
    tpu.enqueue_dma source(%140 : memref<1x128xf32, #tpu.memory_space<any>>) target(%141 : memref<1x128xf32, #tpu.memory_space<vmem>>) target_semaphore(%143 : memref<!tpu.dma_semaphore, #tpu.memory_space<semaphore_mem>>)
    %c0_i32_88 = arith.constant 0 : i32
    %c0_i32_89 = arith.constant 0 : i32
    %c0_i32_90 = arith.constant 0 : i32
    %144 = tpu.memref_slice %arg5[%c0_i32_89, %c0_i32_90] : memref<64x128xf32, #tpu.memory_space<any>> -> memref<1x128xf32, #tpu.memory_space<any>>
    %c0_i32_91 = arith.constant 0 : i32
    %c0_i32_92 = arith.constant 0 : i32
    %145 = tpu.memref_slice %arg15[%c0_i32_91, %c0_i32_92] : memref<8x128xf32, #tpu.memory_space<vmem>> -> memref<1x128xf32, #tpu.memory_space<vmem>>
    %146 = tpu.memref_slice %arg17[%c0_i32_88] : memref<8x!tpu.dma_semaphore, #tpu.memory_space<semaphore_mem>> -> memref<1x!tpu.dma_semaphore, #tpu.memory_space<semaphore_mem>>
    %147 = tpu.memref_squeeze %146 : memref<1x!tpu.dma_semaphore, #tpu.memory_space<semaphore_mem>> -> memref<!tpu.dma_semaphore, #tpu.memory_space<semaphore_mem>>
    tpu.wait_dma2 semaphore(%147 : memref<!tpu.dma_semaphore, #tpu.memory_space<semaphore_mem>>) src(%144 : memref<1x128xf32, #tpu.memory_space<any>>) dst(%145 : memref<1x128xf32, #tpu.memory_space<vmem>>)
    %c1_i32_93 = arith.constant 1 : i32
    %c0_i32_94 = arith.constant 0 : i32
    %c0_i32_95 = arith.constant 0 : i32
    %148 = tpu.memref_slice %arg5[%c0_i32_94, %c0_i32_95] : memref<64x128xf32, #tpu.memory_space<any>> -> memref<1x128xf32, #tpu.memory_space<any>>
    %c1_i32_96 = arith.constant 1 : i32
    %c0_i32_97 = arith.constant 0 : i32
    %149 = tpu.memref_slice %arg15[%c1_i32_96, %c0_i32_97] : memref<8x128xf32, #tpu.memory_space<vmem>> -> memref<1x128xf32, #tpu.memory_space<vmem>>
    %150 = tpu.memref_slice %arg17[%c1_i32_93] : memref<8x!tpu.dma_semaphore, #tpu.memory_space<semaphore_mem>> -> memref<1x!tpu.dma_semaphore, #tpu.memory_space<semaphore_mem>>
    %151 = tpu.memref_squeeze %150 : memref<1x!tpu.dma_semaphore, #tpu.memory_space<semaphore_mem>> -> memref<!tpu.dma_semaphore, #tpu.memory_space<semaphore_mem>>
    tpu.wait_dma2 semaphore(%151 : memref<!tpu.dma_semaphore, #tpu.memory_space<semaphore_mem>>) src(%148 : memref<1x128xf32, #tpu.memory_space<any>>) dst(%149 : memref<1x128xf32, #tpu.memory_space<vmem>>)
    %c2_i32_98 = arith.constant 2 : i32
    %c0_i32_99 = arith.constant 0 : i32
    %c0_i32_100 = arith.constant 0 : i32
    %152 = tpu.memref_slice %arg5[%c0_i32_99, %c0_i32_100] : memref<64x128xf32, #tpu.memory_space<any>> -> memref<1x128xf32, #tpu.memory_space<any>>
    %c2_i32_101 = arith.constant 2 : i32
    %c0_i32_102 = arith.constant 0 : i32
    %153 = tpu.memref_slice %arg15[%c2_i32_101, %c0_i32_102] : memref<8x128xf32, #tpu.memory_space<vmem>> -> memref<1x128xf32, #tpu.memory_space<vmem>>
    %154 = tpu.memref_slice %arg17[%c2_i32_98] : memref<8x!tpu.dma_semaphore, #tpu.memory_space<semaphore_mem>> -> memref<1x!tpu.dma_semaphore, #tpu.memory_space<semaphore_mem>>
    %155 = tpu.memref_squeeze %154 : memref<1x!tpu.dma_semaphore, #tpu.memory_space<semaphore_mem>> -> memref<!tpu.dma_semaphore, #tpu.memory_space<semaphore_mem>>
    tpu.wait_dma2 semaphore(%155 : memref<!tpu.dma_semaphore, #tpu.memory_space<semaphore_mem>>) src(%152 : memref<1x128xf32, #tpu.memory_space<any>>) dst(%153 : memref<1x128xf32, #tpu.memory_space<vmem>>)
    %c3_i32_103 = arith.constant 3 : i32
    %c0_i32_104 = arith.constant 0 : i32
    %c0_i32_105 = arith.constant 0 : i32
    %156 = tpu.memref_slice %arg5[%c0_i32_104, %c0_i32_105] : memref<64x128xf32, #tpu.memory_space<any>> -> memref<1x128xf32, #tpu.memory_space<any>>
    %c3_i32_106 = arith.constant 3 : i32
    %c0_i32_107 = arith.constant 0 : i32
    %157 = tpu.memref_slice %arg15[%c3_i32_106, %c0_i32_107] : memref<8x128xf32, #tpu.memory_space<vmem>> -> memref<1x128xf32, #tpu.memory_space<vmem>>
    %158 = tpu.memref_slice %arg17[%c3_i32_103] : memref<8x!tpu.dma_semaphore, #tpu.memory_space<semaphore_mem>> -> memref<1x!tpu.dma_semaphore, #tpu.memory_space<semaphore_mem>>
    %159 = tpu.memref_squeeze %158 : memref<1x!tpu.dma_semaphore, #tpu.memory_space<semaphore_mem>> -> memref<!tpu.dma_semaphore, #tpu.memory_space<semaphore_mem>>
    tpu.wait_dma2 semaphore(%159 : memref<!tpu.dma_semaphore, #tpu.memory_space<semaphore_mem>>) src(%156 : memref<1x128xf32, #tpu.memory_space<any>>) dst(%157 : memref<1x128xf32, #tpu.memory_space<vmem>>)
    %c4_i32_108 = arith.constant 4 : i32
    %c0_i32_109 = arith.constant 0 : i32
    %c0_i32_110 = arith.constant 0 : i32
    %160 = tpu.memref_slice %arg5[%c0_i32_109, %c0_i32_110] : memref<64x128xf32, #tpu.memory_space<any>> -> memref<1x128xf32, #tpu.memory_space<any>>
    %c4_i32_111 = arith.constant 4 : i32
    %c0_i32_112 = arith.constant 0 : i32
    %161 = tpu.memref_slice %arg15[%c4_i32_111, %c0_i32_112] : memref<8x128xf32, #tpu.memory_space<vmem>> -> memref<1x128xf32, #tpu.memory_space<vmem>>
    %162 = tpu.memref_slice %arg17[%c4_i32_108] : memref<8x!tpu.dma_semaphore, #tpu.memory_space<semaphore_mem>> -> memref<1x!tpu.dma_semaphore, #tpu.memory_space<semaphore_mem>>
    %163 = tpu.memref_squeeze %162 : memref<1x!tpu.dma_semaphore, #tpu.memory_space<semaphore_mem>> -> memref<!tpu.dma_semaphore, #tpu.memory_space<semaphore_mem>>
    tpu.wait_dma2 semaphore(%163 : memref<!tpu.dma_semaphore, #tpu.memory_space<semaphore_mem>>) src(%160 : memref<1x128xf32, #tpu.memory_space<any>>) dst(%161 : memref<1x128xf32, #tpu.memory_space<vmem>>)
    %c5_i32_113 = arith.constant 5 : i32
    %c0_i32_114 = arith.constant 0 : i32
    %c0_i32_115 = arith.constant 0 : i32
    %164 = tpu.memref_slice %arg5[%c0_i32_114, %c0_i32_115] : memref<64x128xf32, #tpu.memory_space<any>> -> memref<1x128xf32, #tpu.memory_space<any>>
    %c5_i32_116 = arith.constant 5 : i32
    %c0_i32_117 = arith.constant 0 : i32
    %165 = tpu.memref_slice %arg15[%c5_i32_116, %c0_i32_117] : memref<8x128xf32, #tpu.memory_space<vmem>> -> memref<1x128xf32, #tpu.memory_space<vmem>>
    %166 = tpu.memref_slice %arg17[%c5_i32_113] : memref<8x!tpu.dma_semaphore, #tpu.memory_space<semaphore_mem>> -> memref<1x!tpu.dma_semaphore, #tpu.memory_space<semaphore_mem>>
    %167 = tpu.memref_squeeze %166 : memref<1x!tpu.dma_semaphore, #tpu.memory_space<semaphore_mem>> -> memref<!tpu.dma_semaphore, #tpu.memory_space<semaphore_mem>>
    tpu.wait_dma2 semaphore(%167 : memref<!tpu.dma_semaphore, #tpu.memory_space<semaphore_mem>>) src(%164 : memref<1x128xf32, #tpu.memory_space<any>>) dst(%165 : memref<1x128xf32, #tpu.memory_space<vmem>>)
    %c6_i32_118 = arith.constant 6 : i32
    %c0_i32_119 = arith.constant 0 : i32
    %c0_i32_120 = arith.constant 0 : i32
    %168 = tpu.memref_slice %arg5[%c0_i32_119, %c0_i32_120] : memref<64x128xf32, #tpu.memory_space<any>> -> memref<1x128xf32, #tpu.memory_space<any>>
    %c6_i32_121 = arith.constant 6 : i32
    %c0_i32_122 = arith.constant 0 : i32
    %169 = tpu.memref_slice %arg15[%c6_i32_121, %c0_i32_122] : memref<8x128xf32, #tpu.memory_space<vmem>> -> memref<1x128xf32, #tpu.memory_space<vmem>>
    %170 = tpu.memref_slice %arg17[%c6_i32_118] : memref<8x!tpu.dma_semaphore, #tpu.memory_space<semaphore_mem>> -> memref<1x!tpu.dma_semaphore, #tpu.memory_space<semaphore_mem>>
    %171 = tpu.memref_squeeze %170 : memref<1x!tpu.dma_semaphore, #tpu.memory_space<semaphore_mem>> -> memref<!tpu.dma_semaphore, #tpu.memory_space<semaphore_mem>>
    tpu.wait_dma2 semaphore(%171 : memref<!tpu.dma_semaphore, #tpu.memory_space<semaphore_mem>>) src(%168 : memref<1x128xf32, #tpu.memory_space<any>>) dst(%169 : memref<1x128xf32, #tpu.memory_space<vmem>>)
    %c7_i32_123 = arith.constant 7 : i32
    %c0_i32_124 = arith.constant 0 : i32
    %c0_i32_125 = arith.constant 0 : i32
    %172 = tpu.memref_slice %arg5[%c0_i32_124, %c0_i32_125] : memref<64x128xf32, #tpu.memory_space<any>> -> memref<1x128xf32, #tpu.memory_space<any>>
    %c7_i32_126 = arith.constant 7 : i32
    %c0_i32_127 = arith.constant 0 : i32
    %173 = tpu.memref_slice %arg15[%c7_i32_126, %c0_i32_127] : memref<8x128xf32, #tpu.memory_space<vmem>> -> memref<1x128xf32, #tpu.memory_space<vmem>>
    %174 = tpu.memref_slice %arg17[%c7_i32_123] : memref<8x!tpu.dma_semaphore, #tpu.memory_space<semaphore_mem>> -> memref<1x!tpu.dma_semaphore, #tpu.memory_space<semaphore_mem>>
    %175 = tpu.memref_squeeze %174 : memref<1x!tpu.dma_semaphore, #tpu.memory_space<semaphore_mem>> -> memref<!tpu.dma_semaphore, #tpu.memory_space<semaphore_mem>>
    tpu.wait_dma2 semaphore(%175 : memref<!tpu.dma_semaphore, #tpu.memory_space<semaphore_mem>>) src(%172 : memref<1x128xf32, #tpu.memory_space<any>>) dst(%173 : memref<1x128xf32, #tpu.memory_space<vmem>>)
    %c0_128 = arith.constant 0 : index
    %c0_129 = arith.constant 0 : index
    %176 = vector.load %arg15[%c0_128, %c0_129] : memref<8x128xf32, #tpu.memory_space<vmem>>, vector<8x128xf32>
    %c0_130 = arith.constant 0 : index
    %c0_131 = arith.constant 0 : index
    %177 = vector.load %arg7[%c0_130, %c0_131] : memref<128x128xf32, #tpu.memory_space<vmem>>, vector<128x128xf32>
    %cst = arith.constant dense<0.000000e+00> : vector<8x128xf32>
    %178 = tpu.matmul %176, %177, %cst {dimension_numbers = #tpu.dot_dimension_numbers<[1], [0], [0], [1], [0, 0, 1, 1], [], []>} : vector<8x128xf32>, vector<128x128xf32>, vector<8x128xf32> -> vector<8x128xf32>
    %c0_132 = arith.constant 0 : index
    %c0_133 = arith.constant 0 : index
    %179 = vector.load %arg8[%c0_132, %c0_133] : memref<1x128xf32, #tpu.memory_space<vmem>>, vector<1x128xf32>
    %180 = vector.broadcast %179 : vector<1x128xf32> to vector<8x128xf32>
    %181 = arith.addf %178, %180 : vector<8x128xf32>
    %182 = math.tanh %181 : vector<8x128xf32>
    %183 = arith.index_cast %arg0 : i32 to index
    %184 = memref.load %arg3[%183] : memref<4xi32, #tpu.memory_space<smem>>
    %185 = tpu.iota {dimensions = array<i32: 0>} : vector<8x128xi32>
    %186 = vector.broadcast %184 : i32 to vector<8x128xi32>
    %187 = arith.cmpi slt, %185, %186 : vector<8x128xi32>
    %188 = arith.extui %187 : vector<8x128xi1> to vector<8x128xi32>
    %189 = arith.sitofp %188 : vector<8x128xi32> to vector<8x128xf32>
    %c8_i32_134 = arith.constant 8 : i32
    %190 = arith.minsi %184, %c8_i32_134 : i32
    %191 = arith.sitofp %190 : i32 to f32
    %192 = arith.mulf %182, %189 : vector<8x128xf32>
    %cst_135 = arith.constant dense<0.000000e+00> : vector<128xf32>
    %193 = vector.multi_reduction <add>, %192, %cst_135 [0] : vector<8x128xf32> to vector<128xf32>
    %194 = vector.shape_cast %193 : vector<128xf32> to vector<1x128xf32>
    %cst_136 = arith.constant 1.000000e+00 : f32
    %195 = arith.maximumf %191, %cst_136 : f32
    %cst_137 = arith.constant 1.000000e+00 : f32
    %196 = arith.divf %cst_137, %195 : f32
    %197 = vector.broadcast %196 : f32 to vector<1x128xf32>
    %198 = arith.mulf %194, %197 : vector<1x128xf32>
    %c0_138 = arith.constant 0 : index
    %c0_139 = arith.constant 0 : index
    %199 = vector.load %arg10[%c0_138, %c0_139] : memref<128x128xf32, #tpu.memory_space<vmem>>, vector<128x128xf32>
    %cst_140 = arith.constant dense<0.000000e+00> : vector<1x128xf32>
    %200 = tpu.matmul %198, %199, %cst_140 {dimension_numbers = #tpu.dot_dimension_numbers<[1], [0], [0], [1], [0, 0, 1, 1], [], []>} : vector<1x128xf32>, vector<128x128xf32>, vector<1x128xf32> -> vector<1x128xf32>
    %c0_i32_141 = arith.constant 0 : i32
    %c0_i32_142 = arith.constant 0 : i32
    %c0_i32_143 = arith.constant 0 : i32
    %201 = tpu.memref_slice %arg6[%c0_i32_142, %c0_i32_143] : memref<64x128xf32, #tpu.memory_space<any>> -> memref<1x128xf32, #tpu.memory_space<any>>
    %c0_i32_144 = arith.constant 0 : i32
    %c0_i32_145 = arith.constant 0 : i32
    %202 = tpu.memref_slice %arg16[%c0_i32_144, %c0_i32_145] : memref<16x128xf32, #tpu.memory_space<vmem>> -> memref<1x128xf32, #tpu.memory_space<vmem>>
    %203 = tpu.memref_slice %arg18[%c0_i32_141] : memref<16x!tpu.dma_semaphore, #tpu.memory_space<semaphore_mem>> -> memref<1x!tpu.dma_semaphore, #tpu.memory_space<semaphore_mem>>
    %204 = tpu.memref_squeeze %203 : memref<1x!tpu.dma_semaphore, #tpu.memory_space<semaphore_mem>> -> memref<!tpu.dma_semaphore, #tpu.memory_space<semaphore_mem>>
    tpu.wait_dma2 semaphore(%204 : memref<!tpu.dma_semaphore, #tpu.memory_space<semaphore_mem>>) src(%201 : memref<1x128xf32, #tpu.memory_space<any>>) dst(%202 : memref<1x128xf32, #tpu.memory_space<vmem>>)
    %c1_i32_146 = arith.constant 1 : i32
    %c0_i32_147 = arith.constant 0 : i32
    %c0_i32_148 = arith.constant 0 : i32
    %205 = tpu.memref_slice %arg6[%c0_i32_147, %c0_i32_148] : memref<64x128xf32, #tpu.memory_space<any>> -> memref<1x128xf32, #tpu.memory_space<any>>
    %c1_i32_149 = arith.constant 1 : i32
    %c0_i32_150 = arith.constant 0 : i32
    %206 = tpu.memref_slice %arg16[%c1_i32_149, %c0_i32_150] : memref<16x128xf32, #tpu.memory_space<vmem>> -> memref<1x128xf32, #tpu.memory_space<vmem>>
    %207 = tpu.memref_slice %arg18[%c1_i32_146] : memref<16x!tpu.dma_semaphore, #tpu.memory_space<semaphore_mem>> -> memref<1x!tpu.dma_semaphore, #tpu.memory_space<semaphore_mem>>
    %208 = tpu.memref_squeeze %207 : memref<1x!tpu.dma_semaphore, #tpu.memory_space<semaphore_mem>> -> memref<!tpu.dma_semaphore, #tpu.memory_space<semaphore_mem>>
    tpu.wait_dma2 semaphore(%208 : memref<!tpu.dma_semaphore, #tpu.memory_space<semaphore_mem>>) src(%205 : memref<1x128xf32, #tpu.memory_space<any>>) dst(%206 : memref<1x128xf32, #tpu.memory_space<vmem>>)
    %c2_i32_151 = arith.constant 2 : i32
    %c0_i32_152 = arith.constant 0 : i32
    %c0_i32_153 = arith.constant 0 : i32
    %209 = tpu.memref_slice %arg6[%c0_i32_152, %c0_i32_153] : memref<64x128xf32, #tpu.memory_space<any>> -> memref<1x128xf32, #tpu.memory_space<any>>
    %c2_i32_154 = arith.constant 2 : i32
    %c0_i32_155 = arith.constant 0 : i32
    %210 = tpu.memref_slice %arg16[%c2_i32_154, %c0_i32_155] : memref<16x128xf32, #tpu.memory_space<vmem>> -> memref<1x128xf32, #tpu.memory_space<vmem>>
    %211 = tpu.memref_slice %arg18[%c2_i32_151] : memref<16x!tpu.dma_semaphore, #tpu.memory_space<semaphore_mem>> -> memref<1x!tpu.dma_semaphore, #tpu.memory_space<semaphore_mem>>
    %212 = tpu.memref_squeeze %211 : memref<1x!tpu.dma_semaphore, #tpu.memory_space<semaphore_mem>> -> memref<!tpu.dma_semaphore, #tpu.memory_space<semaphore_mem>>
    tpu.wait_dma2 semaphore(%212 : memref<!tpu.dma_semaphore, #tpu.memory_space<semaphore_mem>>) src(%209 : memref<1x128xf32, #tpu.memory_space<any>>) dst(%210 : memref<1x128xf32, #tpu.memory_space<vmem>>)
    %c3_i32_156 = arith.constant 3 : i32
    %c0_i32_157 = arith.constant 0 : i32
    %c0_i32_158 = arith.constant 0 : i32
    %213 = tpu.memref_slice %arg6[%c0_i32_157, %c0_i32_158] : memref<64x128xf32, #tpu.memory_space<any>> -> memref<1x128xf32, #tpu.memory_space<any>>
    %c3_i32_159 = arith.constant 3 : i32
    %c0_i32_160 = arith.constant 0 : i32
    %214 = tpu.memref_slice %arg16[%c3_i32_159, %c0_i32_160] : memref<16x128xf32, #tpu.memory_space<vmem>> -> memref<1x128xf32, #tpu.memory_space<vmem>>
    %215 = tpu.memref_slice %arg18[%c3_i32_156] : memref<16x!tpu.dma_semaphore, #tpu.memory_space<semaphore_mem>> -> memref<1x!tpu.dma_semaphore, #tpu.memory_space<semaphore_mem>>
    %216 = tpu.memref_squeeze %215 : memref<1x!tpu.dma_semaphore, #tpu.memory_space<semaphore_mem>> -> memref<!tpu.dma_semaphore, #tpu.memory_space<semaphore_mem>>
    tpu.wait_dma2 semaphore(%216 : memref<!tpu.dma_semaphore, #tpu.memory_space<semaphore_mem>>) src(%213 : memref<1x128xf32, #tpu.memory_space<any>>) dst(%214 : memref<1x128xf32, #tpu.memory_space<vmem>>)
    %c4_i32_161 = arith.constant 4 : i32
    %c0_i32_162 = arith.constant 0 : i32
    %c0_i32_163 = arith.constant 0 : i32
    %217 = tpu.memref_slice %arg6[%c0_i32_162, %c0_i32_163] : memref<64x128xf32, #tpu.memory_space<any>> -> memref<1x128xf32, #tpu.memory_space<any>>
    %c4_i32_164 = arith.constant 4 : i32
    %c0_i32_165 = arith.constant 0 : i32
    %218 = tpu.memref_slice %arg16[%c4_i32_164, %c0_i32_165] : memref<16x128xf32, #tpu.memory_space<vmem>> -> memref<1x128xf32, #tpu.memory_space<vmem>>
    %219 = tpu.memref_slice %arg18[%c4_i32_161] : memref<16x!tpu.dma_semaphore, #tpu.memory_space<semaphore_mem>> -> memref<1x!tpu.dma_semaphore, #tpu.memory_space<semaphore_mem>>
    %220 = tpu.memref_squeeze %219 : memref<1x!tpu.dma_semaphore, #tpu.memory_space<semaphore_mem>> -> memref<!tpu.dma_semaphore, #tpu.memory_space<semaphore_mem>>
    tpu.wait_dma2 semaphore(%220 : memref<!tpu.dma_semaphore, #tpu.memory_space<semaphore_mem>>) src(%217 : memref<1x128xf32, #tpu.memory_space<any>>) dst(%218 : memref<1x128xf32, #tpu.memory_space<vmem>>)
    %c5_i32_166 = arith.constant 5 : i32
    %c0_i32_167 = arith.constant 0 : i32
    %c0_i32_168 = arith.constant 0 : i32
    %221 = tpu.memref_slice %arg6[%c0_i32_167, %c0_i32_168] : memref<64x128xf32, #tpu.memory_space<any>> -> memref<1x128xf32, #tpu.memory_space<any>>
    %c5_i32_169 = arith.constant 5 : i32
    %c0_i32_170 = arith.constant 0 : i32
    %222 = tpu.memref_slice %arg16[%c5_i32_169, %c0_i32_170] : memref<16x128xf32, #tpu.memory_space<vmem>> -> memref<1x128xf32, #tpu.memory_space<vmem>>
    %223 = tpu.memref_slice %arg18[%c5_i32_166] : memref<16x!tpu.dma_semaphore, #tpu.memory_space<semaphore_mem>> -> memref<1x!tpu.dma_semaphore, #tpu.memory_space<semaphore_mem>>
    %224 = tpu.memref_squeeze %223 : memref<1x!tpu.dma_semaphore, #tpu.memory_space<semaphore_mem>> -> memref<!tpu.dma_semaphore, #tpu.memory_space<semaphore_mem>>
    tpu.wait_dma2 semaphore(%224 : memref<!tpu.dma_semaphore, #tpu.memory_space<semaphore_mem>>) src(%221 : memref<1x128xf32, #tpu.memory_space<any>>) dst(%222 : memref<1x128xf32, #tpu.memory_space<vmem>>)
    %c6_i32_171 = arith.constant 6 : i32
    %c0_i32_172 = arith.constant 0 : i32
    %c0_i32_173 = arith.constant 0 : i32
    %225 = tpu.memref_slice %arg6[%c0_i32_172, %c0_i32_173] : memref<64x128xf32, #tpu.memory_space<any>> -> memref<1x128xf32, #tpu.memory_space<any>>
    %c6_i32_174 = arith.constant 6 : i32
    %c0_i32_175 = arith.constant 0 : i32
    %226 = tpu.memref_slice %arg16[%c6_i32_174, %c0_i32_175] : memref<16x128xf32, #tpu.memory_space<vmem>> -> memref<1x128xf32, #tpu.memory_space<vmem>>
    %227 = tpu.memref_slice %arg18[%c6_i32_171] : memref<16x!tpu.dma_semaphore, #tpu.memory_space<semaphore_mem>> -> memref<1x!tpu.dma_semaphore, #tpu.memory_space<semaphore_mem>>
    %228 = tpu.memref_squeeze %227 : memref<1x!tpu.dma_semaphore, #tpu.memory_space<semaphore_mem>> -> memref<!tpu.dma_semaphore, #tpu.memory_space<semaphore_mem>>
    tpu.wait_dma2 semaphore(%228 : memref<!tpu.dma_semaphore, #tpu.memory_space<semaphore_mem>>) src(%225 : memref<1x128xf32, #tpu.memory_space<any>>) dst(%226 : memref<1x128xf32, #tpu.memory_space<vmem>>)
    %c7_i32_176 = arith.constant 7 : i32
    %c0_i32_177 = arith.constant 0 : i32
    %c0_i32_178 = arith.constant 0 : i32
    %229 = tpu.memref_slice %arg6[%c0_i32_177, %c0_i32_178] : memref<64x128xf32, #tpu.memory_space<any>> -> memref<1x128xf32, #tpu.memory_space<any>>
    %c7_i32_179 = arith.constant 7 : i32
    %c0_i32_180 = arith.constant 0 : i32
    %230 = tpu.memref_slice %arg16[%c7_i32_179, %c0_i32_180] : memref<16x128xf32, #tpu.memory_space<vmem>> -> memref<1x128xf32, #tpu.memory_space<vmem>>
    %231 = tpu.memref_slice %arg18[%c7_i32_176] : memref<16x!tpu.dma_semaphore, #tpu.memory_space<semaphore_mem>> -> memref<1x!tpu.dma_semaphore, #tpu.memory_space<semaphore_mem>>
    %232 = tpu.memref_squeeze %231 : memref<1x!tpu.dma_semaphore, #tpu.memory_space<semaphore_mem>> -> memref<!tpu.dma_semaphore, #tpu.memory_space<semaphore_mem>>
    tpu.wait_dma2 semaphore(%232 : memref<!tpu.dma_semaphore, #tpu.memory_space<semaphore_mem>>) src(%229 : memref<1x128xf32, #tpu.memory_space<any>>) dst(%230 : memref<1x128xf32, #tpu.memory_space<vmem>>)
    %c8_i32_181 = arith.constant 8 : i32
    %c0_i32_182 = arith.constant 0 : i32
    %c0_i32_183 = arith.constant 0 : i32
    %233 = tpu.memref_slice %arg6[%c0_i32_182, %c0_i32_183] : memref<64x128xf32, #tpu.memory_space<any>> -> memref<1x128xf32, #tpu.memory_space<any>>
    %c8_i32_184 = arith.constant 8 : i32
    %c0_i32_185 = arith.constant 0 : i32
    %234 = tpu.memref_slice %arg16[%c8_i32_184, %c0_i32_185] : memref<16x128xf32, #tpu.memory_space<vmem>> -> memref<1x128xf32, #tpu.memory_space<vmem>>
    %235 = tpu.memref_slice %arg18[%c8_i32_181] : memref<16x!tpu.dma_semaphore, #tpu.memory_space<semaphore_mem>> -> memref<1x!tpu.dma_semaphore, #tpu.memory_space<semaphore_mem>>
    %236 = tpu.memref_squeeze %235 : memref<1x!tpu.dma_semaphore, #tpu.memory_space<semaphore_mem>> -> memref<!tpu.dma_semaphore, #tpu.memory_space<semaphore_mem>>
    tpu.wait_dma2 semaphore(%236 : memref<!tpu.dma_semaphore, #tpu.memory_space<semaphore_mem>>) src(%233 : memref<1x128xf32, #tpu.memory_space<any>>) dst(%234 : memref<1x128xf32, #tpu.memory_space<vmem>>)
    %c9_i32_186 = arith.constant 9 : i32
    %c0_i32_187 = arith.constant 0 : i32
    %c0_i32_188 = arith.constant 0 : i32
    %237 = tpu.memref_slice %arg6[%c0_i32_187, %c0_i32_188] : memref<64x128xf32, #tpu.memory_space<any>> -> memref<1x128xf32, #tpu.memory_space<any>>
    %c9_i32_189 = arith.constant 9 : i32
    %c0_i32_190 = arith.constant 0 : i32
    %238 = tpu.memref_slice %arg16[%c9_i32_189, %c0_i32_190] : memref<16x128xf32, #tpu.memory_space<vmem>> -> memref<1x128xf32, #tpu.memory_space<vmem>>
    %239 = tpu.memref_slice %arg18[%c9_i32_186] : memref<16x!tpu.dma_semaphore, #tpu.memory_space<semaphore_mem>> -> memref<1x!tpu.dma_semaphore, #tpu.memory_space<semaphore_mem>>
    %240 = tpu.memref_squeeze %239 : memref<1x!tpu.dma_semaphore, #tpu.memory_space<semaphore_mem>> -> memref<!tpu.dma_semaphore, #tpu.memory_space<semaphore_mem>>
    tpu.wait_dma2 semaphore(%240 : memref<!tpu.dma_semaphore, #tpu.memory_space<semaphore_mem>>) src(%237 : memref<1x128xf32, #tpu.memory_space<any>>) dst(%238 : memref<1x128xf32, #tpu.memory_space<vmem>>)
    %c10_i32_191 = arith.constant 10 : i32
    %c0_i32_192 = arith.constant 0 : i32
    %c0_i32_193 = arith.constant 0 : i32
    %241 = tpu.memref_slice %arg6[%c0_i32_192, %c0_i32_193] : memref<64x128xf32, #tpu.memory_space<any>> -> memref<1x128xf32, #tpu.memory_space<any>>
    %c10_i32_194 = arith.constant 10 : i32
    %c0_i32_195 = arith.constant 0 : i32
    %242 = tpu.memref_slice %arg16[%c10_i32_194, %c0_i32_195] : memref<16x128xf32, #tpu.memory_space<vmem>> -> memref<1x128xf32, #tpu.memory_space<vmem>>
    %243 = tpu.memref_slice %arg18[%c10_i32_191] : memref<16x!tpu.dma_semaphore, #tpu.memory_space<semaphore_mem>> -> memref<1x!tpu.dma_semaphore, #tpu.memory_space<semaphore_mem>>
    %244 = tpu.memref_squeeze %243 : memref<1x!tpu.dma_semaphore, #tpu.memory_space<semaphore_mem>> -> memref<!tpu.dma_semaphore, #tpu.memory_space<semaphore_mem>>
    tpu.wait_dma2 semaphore(%244 : memref<!tpu.dma_semaphore, #tpu.memory_space<semaphore_mem>>) src(%241 : memref<1x128xf32, #tpu.memory_space<any>>) dst(%242 : memref<1x128xf32, #tpu.memory_space<vmem>>)
    %c11_i32_196 = arith.constant 11 : i32
    %c0_i32_197 = arith.constant 0 : i32
    %c0_i32_198 = arith.constant 0 : i32
    %245 = tpu.memref_slice %arg6[%c0_i32_197, %c0_i32_198] : memref<64x128xf32, #tpu.memory_space<any>> -> memref<1x128xf32, #tpu.memory_space<any>>
    %c11_i32_199 = arith.constant 11 : i32
    %c0_i32_200 = arith.constant 0 : i32
    %246 = tpu.memref_slice %arg16[%c11_i32_199, %c0_i32_200] : memref<16x128xf32, #tpu.memory_space<vmem>> -> memref<1x128xf32, #tpu.memory_space<vmem>>
    %247 = tpu.memref_slice %arg18[%c11_i32_196] : memref<16x!tpu.dma_semaphore, #tpu.memory_space<semaphore_mem>> -> memref<1x!tpu.dma_semaphore, #tpu.memory_space<semaphore_mem>>
    %248 = tpu.memref_squeeze %247 : memref<1x!tpu.dma_semaphore, #tpu.memory_space<semaphore_mem>> -> memref<!tpu.dma_semaphore, #tpu.memory_space<semaphore_mem>>
    tpu.wait_dma2 semaphore(%248 : memref<!tpu.dma_semaphore, #tpu.memory_space<semaphore_mem>>) src(%245 : memref<1x128xf32, #tpu.memory_space<any>>) dst(%246 : memref<1x128xf32, #tpu.memory_space<vmem>>)
    %c12_i32_201 = arith.constant 12 : i32
    %c0_i32_202 = arith.constant 0 : i32
    %c0_i32_203 = arith.constant 0 : i32
    %249 = tpu.memref_slice %arg6[%c0_i32_202, %c0_i32_203] : memref<64x128xf32, #tpu.memory_space<any>> -> memref<1x128xf32, #tpu.memory_space<any>>
    %c12_i32_204 = arith.constant 12 : i32
    %c0_i32_205 = arith.constant 0 : i32
    %250 = tpu.memref_slice %arg16[%c12_i32_204, %c0_i32_205] : memref<16x128xf32, #tpu.memory_space<vmem>> -> memref<1x128xf32, #tpu.memory_space<vmem>>
    %251 = tpu.memref_slice %arg18[%c12_i32_201] : memref<16x!tpu.dma_semaphore, #tpu.memory_space<semaphore_mem>> -> memref<1x!tpu.dma_semaphore, #tpu.memory_space<semaphore_mem>>
    %252 = tpu.memref_squeeze %251 : memref<1x!tpu.dma_semaphore, #tpu.memory_space<semaphore_mem>> -> memref<!tpu.dma_semaphore, #tpu.memory_space<semaphore_mem>>
    tpu.wait_dma2 semaphore(%252 : memref<!tpu.dma_semaphore, #tpu.memory_space<semaphore_mem>>) src(%249 : memref<1x128xf32, #tpu.memory_space<any>>) dst(%250 : memref<1x128xf32, #tpu.memory_space<vmem>>)
    %c13_i32_206 = arith.constant 13 : i32
    %c0_i32_207 = arith.constant 0 : i32
    %c0_i32_208 = arith.constant 0 : i32
    %253 = tpu.memref_slice %arg6[%c0_i32_207, %c0_i32_208] : memref<64x128xf32, #tpu.memory_space<any>> -> memref<1x128xf32, #tpu.memory_space<any>>
    %c13_i32_209 = arith.constant 13 : i32
    %c0_i32_210 = arith.constant 0 : i32
    %254 = tpu.memref_slice %arg16[%c13_i32_209, %c0_i32_210] : memref<16x128xf32, #tpu.memory_space<vmem>> -> memref<1x128xf32, #tpu.memory_space<vmem>>
    %255 = tpu.memref_slice %arg18[%c13_i32_206] : memref<16x!tpu.dma_semaphore, #tpu.memory_space<semaphore_mem>> -> memref<1x!tpu.dma_semaphore, #tpu.memory_space<semaphore_mem>>
    %256 = tpu.memref_squeeze %255 : memref<1x!tpu.dma_semaphore, #tpu.memory_space<semaphore_mem>> -> memref<!tpu.dma_semaphore, #tpu.memory_space<semaphore_mem>>
    tpu.wait_dma2 semaphore(%256 : memref<!tpu.dma_semaphore, #tpu.memory_space<semaphore_mem>>) src(%253 : memref<1x128xf32, #tpu.memory_space<any>>) dst(%254 : memref<1x128xf32, #tpu.memory_space<vmem>>)
    %c14_i32_211 = arith.constant 14 : i32
    %c0_i32_212 = arith.constant 0 : i32
    %c0_i32_213 = arith.constant 0 : i32
    %257 = tpu.memref_slice %arg6[%c0_i32_212, %c0_i32_213] : memref<64x128xf32, #tpu.memory_space<any>> -> memref<1x128xf32, #tpu.memory_space<any>>
    %c14_i32_214 = arith.constant 14 : i32
    %c0_i32_215 = arith.constant 0 : i32
    %258 = tpu.memref_slice %arg16[%c14_i32_214, %c0_i32_215] : memref<16x128xf32, #tpu.memory_space<vmem>> -> memref<1x128xf32, #tpu.memory_space<vmem>>
    %259 = tpu.memref_slice %arg18[%c14_i32_211] : memref<16x!tpu.dma_semaphore, #tpu.memory_space<semaphore_mem>> -> memref<1x!tpu.dma_semaphore, #tpu.memory_space<semaphore_mem>>
    %260 = tpu.memref_squeeze %259 : memref<1x!tpu.dma_semaphore, #tpu.memory_space<semaphore_mem>> -> memref<!tpu.dma_semaphore, #tpu.memory_space<semaphore_mem>>
    tpu.wait_dma2 semaphore(%260 : memref<!tpu.dma_semaphore, #tpu.memory_space<semaphore_mem>>) src(%257 : memref<1x128xf32, #tpu.memory_space<any>>) dst(%258 : memref<1x128xf32, #tpu.memory_space<vmem>>)
    %c15_i32_216 = arith.constant 15 : i32
    %c0_i32_217 = arith.constant 0 : i32
    %c0_i32_218 = arith.constant 0 : i32
    %261 = tpu.memref_slice %arg6[%c0_i32_217, %c0_i32_218] : memref<64x128xf32, #tpu.memory_space<any>> -> memref<1x128xf32, #tpu.memory_space<any>>
    %c15_i32_219 = arith.constant 15 : i32
    %c0_i32_220 = arith.constant 0 : i32
    %262 = tpu.memref_slice %arg16[%c15_i32_219, %c0_i32_220] : memref<16x128xf32, #tpu.memory_space<vmem>> -> memref<1x128xf32, #tpu.memory_space<vmem>>
    %263 = tpu.memref_slice %arg18[%c15_i32_216] : memref<16x!tpu.dma_semaphore, #tpu.memory_space<semaphore_mem>> -> memref<1x!tpu.dma_semaphore, #tpu.memory_space<semaphore_mem>>
    %264 = tpu.memref_squeeze %263 : memref<1x!tpu.dma_semaphore, #tpu.memory_space<semaphore_mem>> -> memref<!tpu.dma_semaphore, #tpu.memory_space<semaphore_mem>>
    tpu.wait_dma2 semaphore(%264 : memref<!tpu.dma_semaphore, #tpu.memory_space<semaphore_mem>>) src(%261 : memref<1x128xf32, #tpu.memory_space<any>>) dst(%262 : memref<1x128xf32, #tpu.memory_space<vmem>>)
    %c0_221 = arith.constant 0 : index
    %c0_222 = arith.constant 0 : index
    %265 = vector.load %arg16[%c0_221, %c0_222] : memref<16x128xf32, #tpu.memory_space<vmem>>, vector<16x128xf32>
    %c0_223 = arith.constant 0 : index
    %c0_224 = arith.constant 0 : index
    %266 = vector.load %arg9[%c0_223, %c0_224] : memref<128x128xf32, #tpu.memory_space<vmem>>, vector<128x128xf32>
    %cst_225 = arith.constant dense<0.000000e+00> : vector<16x128xf32>
    %267 = tpu.matmul %265, %266, %cst_225 {dimension_numbers = #tpu.dot_dimension_numbers<[1], [0], [0], [1], [0, 0, 1, 1], [], []>} : vector<16x128xf32>, vector<128x128xf32>, vector<16x128xf32> -> vector<16x128xf32>
    %268 = vector.broadcast %200 : vector<1x128xf32> to vector<16x128xf32>
    %269 = arith.addf %267, %268 : vector<16x128xf32>
    %c0_226 = arith.constant 0 : index
    %c0_227 = arith.constant 0 : index
    %270 = vector.load %arg11[%c0_226, %c0_227] : memref<1x128xf32, #tpu.memory_space<vmem>>, vector<1x128xf32>
    %271 = vector.broadcast %270 : vector<1x128xf32> to vector<16x128xf32>
    %272 = arith.addf %269, %271 : vector<16x128xf32>
    %273 = math.tanh %272 : vector<16x128xf32>
    %274 = arith.index_cast %arg0 : i32 to index
    %275 = memref.load %arg4[%274] : memref<4xi32, #tpu.memory_space<smem>>
    %276 = tpu.iota {dimensions = array<i32: 0>} : vector<16x128xi32>
    %277 = vector.broadcast %275 : i32 to vector<16x128xi32>
    %278 = arith.cmpi slt, %276, %277 : vector<16x128xi32>
    %279 = arith.extui %278 : vector<16x128xi1> to vector<16x128xi32>
    %280 = arith.sitofp %279 : vector<16x128xi32> to vector<16x128xf32>
    %c16_i32 = arith.constant 16 : i32
    %281 = arith.minsi %275, %c16_i32 : i32
    %282 = arith.sitofp %281 : i32 to f32
    %283 = arith.mulf %273, %280 : vector<16x128xf32>
    %cst_228 = arith.constant dense<0.000000e+00> : vector<128xf32>
    %284 = vector.multi_reduction <add>, %283, %cst_228 [0] : vector<16x128xf32> to vector<128xf32>
    %285 = vector.shape_cast %284 : vector<128xf32> to vector<1x128xf32>
    %cst_229 = arith.constant 1.000000e+00 : f32
    %286 = arith.maximumf %282, %cst_229 : f32
    %cst_230 = arith.constant 1.000000e+00 : f32
    %287 = arith.divf %cst_230, %286 : f32
    %288 = vector.broadcast %287 : f32 to vector<1x128xf32>
    %289 = arith.mulf %285, %288 : vector<1x128xf32>
    %c0_231 = arith.constant 0 : index
    %c0_232 = arith.constant 0 : index
    %290 = vector.load %arg12[%c0_231, %c0_232] : memref<128x128xf32, #tpu.memory_space<vmem>>, vector<128x128xf32>
    %cst_233 = arith.constant dense<0.000000e+00> : vector<1x128xf32>
    %291 = tpu.matmul %289, %290, %cst_233 {dimension_numbers = #tpu.dot_dimension_numbers<[1], [0], [0], [1], [0, 0, 1, 1], [], []>} : vector<1x128xf32>, vector<128x128xf32>, vector<1x128xf32> -> vector<1x128xf32>
    %c0_234 = arith.constant 0 : index
    %c0_235 = arith.constant 0 : index
    %292 = vector.load %arg13[%c0_234, %c0_235] : memref<1x128xf32, #tpu.memory_space<vmem>>, vector<1x128xf32>
    %293 = arith.addf %291, %292 : vector<1x128xf32>
    %294 = math.tanh %293 : vector<1x128xf32>
    %295 = vector.shape_cast %294 : vector<1x128xf32> to vector<1x1x128xf32>
    %c0_236 = arith.constant 0 : index
    %c0_237 = arith.constant 0 : index
    %c0_238 = arith.constant 0 : index
    %296 = vector.load %arg14[%c0_236, %c0_237, %c0_238] : memref<1x1x128xf32, #tpu.memory_space<vmem>>, vector<1x1x128xf32>
    tpu.vector_store %arg14[%c0_236, %c0_237, %c0_238], %295 {strides = array<i32>} : memref<1x1x128xf32, #tpu.memory_space<vmem>>, vector<1x1x128xf32>,
    return
  }
  func.func @transform_2(%arg0: i32, %arg1: memref<4x8xi32, #tpu.memory_space<smem>>, %arg2: memref<4x16xi32, #tpu.memory_space<smem>>, %arg3: memref<4xi32, #tpu.memory_space<smem>>, %arg4: memref<4xi32, #tpu.memory_space<smem>>) -> (i32, i32) {
    %c0_i32 = arith.constant 0 : i32
    %c0_i32_0 = arith.constant 0 : i32
    %c0_i32_1 = arith.constant 0 : i32
    return %c0_i32, %c0_i32_0 : i32, i32
  }
  func.func @transform_3(%arg0: i32, %arg1: memref<4x8xi32, #tpu.memory_space<smem>>, %arg2: memref<4x16xi32, #tpu.memory_space<smem>>, %arg3: memref<4xi32, #tpu.memory_space<smem>>, %arg4: memref<4xi32, #tpu.memory_space<smem>>) -> (i32, i32) {
    %c0_i32 = arith.constant 0 : i32
    %c0_i32_0 = arith.constant 0 : i32
    %c0_i32_1 = arith.constant 0 : i32
    return %c0_i32, %c0_i32_0 : i32, i32
  }
  func.func @transform_4(%arg0: i32, %arg1: memref<4x8xi32, #tpu.memory_space<smem>>, %arg2: memref<4x16xi32, #tpu.memory_space<smem>>, %arg3: memref<4xi32, #tpu.memory_space<smem>>, %arg4: memref<4xi32, #tpu.memory_space<smem>>) -> (i32, i32) {
    %c0_i32 = arith.constant 0 : i32
    %c0_i32_0 = arith.constant 0 : i32
    %c0_i32_1 = arith.constant 0 : i32
    return %c0_i32, %c0_i32_0 : i32, i32
  }
  func.func @transform_5(%arg0: i32, %arg1: memref<4x8xi32, #tpu.memory_space<smem>>, %arg2: memref<4x16xi32, #tpu.memory_space<smem>>, %arg3: memref<4xi32, #tpu.memory_space<smem>>, %arg4: memref<4xi32, #tpu.memory_space<smem>>) -> (i32, i32) {
    %c0_i32 = arith.constant 0 : i32
    %c0_i32_0 = arith.constant 0 : i32
    %c0_i32_1 = arith.constant 0 : i32
    return %c0_i32, %c0_i32_0 : i32, i32
  }
  func.func @transform_6(%arg0: i32, %arg1: memref<4x8xi32, #tpu.memory_space<smem>>, %arg2: memref<4x16xi32, #tpu.memory_space<smem>>, %arg3: memref<4xi32, #tpu.memory_space<smem>>, %arg4: memref<4xi32, #tpu.memory_space<smem>>) -> (i32, i32) {
    %c0_i32 = arith.constant 0 : i32
    %c0_i32_0 = arith.constant 0 : i32
    %c0_i32_1 = arith.constant 0 : i32
    return %c0_i32, %c0_i32_0 : i32, i32
  }
  func.func @transform_7(%arg0: i32, %arg1: memref<4x8xi32, #tpu.memory_space<smem>>, %arg2: memref<4x16xi32, #tpu.memory_space<smem>>, %arg3: memref<4xi32, #tpu.memory_space<smem>>, %arg4: memref<4xi32, #tpu.memory_space<smem>>) -> (i32, i32) {
    %c0_i32 = arith.constant 0 : i32
    %c0_i32_0 = arith.constant 0 : i32
    %c0_i32_1 = arith.constant 0 : i32
    return %c0_i32, %c0_i32_0 : i32, i32
  }
  func.func @transform_8(%arg0: i32, %arg1: memref<4x8xi32, #tpu.memory_space<smem>>, %arg2: memref<4x16xi32, #tpu.memory_space<smem>>, %arg3: memref<4xi32, #tpu.memory_space<smem>>, %arg4: memref<4xi32, #tpu.memory_space<smem>>) -> (i32, i32) {
    %c0_i32 = arith.constant 0 : i32
    %c0_i32_0 = arith.constant 0 : i32
    %c0_i32_1 = arith.constant 0 : i32
    return %c0_i32, %c0_i32_0 : i32, i32
  }
  func.func @transform_9(%arg0: i32, %arg1: memref<4x8xi32, #tpu.memory_space<smem>>, %arg2: memref<4x16xi32, #tpu.memory_space<smem>>, %arg3: memref<4xi32, #tpu.memory_space<smem>>, %arg4: memref<4xi32, #tpu.memory_space<smem>>) -> (i32, i32, i32) {
    %c0_i32 = arith.constant 0 : i32
    %c0_i32_0 = arith.constant 0 : i32
    %c0_i32_1 = arith.constant 0 : i32
    return %arg0, %c0_i32, %c0_i32_0 : i32, i32, i32
  }
}

</mosaic_0001>

<bundles_post_ra>
// kernel: tpu_custom_call.1
= control target key start
LH: loop header
LB: loop body
LE: loop exit
PB: predicated region body
PF: predicated region fallthrough
CT: control target
= control target key end

     0   :  { %s3739_s0 = inlined_call_operand.hbm [shape: s32[4,8], index: 0, kind: input, shape index: {}]   ;;  %s3740_s4 = inlined_call_operand.hbm [shape: f32[64,128], index: 4, kind: input, shape index: {}]   ;;  %s3741_s5 = inlined_call_operand.hbm [shape: f32[64,128], index: 5, kind: input, shape index: {}]   ;;  %s3742_s6 = inlined_call_operand.hbm [shape: f32[128,128], index: 6, kind: input, shape index: {}]   ;;  %s3743_s7 = inlined_call_operand.vmem [shape: f32[1,128], index: 7, kind: input, shape index: {}]   ;;  %s3744_s8 = inlined_call_operand.hbm [shape: f32[128,128], index: 8, kind: input, shape index: {}]   ;;  %s3745_s9 = inlined_call_operand.hbm [shape: f32[128,128], index: 9, kind: input, shape index: {}]   ;;  %s3746_s10 = inlined_call_operand.vmem [shape: f32[1,128], index: 10, kind: input, shape index: {}]   ;;  %s3747_s11 = inlined_call_operand.hbm [shape: f32[128,128], index: 11, kind: input, shape index: {}]   ;;  %s3748_s12 = inlined_call_operand.vmem [shape: f32[1,128], index: 12, kind: input, shape index: {}]   ;;  %s3749_s13 = inlined_call_operand.hbm [shape: f32[4,1,128], index: 13, kind: output, shape index: {}]   ;;  %s3750_s1 = inlined_call_operand.hbm [shape: s32[4,16], index: 1, kind: input, shape index: {}]   ;;  %s3751_s2 = inlined_call_operand.vmem [shape: s32[4], index: 2, kind: input, shape index: {}]   ;;  %s3752_s3 = inlined_call_operand.vmem [shape: s32[4], index: 3, kind: input, shape index: {}]  }
   0x1   :  { %3772 = sst [smem:[#allocation106_spill]] %s3742_s6  ;;  %s2030_s27 = scalar_lea.hbm %s3739_s0, 64 }
   0x2   :  { %3773 = sst [smem:[#allocation107_spill]] %s3744_s8  ;;  %p2031_p0 = scmp.ne.s32.totalorder %s3739_s0, %s2030_s27 }
   0x3   :  { %3774 = sst [smem:[#allocation108_spill]] %s3745_s9  ;;  %p2034_p1 = scmp.lt.u32.totalorder %s2030_s27, %s3739_s0 }
   0x4   :  { %3775 = sst [smem:[#allocation109_spill]] %s3747_s11 }
   0x5   :  { %3776 = sst [smem:[#allocation110_spill]] %s3748_s12  ;;  %p2036_p2 = pnand %p2034_p1, %p2031_p0 }
   0x6   :  { %3777 = sst [smem:[#allocation111_spill]] %s3749_s13 }
   0x7   :  { %2039 = shalt.err (!%p2036_p2)  }
   0x8   :  { %s2888_s15 = smov [#allocation7]   ;;  %s2040_s20 = scalar_lea.hbm %s3750_s1, 64 }
   0x9   :  { %19 = dma.hbm_to_smem %s3739_s0, 64, %s2888_s15, [#allocation6] }
   0xa   :  { %p2041_p3 = scmp.ne.s32.totalorder %s3750_s1, %s2040_s20  ;;  %p2044_p4 = scmp.lt.u32.totalorder %s2040_s20, %s3750_s1 }
   0xc   :  { %p2046_p5 = pnand %p2044_p4, %p2041_p3 }
   0xe   :  { %2049 = shalt.err (!%p2046_p5)  }
   0xf   :  { %s2889_s25 = smov [#allocation8]   ;;  %s22_s29 = sshll.u32 %s3751_s2, 4  ;;  %s23_s29 = int_to_ptr.vmem [resolvable:$true] %s22_s29 }
  0x10   :  { %21 = dma.hbm_to_smem %s3750_s1, 64, %s2889_s25, [#allocation6] }
  0x11   :  { %s26_s15 = sshll.u32 %s3752_s3, 4  ;;  %s2050_s16 = scalar_lea.vmem %s23_s29, 16  ;;  %s27_s15 = int_to_ptr.vmem [resolvable:$true] %s26_s15 }
  0x12   :  { %p2051_p6 = scmp.ne.s32.totalorder %s23_s29, %s2050_s16  ;;  %p2055_p7 = scmp.lt.s32.totalorder %s23_s29, %s23_s29 }
  0x13   :  { %p2056_p8 = scmp.lt.s32.totalorder %s2050_s16, %s2050_s16 }
  0x15   :  { %p2057_p9 = por %p2056_p8, %p2055_p7 }
  0x17   :  { %p2058_p10 = pnand %p2057_p9, %p2051_p6 }
  0x19   :  { %2061 = shalt.err (!%p2058_p10)  }
  0x1a   :  { %s2890_s17 = smov [#allocation9]   ;;  %s2062_s1 = scalar_lea.vmem %s27_s15, 16 }
  0x1b   :  { %25 = dma.vmem_to_smem %s23_s29, 16, %s2890_s17, [#allocation6] }
  0x1c   :  { %p2063_p11 = scmp.ne.s32.totalorder %s27_s15, %s2062_s1  ;;  %p2067_p12 = scmp.lt.s32.totalorder %s27_s15, %s27_s15 }
  0x1d   :  { %p2068_p13 = scmp.lt.s32.totalorder %s2062_s1, %s2062_s1 }
  0x1f   :  { %p2069_p0 = por %p2068_p13, %p2067_p12 }
  0x21   :  { %p2070_p1 = pnand %p2069_p0, %p2063_p11 }
  0x23   :  { %2073 = shalt.err (!%p2070_p1)  }
  0x24   :  { %s2891_s2 = smov [#allocation10]  }
  0x25   :  { %29 = dma.vmem_to_smem %s27_s15, 16, %s2891_s2, [#allocation6] }
  0x26   :  { %2806 = dma.done.wait [#allocation6], 160 }
  0x27   :  { %2807 = vsyncadd [#allocation6], 4294967136 }
  0x28   :  { %31 = sfence }
  0x29   :  { %32 = vsyncpa [#allocation12], 0 }
  0x2a   :  { %33 = vsyncpa [#allocation15], 0 }
  0x2b   :  { %34 = vsyncpa [#allocation18], 0 }
  0x2c   :  { %35 = vsyncpa [#allocation13], 0 }
  0x2d   :  { %37 = vsyncpa [#allocation13 + $0x1], 0  ;;  %s3027_s3 = smov 0   ;;  %s3029_s18 = smov 0  }
  0x2e   :  { %s3031_s19 = smov 0   ;;  %s3033_s20 = smov 0  }
  0x2f LB: > { %3778 = sst [smem:[#allocation99_spill]] %s2874_s3  ;;  %s3048_s21 = sadd.s32 4294967295, %s2886_s20   ;;  %s2886_s20 = sphi %s3033_s20, %s3818_s20   ;;  %s2882_s19 = sphi %s3031_s19, %s3820_s19   ;;  %s2878_s18 = sphi %s3029_s18, %s3822_s18   ;;  %s2874_s3 = sphi %s3027_s3, %s3821_s3  }
  0x30   : > { %3779 = sst [smem:[#allocation100_spill]] %s2882_s19  ;;  %s1519_s22 = sadd.s32 4294967294, %s2886_s20  }
  0x31   : > { %3780 = sst [smem:[#allocation101_spill]] %s2886_s20  ;;  %s3052_s23 = sadd.s32 1, %s2886_s20  }
  0x32   : > { %3781 = sst [smem:[#allocation102_spill]] %s3052_s23  ;;  %s197_s24 = sadd.s32 1, %s2882_s19 }
  0x33   : > { %s194_s25 = ssub.s32 %s2886_s20, %s3052_s23  ;;  %p207_p2 = scmp.ne.s32.totalorder %s2882_s19, %s2878_s18 }
  0x34   : > { %p195_p3 = scmp.eq.s32.totalorder %s194_s25, 0  ;;  %p208_p4 = scmp.eq.s32.totalorder %s3048_s21, 3 }
  0x35   : > { %p213_p5 = scmp.ne.s32.totalorder %s2878_s18, %s2874_s3  ;;  %p214_p6 = scmp.eq.s32.totalorder %s1519_s22, 3 }
  0x36   : > { %s3063_s26 = scalar_select %p195_p3, %s2882_s19, %s197_s24  }
  0x37   : > { %p3065_p7 = por %p208_p4, %p207_p2  ;;  %p3069_p8 = por %p214_p6, %p213_p5 }
  0x38   : > { %3782 = sst [smem:[#allocation103_spill]] %s3063_s26  ;;  %p1520_p9 = scmp.ge.s32.totalorder %s2886_s20, 1 }
  0x39   : > { %s3783_s27 = scalar_select %p3065_p7, 1, 0 }
  0x3a   : > { %s3785_s0 = scalar_select %p3069_p8, 1, 0 }
  0x3b   : > { %3784 = sst [smem:[#allocation104_spill]] %s3783_s27  ;;  %p221_p10 = scmp.lt.s32.totalorder %s2886_s20, 5 }
  0x3c   : > { %3786 = sst [smem:[#allocation105_spill]] %s3785_s0  ;;  %p3753_p11 = scmp.eq.s32.totalorder %s3048_s21, 0 }
  0x3d   : > { %p3076_p12 = pnand %p1520_p9, %p221_p10  ;;  %s2892_s29 = smov [#allocation14]  }
  0x3e   : > { %s249_s30 = sshll.u32 %s2892_s29, 4  ;;  %s2893_s15 = smov [#allocation11]   ;;  %s3082_s30 = int_to_ptr.vmem [resolvable:$true] %s249_s30 }
  0x3f   : > { %s3787_s28 = scalar_select %p3076_p12, 1, 0 }
  0x40   : > { %p1922_p13 = pneg %p3076_p12  ;;  %s233_s16 = sshll.u32 %s2893_s15, 4  ;;  %s3090_s16 = int_to_ptr.vmem [resolvable:$true] %s233_s16 }
  0x41   : > { %s2894_s17 = smov [#allocation16]   ;;  %s3789_s8 = sld [smem:[#allocation107_spill]] }
  0x42   : > { %p3086_p0 = pnand %p3753_p11, %p1922_p13  ;;  %s3092_s1 = sshll.u32 %s2894_s17, 4  ;;  %s263_s1 = int_to_ptr.vmem [resolvable:$true] %s3092_s1 }
  0x44   : > { %p3102_p2 = pneg %p3086_p0 }
  0x47   : > { %s2074_s24 = scalar_lea.hbm %s3789_s8, 2048 }
  0x48   : > { %p2075_p1 = scmp.ne.s32.totalorder %s3789_s8, %s2074_s24  ;;  %p2081_p5 = scmp.lt.u32.totalorder %s2074_s24, %s3789_s8 }
  0x4a   : > { %p2077_p3 = pnand %p3102_p2, %p2075_p1 }
  0x4c   : > { %p2078_p4 = pneg %p2077_p3 }
  0x4e   : > { %p2083_p6 = pnand %p2081_p5, %p2078_p4 }
  0x50   : > { %2086 = shalt.err (!%p2083_p6)
}
  0x51   : > { %s2087_s2 = scalar_lea.vmem %s3082_s30, 2048  ;;  %p2095_p11 = scmp.lt.s32.totalorder %s3082_s30, %s3082_s30 }
  0x52   : > { %p2088_p9 = scmp.ne.s32.totalorder %s3082_s30, %s2087_s2  ;;  %p2096_p8 = scmp.lt.s32.totalorder %s2087_s2, %s2087_s2 }
  0x54   : > { %p2090_p10 = pnand %p2088_p9, %p3102_p2  ;;  %p2097_p1 = por %p2096_p8, %p2095_p11 }
  0x56   : > { %p2091_p13 = pneg %p2090_p10 }
  0x58   : > { %p2098_p3 = pnand %p2097_p1, %p2091_p13 }
  0x5a   : > { %2101 = shalt.err (!%p2098_p3)
}
  0x5b   : > { %s2895_s22 = smov 128   ;;  %s2896_s24 = smov 8  }
  0x5c   : > { %1928 = dma.hbm_to_vmem [thread:$0]  (!%p3086_p0), %s3789_s8, 2048, %s3082_s30, [#allocation15], %s2895_s22, %s2895_s22, %s2896_s24  }
  0x5d   : > { %s3791_s6 = sld [smem:[#allocation106_spill]] }
  0x63   : > { %s2102_s2 = scalar_lea.hbm %s3791_s6, 2048 }
  0x64   : > { %p2103_p8 = scmp.ne.s32.totalorder %s3791_s6, %s2102_s2  ;;  %p2109_p5 = scmp.lt.u32.totalorder %s2102_s2, %s3791_s6 }
  0x66   : > { %p2105_p11 = pnand %p2103_p8, %p3102_p2 }
  0x68   : > { %p2106_p4 = pneg %p2105_p11 }
  0x6a   : > { %p2111_p6 = pnand %p2109_p5, %p2106_p4 }
  0x6c   : > { %2114 = shalt.err (!%p2111_p6)
}
  0x6d   : > { %s2115_s30 = scalar_lea.vmem %s3090_s16, 2048  ;;  %p2123_p1 = scmp.lt.s32.totalorder %s3090_s16, %s3090_s16 }
  0x6e   : > { %p2116_p9 = scmp.ne.s32.totalorder %s3090_s16, %s2115_s30  ;;  %p2124_p3 = scmp.lt.s32.totalorder %s2115_s30, %s2115_s30 }
  0x70   : > { %p2118_p10 = pnand %p2116_p9, %p3102_p2  ;;  %p2125_p8 = por %p2124_p3, %p2123_p1 }
  0x72   : > { %p2119_p13 = pneg %p2118_p10 }
  0x74   : > { %p2126_p11 = pnand %p2125_p8, %p2119_p13 }
  0x76   : > { %2129 = shalt.err (!%p2126_p11)
}
  0x77   : > { %1925 = dma.hbm_to_vmem [thread:$0]  (!%p3086_p0), %s3791_s6, 2048, %s3090_s16, [#allocation12], %s2895_s22, %s2895_s22, %s2896_s24  }
  0x78   : > { %s3792_s9 = sld [smem:[#allocation108_spill]] }
  0x7e   : > { %s2130_s25 = scalar_lea.hbm %s3792_s9, 2048 }
  0x7f   : > { %p2131_p4 = scmp.ne.s32.totalorder %s3792_s9, %s2130_s25  ;;  %p2137_p9 = scmp.lt.u32.totalorder %s2130_s25, %s3792_s9 }
  0x81   : > { %p2133_p5 = pnand %p2131_p4, %p3102_p2 }
  0x83   : > { %p2134_p6 = pneg %p2133_p5 }
  0x85   : > { %p2139_p10 = pnand %p2137_p9, %p2134_p6 }
  0x87   : > { %2142 = shalt.err (!%p2139_p10)
}
  0x88   : > { %s2143_s30 = scalar_lea.vmem %s263_s1, 2048  ;;  %p2151_p8 = scmp.lt.s32.totalorder %s263_s1, %s263_s1 }
  0x89   : > { %p2144_p13 = scmp.ne.s32.totalorder %s263_s1, %s2143_s30  ;;  %p2152_p11 = scmp.lt.s32.totalorder %s2143_s30, %s2143_s30 }
  0x8b   : > { %p2146_p1 = pnand %p2144_p13, %p3102_p2  ;;  %p2153_p7 = por %p2152_p11, %p2151_p8 }
  0x8d   : > { %p2147_p3 = pneg %p2146_p1 }
  0x8f   : > { %p2154_p12 = pnand %p2153_p7, %p2147_p3 }
  0x91   : > { %2157 = shalt.err (!%p2154_p12)
}
  0x92   : > { %1931 = dma.hbm_to_vmem [thread:$0]  (!%p3086_p0), %s3792_s9, 2048, %s263_s1, [#allocation15], %s2895_s22, %s2895_s22, %s2896_s24  }
  0x93   : > { %s2897_s19 = smov [#allocation17]   ;;  %s3793_s11 = sld [smem:[#allocation109_spill]] }
  0x94   : > { %s278_s23 = sshll.u32 %s2897_s19, 4  ;;  %s279_s23 = int_to_ptr.vmem [resolvable:$true] %s278_s23 }
  0x99   : > { %s2158_s29 = scalar_lea.hbm %s3793_s11, 2048 }
  0x9a   : > { %p2159_p7 = scmp.ne.s32.totalorder %s3793_s11, %s2158_s29  ;;  %p2165_p5 = scmp.lt.u32.totalorder %s2158_s29, %s3793_s11 }
  0x9c   : > { %p2161_p12 = pnand %p2159_p7, %p3102_p2 }
  0x9e   : > { %p2162_p4 = pneg %p2161_p12 }
  0xa0   : > { %p2167_p6 = pnand %p2165_p5, %p2162_p4 }
  0xa2   : > { %2170 = shalt.err (!%p2167_p6)
}
  0xa3   : > { %s2171_s1 = scalar_lea.vmem %s279_s23, 2048  ;;  %p2179_p1 = scmp.lt.s32.totalorder %s279_s23, %s279_s23 }
  0xa4   : > { %p2172_p9 = scmp.ne.s32.totalorder %s279_s23, %s2171_s1  ;;  %p2180_p3 = scmp.lt.s32.totalorder %s2171_s1, %s2171_s1 }
  0xa6   : > { %p2174_p10 = pnand %p2172_p9, %p3102_p2  ;;  %p2181_p8 = por %p2180_p3, %p2179_p1 }
  0xa8   : > { %p2175_p13 = pneg %p2174_p10 }
  0xaa   : > { %p2182_p11 = pnand %p2181_p8, %p2175_p13 }
  0xac   : > { %2185 = shalt.err (!%p2182_p11)
}
  0xad   : > { %1934 = dma.hbm_to_vmem [thread:$0]  (!%p3086_p0), %s3793_s11, 2048, %s279_s23, [#allocation18], %s2895_s22, %s2895_s22, %s2896_s24  }
  0xae   : > { %p3794_p7 = scmp.ne.s32.totalorder %s3787_s28, 0 }
  0xaf   : > { %p3795_p2 = scmp.eq.s32.totalorder (!%p3794_p7), %s3048_s21, 0 }
  0xb0   : > { %297 = sbr.rel (%p3794_p7) target bundleno = 1784 (0x6f8), region = 48 }
  0xb7   : > { %2809 = dma.done.wait (%p3795_p2), [#allocation12], 2048   ;;  %p3796_p12 = pmov %p3795_p2 }
  0xb8   : > { %p3797_p4 = pmov %p3795_p2 }
  0xb9   : > { %2811 = vsyncadd (%p3796_p12), [#allocation12], 4294965248 }
  0xba   : > { %2813 = dma.done.wait (%p3797_p4), [#allocation15], 4096   ;;  %p3798_p5 = pmov %p3795_p2 }
  0xbb   : > { %p3799_p6 = pmov %p3795_p2 }
  0xbc   : > { %2815 = vsyncadd (%p3798_p5), [#allocation15], 4294963200 }
  0xbd   : > { %2817 = dma.done.wait (%p3799_p6), [#allocation18], 2048   ;;  %p3800_p0 = pmov %p3795_p2 }
  0xbe   : > { %s3210_s26 = sshll.u32 %s3048_s21, 7  ;;  %s2898_s14 = smov [#allocation3]  }
  0xbf   : > { %2819 = vsyncadd (%p3800_p0), [#allocation18], 4294965248  ;;  %s469_s28 = sld [smem:[#allocation8 + %s3210_s26]]  ;;  %s479_s22 = sshll.u32 %s2898_s14, 4  ;;  %s3213_s22 = int_to_ptr.vmem [resolvable:$true] %s479_s22 }
  0xc0   : > { %s3761_s24 = sadd.s32 1, %s3210_s26  ;;  %s2899_s23 = smov [#allocation3 + $0x1]  }
  0xc1   : > { %s3218_s19 = sld [smem:[#allocation8 + %s3761_s24]]  ;;  %s495_s0 = sshll.u32 %s2899_s23, 4  ;;  %s3221_s0 = int_to_ptr.vmem [resolvable:$true] %s495_s0 }
  0xc2   : > { %s3762_s25 = sadd.s32 2, %s3210_s26  ;;  %s3764_s15 = sadd.s32 3, %s3210_s26 }
  0xc3   : > { %s3225_s29 = sld [smem:[#allocation8 + %s3762_s25]]  ;;  %s2900_s2 = smov [#allocation3 + $0x2]  }
  0xc4   : > { %s511_s30 = sshll.u32 %s2900_s2, 4  ;;  %s3236_s6 = scalar_lea.hbm %s3741_s5, 1024  ;;  %s3231_s30 = int_to_ptr.vmem [resolvable:$true] %s511_s30 }
  0xc5   : > { %s1539_s17 = sshll.u32 %s469_s28, 4 }
  0xc6   : > { %s471_s3 = scalar_lea.hbm %s3741_s5, %s1539_s17 }
  0xc7   : > { %s2186_s14 = scalar_lea.hbm %s471_s3, 16  ;;  %p2189_p10 = scmp.lt.u32.totalorder %s471_s3, %s3741_s5 }
  0xc8   : > { %p2187_p9 = scmp.ne.s32.totalorder %s471_s3, %s2186_s14  ;;  %p2190_p13 = scmp.lt.u32.totalorder %s3236_s6, %s2186_s14 }
  0xc9   : > { %p2192_p3 = scmp.lt.u32.totalorder %s2186_s14, %s471_s3 }
  0xca   : > { %p2191_p1 = por %p2190_p13, %p2189_p10 }
  0xcc   : > { %p2193_p8 = por %p2192_p3, %p2191_p1 }
  0xce   : > { %p2194_p11 = pnand %p2193_p8, %p2187_p9 }
  0xd0   : > { %2197 = shalt.err (!%p2194_p11)  }
  0xd1   : > { %s2198_s28 = scalar_lea.vmem %s3213_s22, 16  ;;  %s3245_s24 = scalar_lea.vmem %s3213_s22, 256 }
  0xd2   : > { %p2199_p7 = scmp.ne.s32.totalorder %s3213_s22, %s2198_s28  ;;  %p2203_p2 = scmp.lt.s32.totalorder %s3213_s22, %s3213_s22 }
  0xd3   : > { %p2204_p12 = scmp.lt.s32.totalorder %s3245_s24, %s2198_s28 }
  0xd5   : > { %p2205_p4 = por %p2204_p12, %p2203_p2 }
  0xd7   : > { %p2206_p5 = pnand %p2205_p4, %p2199_p7 }
  0xd9   : > { %2209 = shalt.err (!%p2206_p5)  }
  0xda   : > { %482 = dma.hbm_to_vmem [thread:$0]  %s471_s3, 16, %s3213_s22, [#allocation5] }
  0xdb   : > { %s1540_s8 = sshll.u32 %s3218_s19, 4  ;;  %s3254_s25 = sld [smem:[#allocation8 + %s3764_s15]] }
  0xdc   : > { %s485_s1 = scalar_lea.hbm %s3741_s5, %s1540_s8  ;;  %s1541_s16 = sshll.u32 %s3225_s29, 4 }
  0xdd   : > { %s2210_s14 = scalar_lea.hbm %s485_s1, 16  ;;  %p2213_p0 = scmp.lt.u32.totalorder %s485_s1, %s3741_s5 }
  0xde   : > { %p2211_p6 = scmp.ne.s32.totalorder %s485_s1, %s2210_s14  ;;  %p2214_p9 = scmp.lt.u32.totalorder %s3236_s6, %s2210_s14 }
  0xdf   : > { %p2216_p13 = scmp.lt.u32.totalorder %s2210_s14, %s485_s1 }
  0xe0   : > { %p2215_p10 = por %p2214_p9, %p2213_p0 }
  0xe2   : > { %p2217_p1 = por %p2216_p13, %p2215_p10 }
  0xe4   : > { %p2218_p3 = pnand %p2217_p1, %p2211_p6 }
  0xe6   : > { %2221 = shalt.err (!%p2218_p3)  }
  0xe7   : > { %s2222_s19 = scalar_lea.vmem %s3221_s0, 16  ;;  %p2227_p11 = scmp.lt.s32.totalorder %s3221_s0, %s3213_s22 }
  0xe8   : > { %p2223_p8 = scmp.ne.s32.totalorder %s3221_s0, %s2222_s19  ;;  %p2228_p7 = scmp.lt.s32.totalorder %s3245_s24, %s2222_s19 }
  0xea   : > { %p2229_p2 = por %p2228_p7, %p2227_p11 }
  0xec   : > { %p2230_p12 = pnand %p2229_p2, %p2223_p8 }
  0xee   : > { %2233 = shalt.err (!%p2230_p12)  }
  0xef   : > { %498 = dma.hbm_to_vmem [thread:$0]  %s485_s1, 16, %s3221_s0, [#allocation5 + $0x1] }
  0xf0   : > { %s501_s8 = scalar_lea.hbm %s3741_s5, %s1541_s16 }
  0xf1   : > { %s2234_s17 = scalar_lea.hbm %s501_s8, 16  ;;  %p2237_p5 = scmp.lt.u32.totalorder %s501_s8, %s3741_s5 }
  0xf2   : > { %p2235_p4 = scmp.ne.s32.totalorder %s501_s8, %s2234_s17  ;;  %p2238_p6 = scmp.lt.u32.totalorder %s3236_s6, %s2234_s17 }
  0xf3   : > { %p2240_p9 = scmp.lt.u32.totalorder %s2234_s17, %s501_s8 }
  0xf4   : > { %p2239_p0 = por %p2238_p6, %p2237_p5 }
  0xf6   : > { %p2241_p10 = por %p2240_p9, %p2239_p0 }
  0xf8   : > { %p2242_p13 = pnand %p2241_p10, %p2235_p4 }
  0xfa   : > { %2245 = shalt.err (!%p2242_p13)  }
  0xfb   : > { %s2246_s0 = scalar_lea.vmem %s3231_s30, 16  ;;  %p2251_p3 = scmp.lt.s32.totalorder %s3231_s30, %s3213_s22 }
  0xfc   : > { %p2247_p1 = scmp.ne.s32.totalorder %s3231_s30, %s2246_s0  ;;  %p2252_p8 = scmp.lt.s32.totalorder %s3245_s24, %s2246_s0 }
  0xfe   : > { %p2253_p11 = por %p2252_p8, %p2251_p3 }
 0x100   : > { %p2254_p7 = pnand %p2253_p11, %p2247_p1 }
 0x102   : > { %2257 = shalt.err (!%p2254_p7)  }
 0x103   : > { %514 = dma.hbm_to_vmem [thread:$0]  %s501_s8, 16, %s3231_s30, [#allocation5 + $0x2] }
 0x104   : > { %s2901_s1 = smov [#allocation3 + $0x3]   ;;  %s3763_s23 = sadd.s32 4, %s3210_s26 }
 0x105   : > { %s527_s16 = sshll.u32 %s2901_s1, 4  ;;  %s1542_s28 = sshll.u32 %s3254_s25, 4  ;;  %s528_s16 = int_to_ptr.vmem [resolvable:$true] %s527_s16 }
 0x106   : > { %s517_s3 = scalar_lea.hbm %s3741_s5, %s1542_s28  ;;  %s3290_s17 = sld [smem:[#allocation8 + %s3763_s23]] }
 0x107   : > { %s2258_s2 = scalar_lea.hbm %s517_s3, 16  ;;  %p2261_p12 = scmp.lt.u32.totalorder %s517_s3, %s3741_s5 }
 0x108   : > { %p2259_p2 = scmp.ne.s32.totalorder %s517_s3, %s2258_s2  ;;  %p2262_p4 = scmp.lt.u32.totalorder %s3236_s6, %s2258_s2 }
 0x109   : > { %p2264_p6 = scmp.lt.u32.totalorder %s2258_s2, %s517_s3 }
 0x10a   : > { %p2263_p5 = por %p2262_p4, %p2261_p12 }
 0x10c   : > { %p2265_p0 = por %p2264_p6, %p2263_p5 }
 0x10e   : > { %p2266_p9 = pnand %p2265_p0, %p2259_p2 }
 0x110   : > { %2269 = shalt.err (!%p2266_p9)  }
 0x111   : > { %s2270_s30 = scalar_lea.vmem %s528_s16, 16  ;;  %p2275_p13 = scmp.lt.s32.totalorder %s528_s16, %s3213_s22 }
 0x112   : > { %p2271_p10 = scmp.ne.s32.totalorder %s528_s16, %s2270_s30  ;;  %p2276_p1 = scmp.lt.s32.totalorder %s3245_s24, %s2270_s30 }
 0x114   : > { %p2277_p3 = por %p2276_p1, %p2275_p13 }
 0x116   : > { %p2278_p8 = pnand %p2277_p3, %p2271_p10 }
 0x118   : > { %2281 = shalt.err (!%p2278_p8)  }
 0x119   : > { %530 = dma.hbm_to_vmem [thread:$0]  %s517_s3, 16, %s528_s16, [#allocation5 + $0x3] }
 0x11a   : > { %s3766_s25 = sadd.s32 5, %s3210_s26  ;;  %s2902_s8 = smov [#allocation3 + $0x4]  }
 0x11b   : > { %s543_s1 = sshll.u32 %s2902_s8, 4  ;;  %s547_s28 = sld [smem:[#allocation8 + %s3766_s25]]  ;;  %s544_s1 = int_to_ptr.vmem [resolvable:$true] %s543_s1 }
 0x11c   : > { %s2903_s19 = smov [#allocation3 + $0x5]   ;;  %s3765_s2 = sadd.s32 6, %s3210_s26 }
 0x11d   : > { %s559_s29 = sshll.u32 %s2903_s19, 4  ;;  %s1543_s14 = sshll.u32 %s3290_s17, 4  ;;  %s3303_s29 = int_to_ptr.vmem [resolvable:$true] %s559_s29 }
 0x11e   : > { %s533_s3 = scalar_lea.hbm %s3741_s5, %s1543_s14  ;;  %s3310_s30 = sld [smem:[#allocation8 + %s3765_s2]] }
 0x11f   : > { %s2282_s23 = scalar_lea.hbm %s533_s3, 16  ;;  %p2285_p7 = scmp.lt.u32.totalorder %s533_s3, %s3741_s5 }
 0x120   : > { %p2283_p11 = scmp.ne.s32.totalorder %s533_s3, %s2282_s23  ;;  %p2286_p2 = scmp.lt.u32.totalorder %s3236_s6, %s2282_s23 }
 0x121   : > { %p2288_p4 = scmp.lt.u32.totalorder %s2282_s23, %s533_s3 }
 0x122   : > { %p2287_p12 = por %p2286_p2, %p2285_p7 }
 0x124   : > { %p2289_p5 = por %p2288_p4, %p2287_p12 }
 0x126   : > { %p2290_p6 = pnand %p2289_p5, %p2283_p11 }
 0x128   : > { %2293 = shalt.err (!%p2290_p6)  }
 0x129   : > { %s2294_s17 = scalar_lea.vmem %s544_s1, 16  ;;  %p2299_p9 = scmp.lt.s32.totalorder %s544_s1, %s3213_s22 }
 0x12a   : > { %p2295_p0 = scmp.ne.s32.totalorder %s544_s1, %s2294_s17  ;;  %p2300_p10 = scmp.lt.s32.totalorder %s3245_s24, %s2294_s17 }
 0x12c   : > { %p2301_p13 = por %p2300_p10, %p2299_p9 }
 0x12e   : > { %p2302_p1 = pnand %p2301_p13, %p2295_p0 }
 0x130   : > { %2305 = shalt.err (!%p2302_p1)  }
 0x131   : > { %546 = dma.hbm_to_vmem [thread:$0]  %s533_s3, 16, %s544_s1, [#allocation5 + $0x4] }
 0x132   : > { %s1544_s19 = sshll.u32 %s547_s28, 4  ;;  %s2904_s23 = smov [#allocation3 + $0x6]  }
 0x133   : > { %s549_s0 = scalar_lea.hbm %s3741_s5, %s1544_s19  ;;  %s575_s16 = sshll.u32 %s2904_s23, 4  ;;  %s576_s16 = int_to_ptr.vmem [resolvable:$true] %s575_s16 }
 0x134   : > { %s2306_s8 = scalar_lea.hbm %s549_s0, 16  ;;  %p2309_p8 = scmp.lt.u32.totalorder %s549_s0, %s3741_s5 }
 0x135   : > { %p2307_p3 = scmp.ne.s32.totalorder %s549_s0, %s2306_s8  ;;  %p2310_p11 = scmp.lt.u32.totalorder %s3236_s6, %s2306_s8 }
 0x136   : > { %p2312_p2 = scmp.lt.u32.totalorder %s2306_s8, %s549_s0 }
 0x137   : > { %p2311_p7 = por %p2310_p11, %p2309_p8 }
 0x139   : > { %p2313_p12 = por %p2312_p2, %p2311_p7 }
 0x13b   : > { %p2314_p4 = pnand %p2313_p12, %p2307_p3 }
 0x13d   : > { %2317 = shalt.err (!%p2314_p4)  }
 0x13e   : > { %s2318_s1 = scalar_lea.vmem %s3303_s29, 16  ;;  %p2323_p6 = scmp.lt.s32.totalorder %s3303_s29, %s3213_s22 }
 0x13f   : > { %p2319_p5 = scmp.ne.s32.totalorder %s3303_s29, %s2318_s1  ;;  %p2324_p0 = scmp.lt.s32.totalorder %s3245_s24, %s2318_s1 }
 0x141   : > { %p2325_p9 = por %p2324_p0, %p2323_p6 }
 0x143   : > { %p2326_p10 = pnand %p2325_p9, %p2319_p5 }
 0x145   : > { %2329 = shalt.err (!%p2326_p10)  }
 0x146   : > { %562 = dma.hbm_to_vmem [thread:$0]  %s549_s0, 16, %s3303_s29, [#allocation5 + $0x5] }
 0x147   : > { %s3767_s25 = sadd.s32 7, %s3210_s26  ;;  %s1545_s28 = sshll.u32 %s3310_s30, 4 }
 0x148   : > { %s579_s2 = sld [smem:[#allocation8 + %s3767_s25]]  ;;  %s565_s19 = scalar_lea.hbm %s3741_s5, %s1545_s28 }
 0x149   : > { %s2330_s15 = scalar_lea.hbm %s565_s19, 16  ;;  %p2333_p1 = scmp.lt.u32.totalorder %s565_s19, %s3741_s5 }
 0x14a   : > { %p2331_p13 = scmp.ne.s32.totalorder %s565_s19, %s2330_s15  ;;  %p2334_p3 = scmp.lt.u32.totalorder %s3236_s6, %s2330_s15 }
 0x14b   : > { %p2336_p11 = scmp.lt.u32.totalorder %s2330_s15, %s565_s19 }
 0x14c   : > { %p2335_p8 = por %p2334_p3, %p2333_p1 }
 0x14e   : > { %p2337_p7 = por %p2336_p11, %p2335_p8 }
 0x150   : > { %p2338_p2 = pnand %p2337_p7, %p2331_p13 }
 0x152   : > { %2341 = shalt.err (!%p2338_p2)  }
 0x153   : > { %s2342_s29 = scalar_lea.vmem %s576_s16, 16  ;;  %p2347_p4 = scmp.lt.s32.totalorder %s576_s16, %s3213_s22 }
 0x154   : > { %p2343_p12 = scmp.ne.s32.totalorder %s576_s16, %s2342_s29  ;;  %p2348_p5 = scmp.lt.s32.totalorder %s3245_s24, %s2342_s29 }
 0x156   : > { %p2349_p6 = por %p2348_p5, %p2347_p4 }
 0x158   : > { %p2350_p0 = pnand %p2349_p6, %p2343_p12 }
 0x15a   : > { %2353 = shalt.err (!%p2350_p0)  }
 0x15b   : > { %578 = dma.hbm_to_vmem [thread:$0]  %s565_s19, 16, %s576_s16, [#allocation5 + $0x6] }
 0x15c   : > { %s2905_s30 = smov [#allocation3 + $0x7]   ;;  %s3346_s1 = sld [smem:[#allocation7 + %s3210_s26]] }
 0x15d   : > { %s591_s0 = sshll.u32 %s2905_s30, 4  ;;  %s1546_s28 = sshll.u32 %s579_s2, 4  ;;  %s592_s0 = int_to_ptr.vmem [resolvable:$true] %s591_s0 }
 0x15e   : > { %s2906_s3 = smov [#allocation2]   ;;  %s581_s23 = scalar_lea.hbm %s3741_s5, %s1546_s28 }
 0x15f   : > { %s346_s17 = sshll.u32 %s2906_s3, 4  ;;  %s2354_s29 = scalar_lea.hbm %s581_s23, 16  ;;  %s3351_s17 = int_to_ptr.vmem [resolvable:$true] %s346_s17 }
 0x160   : > { %p2355_p9 = scmp.ne.s32.totalorder %s581_s23, %s2354_s29  ;;  %p2357_p10 = scmp.lt.u32.totalorder %s581_s23, %s3741_s5 }
 0x161   : > { %p2358_p13 = scmp.lt.u32.totalorder %s3236_s6, %s2354_s29  ;;  %p2360_p3 = scmp.lt.u32.totalorder %s2354_s29, %s581_s23 }
 0x163   : > { %p2359_p1 = por %p2358_p13, %p2357_p10 }
 0x165   : > { %p2361_p8 = por %p2360_p3, %p2359_p1 }
 0x167   : > { %p2362_p11 = pnand %p2361_p8, %p2355_p9 }
 0x169   : > { %2365 = shalt.err (!%p2362_p11)  }
 0x16a   : > { %s2366_s2 = scalar_lea.vmem %s592_s0, 16  ;;  %p2371_p2 = scmp.lt.s32.totalorder %s592_s0, %s3213_s22 }
 0x16b   : > { %p2367_p7 = scmp.ne.s32.totalorder %s592_s0, %s2366_s2  ;;  %p2372_p12 = scmp.lt.s32.totalorder %s3245_s24, %s2366_s2 }
 0x16d   : > { %p2373_p4 = por %p2372_p12, %p2371_p2 }
 0x16f   : > { %p2374_p5 = pnand %p2373_p4, %p2367_p7 }
 0x171   : > { %2377 = shalt.err (!%p2374_p5)  }
 0x172   : > { %594 = dma.hbm_to_vmem [thread:$0]  %s581_s23, 16, %s592_s0, [#allocation5 + $0x7] }
 0x173   : > { %s595_s30 = sadd.s32 8, %s3210_s26  ;;  %s2907_s3 = smov [#allocation3 + $0x8]  }
 0x174   : > { %s3360_s28 = sld [smem:[#allocation8 + %s595_s30]]  ;;  %s608_s15 = sshll.u32 %s2907_s3, 4  ;;  %s3363_s15 = int_to_ptr.vmem [resolvable:$true] %s608_s15 }
 0x175   : > { %s1531_s14 = sshll.u32 %s3346_s1, 4  ;;  %s3801_s2 = sadd.s32 1, %s3210_s26 }
 0x176   : > { %s338_s19 = scalar_lea.hbm %s3740_s4, %s1531_s14  ;;  %s3370_s8 = sld [smem:[#allocation7 + %s3801_s2]] }
 0x177   : > { %s2378_s25 = scalar_lea.hbm %s338_s19, 16  ;;  %s3375_s9 = scalar_lea.hbm %s3740_s4, 1024 }
 0x178   : > { %p2379_p6 = scmp.ne.s32.totalorder %s338_s19, %s2378_s25  ;;  %p2381_p0 = scmp.lt.u32.totalorder %s338_s19, %s3740_s4 }
 0x179   : > { %p2382_p9 = scmp.lt.u32.totalorder %s3375_s9, %s2378_s25  ;;  %p2384_p13 = scmp.lt.u32.totalorder %s2378_s25, %s338_s19 }
 0x17b   : > { %p2383_p10 = por %p2382_p9, %p2381_p0 }
 0x17d   : > { %p2385_p1 = por %p2384_p13, %p2383_p10 }
 0x17f   : > { %p2386_p3 = pnand %p2385_p1, %p2379_p6 }
 0x181   : > { %2389 = shalt.err (!%p2386_p3)  }
 0x182   : > { %s2390_s1 = scalar_lea.vmem %s3351_s17, 16  ;;  %s3384_s3 = scalar_lea.vmem %s3351_s17, 128 }
 0x183   : > { %p2391_p8 = scmp.ne.s32.totalorder %s3351_s17, %s2390_s1  ;;  %p2395_p11 = scmp.lt.s32.totalorder %s3351_s17, %s3351_s17 }
 0x184   : > { %p2396_p7 = scmp.lt.s32.totalorder %s3384_s3, %s2390_s1 }
 0x186   : > { %p2397_p2 = por %p2396_p7, %p2395_p11 }
 0x188   : > { %p2398_p12 = pnand %p2397_p2, %p2391_p8 }
 0x18a   : > { %2401 = shalt.err (!%p2398_p12)  }
 0x18b   : > { %349 = dma.hbm_to_vmem [thread:$0]  %s338_s19, 16, %s3351_s17, [#allocation4] }
 0x18c   : > { %s612_s11 = sadd.s32 9, %s3210_s26  ;;  %s2908_s25 = smov [#allocation2 + $0x1]  }
 0x18d   : > { %s363_s14 = sshll.u32 %s2908_s25, 4  ;;  %s3391_s29 = sld [smem:[#allocation8 + %s612_s11]]  ;;  %s3394_s14 = int_to_ptr.vmem [resolvable:$true] %s363_s14 }
 0x18e   : > { %s1547_s16 = sshll.u32 %s3360_s28, 4 }
 0x18f   : > { %s598_s23 = scalar_lea.hbm %s3741_s5, %s1547_s16 }
 0x190   : > { %s2402_s30 = scalar_lea.hbm %s598_s23, 16  ;;  %p2405_p5 = scmp.lt.u32.totalorder %s598_s23, %s3741_s5 }
 0x191   : > { %p2403_p4 = scmp.ne.s32.totalorder %s598_s23, %s2402_s30  ;;  %p2406_p6 = scmp.lt.u32.totalorder %s3236_s6, %s2402_s30 }
 0x192   : > { %p2408_p9 = scmp.lt.u32.totalorder %s2402_s30, %s598_s23 }
 0x193   : > { %p2407_p0 = por %p2406_p6, %p2405_p5 }
 0x195   : > { %p2409_p10 = por %p2408_p9, %p2407_p0 }
 0x197   : > { %p2410_p13 = pnand %p2409_p10, %p2403_p4 }
 0x199   : > { %2413 = shalt.err (!%p2410_p13)  }
 0x19a   : > { %s2414_s28 = scalar_lea.vmem %s3363_s15, 16  ;;  %p2419_p3 = scmp.lt.s32.totalorder %s3363_s15, %s3213_s22 }
 0x19b   : > { %p2415_p1 = scmp.ne.s32.totalorder %s3363_s15, %s2414_s28  ;;  %p2420_p8 = scmp.lt.s32.totalorder %s3245_s24, %s2414_s28 }
 0x19d   : > { %p2421_p11 = por %p2420_p8, %p2419_p3 }
 0x19f   : > { %p2422_p7 = pnand %p2421_p11, %p2415_p1 }
 0x1a1   : > { %2425 = shalt.err (!%p2422_p7)  }
 0x1a2   : > { %611 = dma.hbm_to_vmem [thread:$0]  %s598_s23, 16, %s3363_s15, [#allocation5 + $0x8] }
 0x1a3   : > { %s1532_s20 = sshll.u32 %s3370_s8, 4  ;;  %s2909_s19 = smov [#allocation3 + $0x9]  }
 0x1a4   : > { %s625_s11 = sshll.u32 %s2909_s19, 4  ;;  %s353_s2 = scalar_lea.hbm %s3740_s4, %s1532_s20  ;;  %s3413_s11 = int_to_ptr.vmem [resolvable:$true] %s625_s11 }
 0x1a5   : > { %s2426_s0 = scalar_lea.hbm %s353_s2, 16  ;;  %p2429_p12 = scmp.lt.u32.totalorder %s353_s2, %s3740_s4 }
 0x1a6   : > { %p2427_p2 = scmp.ne.s32.totalorder %s353_s2, %s2426_s0  ;;  %p2430_p4 = scmp.lt.u32.totalorder %s3375_s9, %s2426_s0 }
 0x1a7   : > { %p2432_p6 = scmp.lt.u32.totalorder %s2426_s0, %s353_s2 }
 0x1a8   : > { %p2431_p5 = por %p2430_p4, %p2429_p12 }
 0x1aa   : > { %p2433_p0 = por %p2432_p6, %p2431_p5 }
 0x1ac   : > { %p2434_p9 = pnand %p2433_p0, %p2427_p2 }
 0x1ae   : > { %2437 = shalt.err (!%p2434_p9)  }
 0x1af   : > { %s2438_s8 = scalar_lea.vmem %s3394_s14, 16  ;;  %p2443_p13 = scmp.lt.s32.totalorder %s3394_s14, %s3351_s17 }
 0x1b0   : > { %p2439_p10 = scmp.ne.s32.totalorder %s3394_s14, %s2438_s8  ;;  %p2444_p1 = scmp.lt.s32.totalorder %s3384_s3, %s2438_s8 }
 0x1b2   : > { %p2445_p3 = por %p2444_p1, %p2443_p13 }
 0x1b4   : > { %p2446_p8 = pnand %p2445_p3, %p2439_p10 }
 0x1b6   : > { %2449 = shalt.err (!%p2446_p8)  }
 0x1b7   : > { %366 = dma.hbm_to_vmem [thread:$0]  %s353_s2, 16, %s3394_s14, [#allocation4 + $0x1] }
 0x1b8   : > { %s1548_s15 = sshll.u32 %s3391_s29, 4  ;;  %s3802_s23 = sadd.s32 2, %s3210_s26 }
 0x1b9   : > { %s3428_s28 = sld [smem:[#allocation7 + %s3802_s23]]  ;;  %s615_s25 = scalar_lea.hbm %s3741_s5, %s1548_s15 }
 0x1ba   : > { %s2450_s16 = scalar_lea.hbm %s615_s25, 16  ;;  %p2453_p7 = scmp.lt.u32.totalorder %s615_s25, %s3741_s5 }
 0x1bb   : > { %p2451_p11 = scmp.ne.s32.totalorder %s615_s25, %s2450_s16  ;;  %p2454_p2 = scmp.lt.u32.totalorder %s3236_s6, %s2450_s16 }
 0x1bc   : > { %p2456_p4 = scmp.lt.u32.totalorder %s2450_s16, %s615_s25 }
 0x1bd   : > { %p2455_p12 = por %p2454_p2, %p2453_p7 }
 0x1bf   : > { %p2457_p5 = por %p2456_p4, %p2455_p12 }
 0x1c1   : > { %p2458_p6 = pnand %p2457_p5, %p2451_p11 }
 0x1c3   : > { %2461 = shalt.err (!%p2458_p6)  }
 0x1c4   : > { %s2462_s14 = scalar_lea.vmem %s3413_s11, 16  ;;  %p2467_p9 = scmp.lt.s32.totalorder %s3413_s11, %s3213_s22 }
 0x1c5   : > { %p2463_p0 = scmp.ne.s32.totalorder %s3413_s11, %s2462_s14  ;;  %p2468_p10 = scmp.lt.s32.totalorder %s3245_s24, %s2462_s14 }
 0x1c7   : > { %p2469_p13 = por %p2468_p10, %p2467_p9 }
 0x1c9   : > { %p2470_p1 = pnand %p2469_p13, %p2463_p0 }
 0x1cb   : > { %2473 = shalt.err (!%p2470_p1)  }
 0x1cc   : > { %628 = dma.hbm_to_vmem [thread:$0]  %s615_s25, 16, %s3413_s11, [#allocation5 + $0x9] }
 0x1cd   : > { %s2910_s29 = smov [#allocation2 + $0x2]   ;;  %s629_s1 = sadd.s32 10, %s3210_s26 }
 0x1ce   : > { %s380_s2 = sshll.u32 %s2910_s29, 4  ;;  %s3444_s8 = sld [smem:[#allocation8 + %s629_s1]]  ;;  %s381_s2 = int_to_ptr.vmem [resolvable:$true] %s380_s2 }
 0x1cf   : > { %s3803_s15 = sadd.s32 3, %s3210_s26  ;;  %s1533_s20 = sshll.u32 %s3428_s28, 4 }
 0x1d0   : > { %s3448_s23 = sld [smem:[#allocation7 + %s3803_s15]]  ;;  %s2911_s19 = smov [#allocation3 + $0xa]  }
 0x1d1   : > { %s642_s16 = sshll.u32 %s2911_s19, 4  ;;  %s370_s14 = scalar_lea.hbm %s3740_s4, %s1533_s20  ;;  %s3454_s16 = int_to_ptr.vmem [resolvable:$true] %s642_s16 }
 0x1d2   : > { %s2474_s13 = scalar_lea.hbm %s370_s14, 16  ;;  %p2477_p8 = scmp.lt.u32.totalorder %s370_s14, %s3740_s4 }
 0x1d3   : > { %p2475_p3 = scmp.ne.s32.totalorder %s370_s14, %s2474_s13  ;;  %p2478_p11 = scmp.lt.u32.totalorder %s3375_s9, %s2474_s13 }
 0x1d4   : > { %p2480_p2 = scmp.lt.u32.totalorder %s2474_s13, %s370_s14 }
 0x1d5   : > { %p2479_p7 = por %p2478_p11, %p2477_p8 }
 0x1d7   : > { %p2481_p12 = por %p2480_p2, %p2479_p7 }
 0x1d9   : > { %p2482_p4 = pnand %p2481_p12, %p2475_p3 }
 0x1db   : > { %2485 = shalt.err (!%p2482_p4)  }
 0x1dc   : > { %s2486_s28 = scalar_lea.vmem %s381_s2, 16  ;;  %p2491_p6 = scmp.lt.s32.totalorder %s381_s2, %s3351_s17 }
 0x1dd   : > { %p2487_p5 = scmp.ne.s32.totalorder %s381_s2, %s2486_s28  ;;  %p2492_p0 = scmp.lt.s32.totalorder %s3384_s3, %s2486_s28 }
 0x1df   : > { %p2493_p9 = por %p2492_p0, %p2491_p6 }
 0x1e1   : > { %p2494_p10 = pnand %p2493_p9, %p2487_p5 }
 0x1e3   : > { %2497 = shalt.err (!%p2494_p10)  }
 0x1e4   : > { %383 = dma.hbm_to_vmem [thread:$0]  %s370_s14, 16, %s381_s2, [#allocation4 + $0x2] }
 0x1e5   : > { %s646_s29 = sadd.s32 11, %s3210_s26  ;;  %s1549_s1 = sshll.u32 %s3444_s8, 4 }
 0x1e6   : > { %s2912_s13 = smov [#allocation2 + $0x3]   ;;  %s632_s0 = scalar_lea.hbm %s3741_s5, %s1549_s1 }
 0x1e7   : > { %s397_s15 = sshll.u32 %s2912_s13, 4  ;;  %s1534_s30 = sshll.u32 %s3448_s23, 4  ;;  %s398_s15 = int_to_ptr.vmem [resolvable:$true] %s397_s15 }
 0x1e8   : > { %s2498_s11 = scalar_lea.hbm %s632_s0, 16  ;;  %p2501_p1 = scmp.lt.u32.totalorder %s632_s0, %s3741_s5 }
 0x1e9   : > { %p2499_p13 = scmp.ne.s32.totalorder %s632_s0, %s2498_s11  ;;  %p2502_p3 = scmp.lt.u32.totalorder %s3236_s6, %s2498_s11 }
 0x1ea   : > { %p2504_p11 = scmp.lt.u32.totalorder %s2498_s11, %s632_s0 }
 0x1eb   : > { %p2503_p8 = por %p2502_p3, %p2501_p1 }
 0x1ed   : > { %p2505_p7 = por %p2504_p11, %p2503_p8 }
 0x1ef   : > { %p2506_p2 = pnand %p2505_p7, %p2499_p13 }
 0x1f1   : > { %2509 = shalt.err (!%p2506_p2)  }
 0x1f2   : > { %s2510_s2 = scalar_lea.vmem %s3454_s16, 16  ;;  %p2515_p4 = scmp.lt.s32.totalorder %s3454_s16, %s3213_s22 }
 0x1f3   : > { %p2511_p12 = scmp.ne.s32.totalorder %s3454_s16, %s2510_s2  ;;  %p2516_p5 = scmp.lt.s32.totalorder %s3245_s24, %s2510_s2 }
 0x1f5   : > { %p2517_p6 = por %p2516_p5, %p2515_p4 }
 0x1f7   : > { %p2518_p0 = pnand %p2517_p6, %p2511_p12 }
 0x1f9   : > { %2521 = shalt.err (!%p2518_p0)  }
 0x1fa   : > { %645 = dma.hbm_to_vmem [thread:$0]  %s632_s0, 16, %s3454_s16, [#allocation5 + $0xa] }
 0x1fb   : > { %s387_s14 = scalar_lea.hbm %s3740_s4, %s1534_s30 }
 0x1fc   : > { %s2522_s1 = scalar_lea.hbm %s387_s14, 16  ;;  %p2525_p10 = scmp.lt.u32.totalorder %s387_s14, %s3740_s4 }
 0x1fd   : > { %p2523_p9 = scmp.ne.s32.totalorder %s387_s14, %s2522_s1  ;;  %p2526_p13 = scmp.lt.u32.totalorder %s3375_s9, %s2522_s1 }
 0x1fe   : > { %p2528_p3 = scmp.lt.u32.totalorder %s2522_s1, %s387_s14 }
 0x1ff   : > { %p2527_p1 = por %p2526_p13, %p2525_p10 }
 0x201   : > { %p2529_p8 = por %p2528_p3, %p2527_p1 }
 0x203   : > { %p2530_p11 = pnand %p2529_p8, %p2523_p9 }
 0x205   : > { %2533 = shalt.err (!%p2530_p11)  }
 0x206   : > { %s2534_s19 = scalar_lea.vmem %s398_s15, 16  ;;  %p2539_p2 = scmp.lt.s32.totalorder %s398_s15, %s3351_s17 }
 0x207   : > { %p2535_p7 = scmp.ne.s32.totalorder %s398_s15, %s2534_s19  ;;  %p2540_p12 = scmp.lt.s32.totalorder %s3384_s3, %s2534_s19 }
 0x209   : > { %p2541_p4 = por %p2540_p12, %p2539_p2 }
 0x20b   : > { %p2542_p5 = pnand %p2541_p4, %p2535_p7 }
 0x20d   : > { %2545 = shalt.err (!%p2542_p5)  }
 0x20e   : > { %400 = dma.hbm_to_vmem [thread:$0]  %s387_s14, 16, %s398_s15, [#allocation4 + $0x3] }
 0x20f   : > { %s647_s16 = sld [smem:[#allocation8 + %s646_s29]]  ;;  %s2913_s0 = smov [#allocation3 + $0xb]  }
 0x210   : > { %s659_s30 = sshll.u32 %s2913_s0, 4  ;;  %s3804_s11 = sadd.s32 4, %s3210_s26  ;;  %s660_s30 = int_to_ptr.vmem [resolvable:$true] %s659_s30 }
 0x211   : > { %s3491_s25 = sld [smem:[#allocation7 + %s3804_s11]]  ;;  %s2914_s28 = smov [#allocation2 + $0x4]  }
 0x212   : > { %s414_s2 = sshll.u32 %s2914_s28, 4  ;;  %s663_s8 = sadd.s32 12, %s3210_s26  ;;  %s3494_s2 = int_to_ptr.vmem [resolvable:$true] %s414_s2 }
 0x213   : > { %s3496_s15 = sld [smem:[#allocation8 + %s663_s8]]  ;;  %s3805_s23 = sadd.s32 5, %s3210_s26 }
 0x214   : > { %s3500_s14 = sld [smem:[#allocation7 + %s3805_s23]]  ;;  %s2915_s29 = smov [#allocation3 + $0xc]  }
 0x215   : > { %s1550_s1 = sshll.u32 %s647_s16, 4  ;;  %s676_s13 = sshll.u32 %s2915_s29, 4  ;;  %s3515_s13 = int_to_ptr.vmem [resolvable:$true] %s676_s13 }
 0x216   : > { %s649_s0 = scalar_lea.hbm %s3741_s5, %s1550_s1 }
 0x217   : > { %s1535_s11 = sshll.u32 %s3491_s25, 4  ;;  %s2546_s12 = scalar_lea.hbm %s649_s0, 16 }
 0x218   : > { %p2547_p6 = scmp.ne.s32.totalorder %s649_s0, %s2546_s12  ;;  %p2549_p0 = scmp.lt.u32.totalorder %s649_s0, %s3741_s5 }
 0x219   : > { %p2550_p9 = scmp.lt.u32.totalorder %s3236_s6, %s2546_s12  ;;  %p2552_p13 = scmp.lt.u32.totalorder %s2546_s12, %s649_s0 }
 0x21b   : > { %p2551_p10 = por %p2550_p9, %p2549_p0 }
 0x21d   : > { %p2553_p1 = por %p2552_p13, %p2551_p10 }
 0x21f   : > { %p2554_p3 = pnand %p2553_p1, %p2547_p6 }
 0x221   : > { %2557 = shalt.err (!%p2554_p3)  }
 0x222   : > { %s2558_s16 = scalar_lea.vmem %s660_s30, 16  ;;  %p2563_p11 = scmp.lt.s32.totalorder %s660_s30, %s3213_s22 }
 0x223   : > { %p2559_p8 = scmp.ne.s32.totalorder %s660_s30, %s2558_s16  ;;  %p2564_p7 = scmp.lt.s32.totalorder %s3245_s24, %s2558_s16 }
 0x225   : > { %p2565_p2 = por %p2564_p7, %p2563_p11 }
 0x227   : > { %p2566_p12 = pnand %p2565_p2, %p2559_p8 }
 0x229   : > { %2569 = shalt.err (!%p2566_p12)  }
 0x22a   : > { %662 = dma.hbm_to_vmem [thread:$0]  %s649_s0, 16, %s660_s30, [#allocation5 + $0xb] }
 0x22b   : > { %s404_s27 = scalar_lea.hbm %s3740_s4, %s1535_s11 }
 0x22c   : > { %s2570_s12 = scalar_lea.hbm %s404_s27, 16  ;;  %p2573_p5 = scmp.lt.u32.totalorder %s404_s27, %s3740_s4 }
 0x22d   : > { %p2571_p4 = scmp.ne.s32.totalorder %s404_s27, %s2570_s12  ;;  %p2574_p6 = scmp.lt.u32.totalorder %s3375_s9, %s2570_s12 }
 0x22e   : > { %p2576_p9 = scmp.lt.u32.totalorder %s2570_s12, %s404_s27 }
 0x22f   : > { %p2575_p0 = por %p2574_p6, %p2573_p5 }
 0x231   : > { %p2577_p10 = por %p2576_p9, %p2575_p0 }
 0x233   : > { %p2578_p13 = pnand %p2577_p10, %p2571_p4 }
 0x235   : > { %2581 = shalt.err (!%p2578_p13)  }
 0x236   : > { %s2582_s30 = scalar_lea.vmem %s3494_s2, 16  ;;  %p2587_p3 = scmp.lt.s32.totalorder %s3494_s2, %s3351_s17 }
 0x237   : > { %p2583_p1 = scmp.ne.s32.totalorder %s3494_s2, %s2582_s30  ;;  %p2588_p8 = scmp.lt.s32.totalorder %s3384_s3, %s2582_s30 }
 0x239   : > { %p2589_p11 = por %p2588_p8, %p2587_p3 }
 0x23b   : > { %p2590_p7 = pnand %p2589_p11, %p2583_p1 }
 0x23d   : > { %2593 = shalt.err (!%p2590_p7)  }
 0x23e   : > { %417 = dma.hbm_to_vmem [thread:$0]  %s404_s27, 16, %s3494_s2, [#allocation4 + $0x4] }
 0x23f   : > { %s1551_s29 = sshll.u32 %s3496_s15, 4  ;;  %s1536_s20 = sshll.u32 %s3500_s14, 4 }
 0x240   : > { %s666_s11 = scalar_lea.hbm %s3741_s5, %s1551_s29  ;;  %s3535_s25 = scalar_lea.hbm %s3740_s4, %s1536_s20 }
 0x241   : > { %s2594_s8 = scalar_lea.hbm %s666_s11, 16  ;;  %p2597_p12 = scmp.lt.u32.totalorder %s666_s11, %s3741_s5 }
 0x242   : > { %p2595_p2 = scmp.ne.s32.totalorder %s666_s11, %s2594_s8  ;;  %p2598_p4 = scmp.lt.u32.totalorder %s3236_s6, %s2594_s8 }
 0x243   : > { %p2600_p6 = scmp.lt.u32.totalorder %s2594_s8, %s666_s11 }
 0x244   : > { %p2599_p5 = por %p2598_p4, %p2597_p12 }
 0x246   : > { %p2601_p0 = por %p2600_p6, %p2599_p5 }
 0x248   : > { %p2602_p9 = pnand %p2601_p0, %p2595_p2 }
 0x24a   : > { %2605 = shalt.err (!%p2602_p9)  }
 0x24b   : > { %s2606_s2 = scalar_lea.vmem %s3515_s13, 16  ;;  %p2611_p13 = scmp.lt.s32.totalorder %s3515_s13, %s3213_s22 }
 0x24c   : > { %p2607_p10 = scmp.ne.s32.totalorder %s3515_s13, %s2606_s2  ;;  %p2612_p1 = scmp.lt.s32.totalorder %s3245_s24, %s2606_s2 }
 0x24e   : > { %p2613_p3 = por %p2612_p1, %p2611_p13 }
 0x250   : > { %p2614_p8 = pnand %p2613_p3, %p2607_p10 }
 0x252   : > { %2617 = shalt.err (!%p2614_p8)  }
 0x253   : > { %679 = dma.hbm_to_vmem [thread:$0]  %s666_s11, 16, %s3515_s13, [#allocation5 + $0xc] }
 0x254   : > { %s680_s15 = sadd.s32 13, %s3210_s26  ;;  %s2916_s14 = smov [#allocation2 + $0x5]  }
 0x255   : > { %s431_s27 = sshll.u32 %s2916_s14, 4  ;;  %s3548_s1 = sld [smem:[#allocation8 + %s680_s15]]  ;;  %s432_s27 = int_to_ptr.vmem [resolvable:$true] %s431_s27 }
 0x256   : > { %s2618_s30 = scalar_lea.hbm %s3535_s25, 16  ;;  %p2621_p7 = scmp.lt.u32.totalorder %s3535_s25, %s3740_s4 }
 0x257   : > { %p2619_p11 = scmp.ne.s32.totalorder %s3535_s25, %s2618_s30  ;;  %p2622_p2 = scmp.lt.u32.totalorder %s3375_s9, %s2618_s30 }
 0x258   : > { %p2624_p4 = scmp.lt.u32.totalorder %s2618_s30, %s3535_s25 }
 0x259   : > { %p2623_p12 = por %p2622_p2, %p2621_p7 }
 0x25b   : > { %p2625_p5 = por %p2624_p4, %p2623_p12 }
 0x25d   : > { %p2626_p6 = pnand %p2625_p5, %p2619_p11 }
 0x25f   : > { %2629 = shalt.err (!%p2626_p6)  }
 0x260   : > { %s2630_s19 = scalar_lea.vmem %s432_s27, 16  ;;  %p2635_p9 = scmp.lt.s32.totalorder %s432_s27, %s3351_s17 }
 0x261   : > { %p2631_p0 = scmp.ne.s32.totalorder %s432_s27, %s2630_s19  ;;  %p2636_p10 = scmp.lt.s32.totalorder %s3384_s3, %s2630_s19 }
 0x263   : > { %p2637_p13 = por %p2636_p10, %p2635_p9 }
 0x265   : > { %p2638_p1 = pnand %p2637_p13, %p2631_p0 }
 0x267   : > { %2641 = shalt.err (!%p2638_p1)  }
 0x268   : > { %434 = dma.hbm_to_vmem [thread:$0]  %s3535_s25, 16, %s432_s27, [#allocation4 + $0x5] }
 0x269   : > { %s2917_s13 = smov [#allocation3 + $0xd]   ;;  %s3806_s11 = sadd.s32 6, %s3210_s26 }
 0x26a   : > { %s693_s0 = sshll.u32 %s2917_s13, 4  ;;  %s436_s28 = sld [smem:[#allocation7 + %s3806_s11]]  ;;  %s694_s0 = int_to_ptr.vmem [resolvable:$true] %s693_s0 }
 0x26b   : > { %s2918_s16 = smov [#allocation2 + $0x6]   ;;  %s697_s12 = sadd.s32 14, %s3210_s26 }
 0x26c   : > { %s448_s8 = sshll.u32 %s2918_s16, 4  ;;  %s1552_s23 = sshll.u32 %s3548_s1, 4  ;;  %s3565_s8 = int_to_ptr.vmem [resolvable:$true] %s448_s8 }
 0x26d   : > { %s683_s14 = scalar_lea.hbm %s3741_s5, %s1552_s23  ;;  %s3570_s30 = sld [smem:[#allocation8 + %s697_s12]] }
 0x26e   : > { %s2642_s29 = scalar_lea.hbm %s683_s14, 16  ;;  %p2645_p8 = scmp.lt.u32.totalorder %s683_s14, %s3741_s5 }
 0x26f   : > { %p2643_p3 = scmp.ne.s32.totalorder %s683_s14, %s2642_s29  ;;  %p2646_p11 = scmp.lt.u32.totalorder %s3236_s6, %s2642_s29 }
 0x270   : > { %p2648_p2 = scmp.lt.u32.totalorder %s2642_s29, %s683_s14 }
 0x271   : > { %p2647_p7 = por %p2646_p11, %p2645_p8 }
 0x273   : > { %p2649_p12 = por %p2648_p2, %p2647_p7 }
 0x275   : > { %p2650_p4 = pnand %p2649_p12, %p2643_p3 }
 0x277   : > { %2653 = shalt.err (!%p2650_p4)  }
 0x278   : > { %s2654_s1 = scalar_lea.vmem %s694_s0, 16  ;;  %p2659_p6 = scmp.lt.s32.totalorder %s694_s0, %s3213_s22 }
 0x279   : > { %p2655_p5 = scmp.ne.s32.totalorder %s694_s0, %s2654_s1  ;;  %p2660_p0 = scmp.lt.s32.totalorder %s3245_s24, %s2654_s1 }
 0x27b   : > { %p2661_p9 = por %p2660_p0, %p2659_p6 }
 0x27d   : > { %p2662_p10 = pnand %p2661_p9, %p2655_p5 }
 0x27f   : > { %2665 = shalt.err (!%p2662_p10)  }
 0x280   : > { %696 = dma.hbm_to_vmem [thread:$0]  %s683_s14, 16, %s694_s0, [#allocation5 + $0xd] }
 0x281   : > { %s1537_s20 = sshll.u32 %s436_s28, 4  ;;  %s2919_s16 = smov [#allocation3 + $0xe]  }
 0x282   : > { %s438_s11 = scalar_lea.hbm %s3740_s4, %s1537_s20  ;;  %s710_s12 = sshll.u32 %s2919_s16, 4  ;;  %s711_s12 = int_to_ptr.vmem [resolvable:$true] %s710_s12 }
 0x283   : > { %s2666_s23 = scalar_lea.hbm %s438_s11, 16  ;;  %p2669_p1 = scmp.lt.u32.totalorder %s438_s11, %s3740_s4 }
 0x284   : > { %p2667_p13 = scmp.ne.s32.totalorder %s438_s11, %s2666_s23  ;;  %p2670_p3 = scmp.lt.u32.totalorder %s3375_s9, %s2666_s23 }
 0x285   : > { %p2672_p11 = scmp.lt.u32.totalorder %s2666_s23, %s438_s11 }
 0x286   : > { %p2671_p8 = por %p2670_p3, %p2669_p1 }
 0x288   : > { %p2673_p7 = por %p2672_p11, %p2671_p8 }
 0x28a   : > { %p2674_p2 = pnand %p2673_p7, %p2667_p13 }
 0x28c   : > { %2677 = shalt.err (!%p2674_p2)  }
 0x28d   : > { %s2678_s0 = scalar_lea.vmem %s3565_s8, 16  ;;  %p2683_p4 = scmp.lt.s32.totalorder %s3565_s8, %s3351_s17 }
 0x28e   : > { %p2679_p12 = scmp.ne.s32.totalorder %s3565_s8, %s2678_s0  ;;  %p2684_p5 = scmp.lt.s32.totalorder %s3384_s3, %s2678_s0 }
 0x290   : > { %p2685_p6 = por %p2684_p5, %p2683_p4 }
 0x292   : > { %p2686_p0 = pnand %p2685_p6, %p2679_p12 }
 0x294   : > { %2689 = shalt.err (!%p2686_p0)  }
 0x295   : > { %451 = dma.hbm_to_vmem [thread:$0]  %s438_s11, 16, %s3565_s8, [#allocation4 + $0x6] }
 0x296   : > { %s3807_s28 = sadd.s32 7, %s3210_s26  ;;  %s1553_s29 = sshll.u32 %s3570_s30, 4 }
 0x297   : > { %s453_s14 = sld [smem:[#allocation7 + %s3807_s28]]  ;;  %s700_s1 = scalar_lea.hbm %s3741_s5, %s1553_s29 }
 0x298   : > { %s2920_s20 = smov [#allocation2 + $0x7]   ;;  %s2690_s13 = scalar_lea.hbm %s700_s1, 16 }
 0x299   : > { %s465_s19 = sshll.u32 %s2920_s20, 4  ;;  %p2691_p9 = scmp.ne.s32.totalorder %s700_s1, %s2690_s13  ;;  %s466_s19 = int_to_ptr.vmem [resolvable:$true] %s465_s19 }
 0x29a   : > { %p2693_p10 = scmp.lt.u32.totalorder %s700_s1, %s3741_s5  ;;  %p2694_p13 = scmp.lt.u32.totalorder %s3236_s6, %s2690_s13 }
 0x29b   : > { %p2696_p3 = scmp.lt.u32.totalorder %s2690_s13, %s700_s1 }
 0x29c   : > { %p2695_p1 = por %p2694_p13, %p2693_p10 }
 0x29e   : > { %p2697_p8 = por %p2696_p3, %p2695_p1 }
 0x2a0   : > { %p2698_p11 = pnand %p2697_p8, %p2691_p9 }
 0x2a2   : > { %2701 = shalt.err (!%p2698_p11)  }
 0x2a3   : > { %s2702_s8 = scalar_lea.vmem %s711_s12, 16  ;;  %p2707_p2 = scmp.lt.s32.totalorder %s711_s12, %s3213_s22 }
 0x2a4   : > { %p2703_p7 = scmp.ne.s32.totalorder %s711_s12, %s2702_s8  ;;  %p2708_p12 = scmp.lt.s32.totalorder %s3245_s24, %s2702_s8 }
 0x2a6   : > { %p2709_p4 = por %p2708_p12, %p2707_p2 }
 0x2a8   : > { %p2710_p5 = pnand %p2709_p4, %p2703_p7 }
 0x2aa   : > { %2713 = shalt.err (!%p2710_p5)  }
 0x2ab   : > { %713 = dma.hbm_to_vmem [thread:$0]  %s700_s1, 16, %s711_s12, [#allocation5 + $0xe] }
 0x2ac   : > { %s714_s30 = sadd.s32 15, %s3210_s26  ;;  %s1538_s2 = sshll.u32 %s453_s14, 4 }
 0x2ad   : > { %s715_s11 = sld [smem:[#allocation8 + %s714_s30]]  ;;  %s455_s28 = scalar_lea.hbm %s3740_s4, %s1538_s2 }
 0x2ae   : > { %s2921_s29 = smov [#allocation3 + $0xf]   ;;  %s2714_s27 = scalar_lea.hbm %s455_s28, 16 }
 0x2af   : > { %s727_s25 = sshll.u32 %s2921_s29, 4  ;;  %p2715_p6 = scmp.ne.s32.totalorder %s455_s28, %s2714_s27  ;;  %s728_s25 = int_to_ptr.vmem [resolvable:$true] %s727_s25 }
 0x2b0   : > { %p2717_p0 = scmp.lt.u32.totalorder %s455_s28, %s3740_s4  ;;  %p2718_p9 = scmp.lt.u32.totalorder %s3375_s9, %s2714_s27 }
 0x2b1   : > { %p2720_p13 = scmp.lt.u32.totalorder %s2714_s27, %s455_s28 }
 0x2b2   : > { %p2719_p10 = por %p2718_p9, %p2717_p0 }
 0x2b4   : > { %p2721_p1 = por %p2720_p13, %p2719_p10 }
 0x2b6   : > { %p2722_p3 = pnand %p2721_p1, %p2715_p6 }
 0x2b8   : > { %2725 = shalt.err (!%p2722_p3)  }
 0x2b9   : > { %s2726_s26 = scalar_lea.vmem %s466_s19, 16  ;;  %p2731_p11 = scmp.lt.s32.totalorder %s466_s19, %s3351_s17 }
 0x2ba   : > { %p2727_p8 = scmp.ne.s32.totalorder %s466_s19, %s2726_s26  ;;  %p2732_p7 = scmp.lt.s32.totalorder %s3384_s3, %s2726_s26 }
 0x2bc   : > { %p2733_p2 = por %p2732_p7, %p2731_p11 }
 0x2be   : > { %p2734_p12 = pnand %p2733_p2, %p2727_p8 }
 0x2c0   : > { %2737 = shalt.err (!%p2734_p12)  }
 0x2c1   : > { %468 = dma.hbm_to_vmem [thread:$0]  %s455_s28, 16, %s466_s19, [#allocation4 + $0x7] }
 0x2c2   : > { %s1554_s12 = sshll.u32 %s715_s11, 4 }
 0x2c3   : > { %s717_s1 = scalar_lea.hbm %s3741_s5, %s1554_s12 }
 0x2c4   : > { %s2738_s16 = scalar_lea.hbm %s717_s1, 16  ;;  %p2741_p5 = scmp.lt.u32.totalorder %s717_s1, %s3741_s5 }
 0x2c5   : > { %p2739_p4 = scmp.ne.s32.totalorder %s717_s1, %s2738_s16  ;;  %p2742_p6 = scmp.lt.u32.totalorder %s3236_s6, %s2738_s16 }
 0x2c6   : > { %p2744_p9 = scmp.lt.u32.totalorder %s2738_s16, %s717_s1 }
 0x2c7   : > { %p2743_p0 = por %p2742_p6, %p2741_p5 }
 0x2c9   : > { %p2745_p10 = por %p2744_p9, %p2743_p0 }
 0x2cb   : > { %p2746_p13 = pnand %p2745_p10, %p2739_p4 }
 0x2cd   : > { %2749 = shalt.err (!%p2746_p13)  }
 0x2ce   : > { %s2750_s17 = scalar_lea.vmem %s728_s25, 16  ;;  %p2755_p3 = scmp.lt.s32.totalorder %s728_s25, %s3213_s22 }
 0x2cf   : > { %p2751_p1 = scmp.ne.s32.totalorder %s728_s25, %s2750_s17  ;;  %p2756_p8 = scmp.lt.s32.totalorder %s3245_s24, %s2750_s17 }
 0x2d1   : > { %p2757_p11 = por %p2756_p8, %p2755_p3 }
 0x2d3   : > { %p2758_p7 = pnand %p2757_p11, %p2751_p1 }
 0x2d5   : > { %2761 = shalt.err (!%p2758_p7)  }
 0x2d6   : > { %730 = dma.hbm_to_vmem [thread:$0]  %s717_s1, 16, %s728_s25, [#allocation5 + $0xf] }
 0x2d7   : > { %s3808_s3 = sand.u32 1, %s2878_s18  }
 0x2d8   : > { %s3624_s19 = scalar_lea.vmem [#allocation19], %s3808_s3 }
 0x2d9   : > { %2820 = dma.done.wait [#allocation4], 16 }
 0x2da   : > { %2821 = vsyncadd [#allocation4], 4294967280 }
 0x2db   : > { %2822 = dma.done.wait [#allocation4 + $0x1], 16 }
 0x2dc   : > { %2823 = vsyncadd [#allocation4 + $0x1], 4294967280 }
 0x2dd   : > { %2824 = dma.done.wait [#allocation4 + $0x2], 16 }
 0x2de   : > { %2825 = vsyncadd [#allocation4 + $0x2], 4294967280 }
 0x2df   : > { %2826 = dma.done.wait [#allocation4 + $0x3], 16 }
 0x2e0   : > { %2827 = vsyncadd [#allocation4 + $0x3], 4294967280 }
 0x2e1   : > { %2828 = dma.done.wait [#allocation4 + $0x4], 16 }
 0x2e2   : > { %2829 = vsyncadd [#allocation4 + $0x4], 4294967280 }
 0x2e3   : > { %2830 = dma.done.wait [#allocation4 + $0x5], 16 }
 0x2e4   : > { %2831 = vsyncadd [#allocation4 + $0x5], 4294967280 }
 0x2e5   : > { %2832 = dma.done.wait [#allocation4 + $0x6], 16 }
 0x2e6   : > { %2833 = vsyncadd [#allocation4 + $0x6], 4294967280 }
 0x2e7   : > { %2834 = dma.done.wait [#allocation4 + $0x7], 16 }
 0x2e8   : > { %2835 = vsyncadd [#allocation4 + $0x7], 4294967280  ;;  %v844_v0 = vlaneseq  ;;  %v2922_v1 = vmov 0.0|0.0   ;;  %vm2923_vm0 = vmmov 0   ;;  %v2924_v2 = vmov 0.0   ;;  %s843_s6 = sld [smem:[#allocation9 + %s3048_s21]] }
 0x2e9   : > { %1796 = vmatprep.subr.bf16.mxu0 %v2922_v1  ;;  %1688 = vmatprep.mubr.msk.f32.mxu0 %vm2923_vm0, %v2924_v2  ;;  %v749_v4 = vld [vmem:[#allocation11] sm:$0xff]  ;;  %v750_v5 = vld [vmem:[#allocation11 + $0x8] sm:$0xff]  ;;  %v751_v6 = vld [vmem:[#allocation11 + $0x10] sm:$0xff]  ;;  %s2925_s24 = smov 1.0  }
 0x2ea   : > { %1820 = vmatprep.subr.bf16.mxu1 %v2922_v1  ;;  %1723 = vmatprep.mubr.msk.f32.mxu1 %vm2923_vm0, %v2924_v2  ;;  %v3633_v3 = vshrl.u32 %v844_v0, 7  ;;  %v1797_v8 = vpack.c.bf16 %v750_v5, %v749_v4  ;;  %v752_v9 = vld [vmem:[#allocation11 + $0x18] sm:$0xff]  ;;  %v753_v12 = vld [vmem:[#allocation11 + $0x20] sm:$0xff]  ;;  %v754_v13 = vld [vmem:[#allocation11 + $0x28] sm:$0xff] }
 0x2eb   : > { %v1800_v11 = vpack.c.bf16 %v752_v9, %v751_v6  ;;  %v866_v14 = vld [vmem:[#allocation16] sm:$0xff]  ;;  %v867_v15 = vld [vmem:[#allocation16 + $0x8] sm:$0xff]  ;;  %v1803_v16 = vpack.c.bf16 %v754_v13, %v753_v12  ;;  %v755_v19 = vld [vmem:[#allocation11 + $0x30] sm:$0xff] }
 0x2ec   : > { %1798 = vmatpush3.bf16.msra.mxu0 %v1797_v8  ;;  %v1821_v18 = vpack.c.bf16 %v867_v15, %v866_v14  ;;  %v756_v20 = vld [vmem:[#allocation11 + $0x38] sm:$0xff]  ;;  %v757_v22 = vld [vmem:[#allocation11 + $0x40] sm:$0xff]  ;;  %v758_v23 = vld [vmem:[#allocation11 + $0x48] sm:$0xff] }
 0x2ed   : > { %1799 = vmatprep.subr.bf16.mxu0 %v2922_v1  ;;  %v1806_v21 = vpack.c.bf16 %v756_v20, %v755_v19  ;;  %v1809_v24 = vpack.c.bf16 %v758_v23, %v757_v22  ;;  %v759_v25 = vld [vmem:[#allocation11 + $0x50] sm:$0xff]  ;;  %v760_v26 = vld [vmem:[#allocation11 + $0x58] sm:$0xff]  ;;  %v761_v29 = vld [vmem:[#allocation11 + $0x60] sm:$0xff] }
 0x2ee   : > { %v846_v7 = vstv %s843_s6  ;;  %p850_p2 = scmp.lt.s32.totalorder %s843_s6, 8  ;;  %1822 = vmatpush3.bf16.msra.mxu1 %v1821_v18  ;;  %v1812_v28 = vpack.c.bf16 %v760_v26, %v759_v25  ;;  %v762_v30 = vld [vmem:[#allocation11 + $0x68] sm:$0xff]  ;;  %v763_v32 = vld [vmem:[#allocation11 + $0x70] sm:$0xff]  ;;  %v764_v33 = vld [vmem:[#allocation11 + $0x78] sm:$0xff] }
 0x2ef   : > { %vm847_vm1 = vcmp.lt.s32.totalorder %v3633_v3, %v846_v7  ;;  %1823 = vmatprep.subr.bf16.mxu1 %v2922_v1  ;;  %v1815_v31 = vpack.c.bf16 %v762_v30, %v761_v29  ;;  %v1818_v34 = vpack.c.bf16 %v764_v33, %v763_v32  ;;  %v748_v35 = vld [vmem:[#allocation2] sm:$0xff]  ;;  %v868_v36 = vld [vmem:[#allocation16 + $0x10] sm:$0xff]  ;;  %v869_v37 = vld [vmem:[#allocation16 + $0x18] sm:$0xff] }
 0x2f0   : > { %v3637_v10 = vsel %vm847_vm1, 1.0, %v2924_v2  ;;  %s3824_s6 = smov (!%p850_p2, %s843_s6), 8  ;;  %1801 = vmatpush3.bf16.msra.mxu0 %v1800_v11  ;;  %v1824_v38 = vpack.c.bf16 %v869_v37, %v868_v36  ;;  %v870_v39 = vld [vmem:[#allocation16 + $0x20] sm:$0xff]  ;;  %v871_v40 = vld [vmem:[#allocation16 + $0x28] sm:$0xff]  ;;  %v872_v42 = vld [vmem:[#allocation16 + $0x30] sm:$0xff] }
 0x2f1   : > { %s852_s22 = scvt.s32.f32 %s3824_s6  ;;  %1802 = vmatprep.subr.bf16.mxu0 %v2922_v1  ;;  %v1827_v41 = vpack.c.bf16 %v871_v40, %v870_v39  ;;  %v873_v43 = vld [vmem:[#allocation16 + $0x38] sm:$0xff]  ;;  %v874_v45 = vld [vmem:[#allocation16 + $0x40] sm:$0xff]  ;;  %v875_v46 = vld [vmem:[#allocation16 + $0x48] sm:$0xff] }
 0x2f2   : > { %1825 = vmatpush3.bf16.msra.mxu1 %v1824_v38  ;;  %v1830_v44 = vpack.c.bf16 %v873_v43, %v872_v42  ;;  %v1833_v47 = vpack.c.bf16 %v875_v46, %v874_v45  ;;  %v876_v48 = vld [vmem:[#allocation16 + $0x50] sm:$0xff]  ;;  %v877_v49 = vld [vmem:[#allocation16 + $0x58] sm:$0xff]  ;;  %v878_v51 = vld [vmem:[#allocation16 + $0x60] sm:$0xff] }
 0x2f3   : > { %s860_s30 = smax.f32 %s2925_s24, %s852_s22  ;;  %1826 = vmatprep.subr.bf16.mxu1 %v2922_v1  ;;  %v1836_v50 = vpack.c.bf16 %v877_v49, %v876_v48  ;;  %v879_v52 = vld [vmem:[#allocation16 + $0x68] sm:$0xff]  ;;  %v880_v54 = vld [vmem:[#allocation16 + $0x70] sm:$0xff]  ;;  %v881_v55 = vld [vmem:[#allocation16 + $0x78] sm:$0xff] }
 0x2f4   : > { %v861_v17 = vstv %s860_s30  ;;  %1804 = vmatpush3.bf16.msra.mxu0 %v1803_v16  ;;  %v1839_v53 = vpack.c.bf16 %v879_v52, %v878_v51  ;;  %v1842_v56 = vpack.c.bf16 %v881_v55, %v880_v54  ;;  %v1555_v57 = vld [vmem:[%s3743_s7] ss:$0 sm:$0xff] }
 0x2f5   : > { %2018 = vrcp.f32 %v861_v17  ;;  %1805 = vmatprep.subr.bf16.mxu0 %v2922_v1 }
 0x2f6   : > { %1828 = vmatpush3.bf16.msra.mxu1 %v1827_v41 }
 0x2f7   : > { %1829 = vmatprep.subr.bf16.mxu1 %v2922_v1 }
 0x2f8   : > { %1807 = vmatpush3.bf16.msra.mxu0 %v1806_v21 }
 0x2f9   : > { %1808 = vmatprep.subr.bf16.mxu0 %v2922_v1 }
 0x2fa   : > { %1831 = vmatpush3.bf16.msra.mxu1 %v1830_v44 }
 0x2fb   : > { %1832 = vmatprep.subr.bf16.mxu1 %v2922_v1 }
 0x2fc   : > { %1810 = vmatpush3.bf16.msra.mxu0 %v1809_v24 }
 0x2fd   : > { %1811 = vmatprep.subr.bf16.mxu0 %v2922_v1 }
 0x2fe   : > { %1834 = vmatpush3.bf16.msra.mxu1 %v1833_v47 }
 0x2ff   : > { %v2019_v27 = vpop.eup %2018  ;;  %1835 = vmatprep.subr.bf16.mxu1 %v2922_v1 }
 0x300   : > { %1900 = vpush %v2019_v27  ;;  %1813 = vmatpush3.bf16.msra.mxu0 %v1812_v28 }
 0x301   : > { %1814 = vmatprep.subr.bf16.mxu0 %v2922_v1 }
 0x302   : > { %1837 = vmatpush3.bf16.msra.mxu1 %v1836_v50 }
 0x303   : > { %1838 = vmatprep.subr.bf16.mxu1 %v2922_v1 }
 0x304   : > { %1816 = vmatpush3.bf16.msra.mxu0 %v1815_v31 }
 0x305   : > { %1817 = vmatprep.subr.bf16.mxu0 %v2922_v1 }
 0x306   : > { %1840 = vmatpush3.bf16.msra.mxu1 %v1839_v53 }
 0x307   : > { %1841 = vmatprep.subr.bf16.mxu1 %v2922_v1 }
 0x308   : > { %1819 = vmatpush3.bf16.msra.mxu0 %v1818_v34 }
 0x30a   : > { %1843 = vmatpush3.bf16.msra.mxu1 %v1842_v56 }
 0x30b   : > { %1689 = vmatmul.mubr.f32.vlgmr.msra.gmra.mrb[0].mxu0 %v748_v35 }
 0x331   : > { %s1901_s15 = spop %1900 }
 0x332   : > { %v864_v7 = vstv %s1901_s15 }
 0x3de   : > { %v838_v58 = vpop.f32.mrb[0].mxu0 }
 0x3df   : > { %v839_v59 = vadd.f32 %v1555_v57, %v838_v58  ;;  %v1690_v60 = vpop.f32.mrb[1].mxu0 }
 0x3e1   : > { %2020 = vtanh.f32 %v839_v59 }
 0x3eb   : > { %v2021_v61 = vpop.eup %2020 }
 0x3ec   : > { %v853_v62 = vmul.f32 %v2021_v61, %v3637_v10 }
 0x3ee   : > { %v854_v63 = vrot.slane %v853_v62, 4 }
 0x3f0   : > { %v855_v0 = vadd.f32 %v854_v63, %v853_v62 }
 0x3f2   : > { %v856_v4 = vrot.slane %v855_v0, 2 }
 0x3f4   : > { %v857_v5 = vadd.f32 %v856_v4, %v855_v0 }
 0x3f6   : > { %v858_v6 = vrot.slane %v857_v5, 1 }
 0x3f8   : > { %v859_v8 = vadd.f32 %v858_v6, %v857_v5 }
 0x3fa   : > { %v865_v9 = vmul.f32 %v864_v7, %v859_v8 }
 0x3fc   : > { %1724 = vmatmul.mubr.f32.vlgmr.msra.gmra.mrb[0].mxu1 %v865_v9 }
 0x4cf   : > { %v3658_v11 = vpop.f32.mrb[0].mxu1 }
 0x4d0   : > { %v1725_v12 = vpop.f32.mrb[1].mxu1 }
 0x4d1   : > { %2836 = dma.done.wait [#allocation5], 16 }
 0x4d2   : > { %2837 = vsyncadd [#allocation5], 4294967280 }
 0x4d3   : > { %2838 = dma.done.wait [#allocation5 + $0x1], 16 }
 0x4d4   : > { %2839 = vsyncadd [#allocation5 + $0x1], 4294967280 }
 0x4d5   : > { %2840 = dma.done.wait [#allocation5 + $0x2], 16 }
 0x4d6   : > { %2841 = vsyncadd [#allocation5 + $0x2], 4294967280 }
 0x4d7   : > { %2842 = dma.done.wait [#allocation5 + $0x3], 16 }
 0x4d8   : > { %2843 = vsyncadd [#allocation5 + $0x3], 4294967280 }
 0x4d9   : > { %2844 = dma.done.wait [#allocation5 + $0x4], 16 }
 0x4da   : > { %2845 = vsyncadd [#allocation5 + $0x4], 4294967280 }
 0x4db   : > { %2846 = dma.done.wait [#allocation5 + $0x5], 16 }
 0x4dc   : > { %2847 = vsyncadd [#allocation5 + $0x5], 4294967280 }
 0x4dd   : > { %2848 = dma.done.wait [#allocation5 + $0x6], 16 }
 0x4de   : > { %2849 = vsyncadd [#allocation5 + $0x6], 4294967280 }
 0x4df   : > { %2850 = dma.done.wait [#allocation5 + $0x7], 16 }
 0x4e0   : > { %2851 = vsyncadd [#allocation5 + $0x7], 4294967280 }
 0x4e1   : > { %2852 = dma.done.wait [#allocation5 + $0x8], 16 }
 0x4e2   : > { %2853 = vsyncadd [#allocation5 + $0x8], 4294967280 }
 0x4e3   : > { %2854 = dma.done.wait [#allocation5 + $0x9], 16 }
 0x4e4   : > { %2855 = vsyncadd [#allocation5 + $0x9], 4294967280 }
 0x4e5   : > { %2856 = dma.done.wait [#allocation5 + $0xa], 16 }
 0x4e6   : > { %2857 = vsyncadd [#allocation5 + $0xa], 4294967280 }
 0x4e7   : > { %2858 = dma.done.wait [#allocation5 + $0xb], 16 }
 0x4e8   : > { %2859 = vsyncadd [#allocation5 + $0xb], 4294967280 }
 0x4e9   : > { %2860 = dma.done.wait [#allocation5 + $0xc], 16 }
 0x4ea   : > { %2861 = vsyncadd [#allocation5 + $0xc], 4294967280 }
 0x4eb   : > { %2862 = dma.done.wait [#allocation5 + $0xd], 16 }
 0x4ec   : > { %2863 = vsyncadd [#allocation5 + $0xd], 4294967280 }
 0x4ed   : > { %2864 = dma.done.wait [#allocation5 + $0xe], 16 }
 0x4ee   : > { %2865 = vsyncadd [#allocation5 + $0xe], 4294967280 }
 0x4ef   : > { %2866 = dma.done.wait [#allocation5 + $0xf], 16 }
 0x4f0   : > { %2867 = vsyncadd [#allocation5 + $0xf], 4294967280  ;;  %1876 = vmatprep.subr.bf16.mxu1 %v2922_v1  ;;  %1793 = vmatprep.mubr.msk.f32.mxu1 %vm2923_vm0, %v2924_v2  ;;  %s3664_s0 = sld [smem:[#allocation10 + %s3048_s21]]  ;;  %v986_v10 = vld [vmem:[#allocation14] sm:$0xff]  ;;  %v987_v13 = vld [vmem:[#allocation14 + $0x8] sm:$0xff]  ;;  %v1004_v0 = vsub.s32 0, %v3633_v3 }
 0x4f1   : > { %v988_v14 = vld [vmem:[#allocation14 + $0x10] sm:$0xff]  ;;  %v1844_v15 = vpack.c.bf16 %v987_v13, %v986_v10  ;;  %v989_v16 = vld [vmem:[#allocation14 + $0x18] sm:$0xff]  ;;  %v990_v18 = vld [vmem:[#allocation14 + $0x20] sm:$0xff]  ;;  %s3809_s26 = sld [smem:[#allocation104_spill]]  ;;  %s3810_s9 = sld [smem:[#allocation110_spill]] }
 0x4f2   : > { %v1848_v17 = vpack.c.bf16 %v989_v16, %v988_v14  ;;  %v991_v19 = vld [vmem:[#allocation14 + $0x28] sm:$0xff]  ;;  %v984_v21 = vld [vmem:[#allocation3] sm:$0xff]  ;;  %v993_v23 = vld [vmem:[#allocation14 + $0x38] sm:$0xff]  ;;  %v1005_v4 = vrot.slane %v3658_v11, %v1004_v0  ;;  %s1560_s1 = sshll.u32 %s3048_s21, 4  ;;  %s1221_s16 = sshll.u32 %s3624_s19, 4  ;;  %s3696_s16 = int_to_ptr.vmem [resolvable:$true] %s1221_s16 }
 0x4f3   : > { %1845 = vmatprep.subr.bf16.mxu0 %v1844_v15  ;;  %v1852_v20 = vpack.c.bf16 %v991_v19, %v990_v18  ;;  %v992_v22 = vld [vmem:[#allocation14 + $0x30] sm:$0xff]  ;;  %1758 = vmatprep.mubr.f32.mxu0 %v984_v21  ;;  %v994_v26 = vld [vmem:[#allocation14 + $0x40] sm:$0xff]  ;;  %v995_v27 = vld [vmem:[#allocation14 + $0x48] sm:$0xff]  ;;  %s3811_s17 = sld [smem:[#allocation111_spill]]  ;;  %s3812_s6 = sand.u32 1, %s2878_s18  }
 0x4f4   : > { %1847 = vmatpush3.bf16.msra.mxu0 %v1844_v15  ;;  %v1856_v25 = vpack.c.bf16 %v993_v23, %v992_v22  ;;  %v1860_v28 = vpack.c.bf16 %v995_v27, %v994_v26  ;;  %v996_v29 = vld [vmem:[#allocation14 + $0x50] sm:$0xff]  ;;  %v997_v30 = vld [vmem:[#allocation14 + $0x58] sm:$0xff]  ;;  %v998_v33 = vld [vmem:[#allocation14 + $0x60] sm:$0xff]  ;;  %s1209_s22 = scalar_lea.sflag [#allocation13], %s3812_s6  ;;  %s2926_s21 = smov [#allocation19]  }
 0x4f5   : > { %1849 = vmatprep.subr.bf16.mxu0 %v1848_v17  ;;  %v1864_v31 = vpack.c.bf16 %v997_v30, %v996_v29  ;;  %v999_v34 = vld [vmem:[#allocation14 + $0x68] sm:$0xff]  ;;  %v1000_v36 = vld [vmem:[#allocation14 + $0x70] sm:$0xff]  ;;  %v1001_v37 = vld [vmem:[#allocation14 + $0x78] sm:$0xff]  ;;  %s2766_s30 = sshll.u32 %s2926_s21, 4  ;;  %s2767_s30 = int_to_ptr.vmem [resolvable:$false] %s2766_s30 }
 0x4f6   : > { %p1101_p12 = scmp.lt.s32.totalorder %s3664_s0, 16  ;;  %v1868_v35 = vpack.c.bf16 %v999_v34, %v998_v33  ;;  %v1872_v38 = vpack.c.bf16 %v1001_v37, %v1000_v36  ;;  %v985_v39 = vld [vmem:[#allocation3 + $0x8] sm:$0xff]  ;;  %v1119_v40 = vld [vmem:[#allocation17] sm:$0xff]  ;;  %v1120_v41 = vld [vmem:[#allocation17 + $0x8] sm:$0xff]  ;;  %v1094_v13 = vstv %s3664_s0  ;;  %s2768_s11 = scalar_lea.vmem %s2767_s30, 32 }
 0x4f7   : > { %v1877_v42 = vpack.c.bf16 %v1120_v41, %v1119_v40  ;;  %v1121_v43 = vld [vmem:[#allocation17 + $0x10] sm:$0xff]  ;;  %v1122_v44 = vld [vmem:[#allocation17 + $0x18] sm:$0xff]  ;;  %v1123_v46 = vld [vmem:[#allocation17 + $0x20] sm:$0xff]  ;;  %vm1095_vm3 = vcmp.lt.s32.totalorder %v3633_v3, %v1094_v13  ;;  %p3813_p5 = scmp.ne.s32.totalorder %s3809_s26, 0  ;;  %p2769_p9 = scmp.lt.s32.totalorder %s3696_s16, %s2767_s30 }
 0x4f8   : > { %s1102_s28 = scalar_select %p1101_p12, %s3664_s0, 16  ;;  %1851 = vmatpush3.bf16.msra.mxu0 %v1848_v17  ;;  %v1880_v45 = vpack.c.bf16 %v1122_v44, %v1121_v43  ;;  %v1124_v47 = vld [vmem:[#allocation17 + $0x28] sm:$0xff]  ;;  %v1125_v49 = vld [vmem:[#allocation17 + $0x30] sm:$0xff]  ;;  %v1126_v50 = vld [vmem:[#allocation17 + $0x38] sm:$0xff]  ;;  %v1558_v14 = vsel %vm1095_vm3, 1.0, %v2924_v2 }
 0x4f9   : > { %1853 = vmatprep.subr.bf16.mxu0 %v1852_v20  ;;  %1878 = vmatpush3.bf16.msra.mxu1 %v1877_v42  ;;  %v1883_v48 = vpack.c.bf16 %v1124_v47, %v1123_v46  ;;  %v1886_v51 = vpack.c.bf16 %v1126_v50, %v1125_v49  ;;  %v1127_v52 = vld [vmem:[#allocation17 + $0x40] sm:$0xff]  ;;  %v1128_v53 = vld [vmem:[#allocation17 + $0x48] sm:$0xff]  ;;  %v1129_v55 = vld [vmem:[#allocation17 + $0x50] sm:$0xff]  ;;  %s3694_s3 = scalar_lea.hbm %s3811_s17, %s1560_s1 }
 0x4fa   : > { %s1103_s29 = scvt.s32.f32 %s1102_s28  ;;  %1879 = vmatprep.subr.bf16.mxu1 %v2922_v1  ;;  %v1889_v54 = vpack.c.bf16 %v1128_v53, %v1127_v52  ;;  %v1130_v56 = vld [vmem:[#allocation17 + $0x58] sm:$0xff]  ;;  %v1131_v58 = vld [vmem:[#allocation17 + $0x60] sm:$0xff]  ;;  %v1132_v59 = vld [vmem:[#allocation17 + $0x68] sm:$0xff] }
 0x4fb   : > { %v1892_v57 = vpack.c.bf16 %v1130_v56, %v1129_v55  ;;  %v1895_v60 = vpack.c.bf16 %v1132_v59, %v1131_v58  ;;  %v1133_v61 = vld [vmem:[#allocation17 + $0x70] sm:$0xff]  ;;  %v1134_v62 = vld [vmem:[#allocation17 + $0x78] sm:$0xff]  ;;  %v1557_v6 = vld [vmem:[%s3746_s10] ss:$0 sm:$0xff] }
 0x4fc   : > { %s1113_s25 = smax.f32 %s2925_s24, %s1103_s29  ;;  %1855 = vmatpush3.bf16.msra.mxu0 %v1852_v20  ;;  %v1898_v63 = vpack.c.bf16 %v1134_v62, %v1133_v61  ;;  %s2762_s24 = scalar_lea.vmem %s3696_s16, 16 }
 0x4fd   : > { %v1114_v24 = vstv %s1113_s25  ;;  %1857 = vmatprep.subr.bf16.mxu0 %v1856_v25  ;;  %1881 = vmatpush3.bf16.msra.mxu1 %v1880_v45  ;;  %p2763_p4 = scmp.ne.s32.totalorder %s3696_s16, %s2762_s24  ;;  %p2770_p10 = scmp.lt.s32.totalorder %s2768_s11, %s2762_s24 }
 0x4fe   : > { %2022 = vrcp.f32 %v1114_v24  ;;  %1882 = vmatprep.subr.bf16.mxu1 %v2922_v1 }
 0x4ff   : > { %p2764_p6 = pnand %p2763_p4, %p3813_p5  ;;  %p2771_p13 = por %p2770_p10, %p2769_p9 }
 0x500   : > { %1859 = vmatpush3.bf16.msra.mxu0 %v1856_v25 }
 0x501   : > { %1861 = vmatprep.subr.bf16.mxu0 %v1860_v28  ;;  %1884 = vmatpush3.bf16.msra.mxu1 %v1883_v48  ;;  %p2765_p0 = pneg %p2764_p6 }
 0x502   : > { %1885 = vmatprep.subr.bf16.mxu1 %v2922_v1 }
 0x503   : > { %p2772_p1 = pnand %p2771_p13, %p2765_p0 }
 0x504   : > { %1863 = vmatpush3.bf16.msra.mxu0 %v1860_v28 }
 0x505   : > { %1865 = vmatprep.subr.bf16.mxu0 %v1864_v31  ;;  %1887 = vmatpush3.bf16.msra.mxu1 %v1886_v51 }
 0x506   : > { %1888 = vmatprep.subr.bf16.mxu1 %v2922_v1 }
 0x508   : > { %v2023_v32 = vpop.eup %2022  ;;  %1867 = vmatpush3.bf16.msra.mxu0 %v1864_v31 }
 0x509   : > { %1902 = vpush %v2023_v32  ;;  %1869 = vmatprep.subr.bf16.mxu0 %v1868_v35  ;;  %1890 = vmatpush3.bf16.msra.mxu1 %v1889_v54 }
 0x50a   : > { %1891 = vmatprep.subr.bf16.mxu1 %v2922_v1 }
 0x50c   : > { %1871 = vmatpush3.bf16.msra.mxu0 %v1868_v35 }
 0x50d   : > { %1873 = vmatprep.subr.bf16.mxu0 %v1872_v38  ;;  %1893 = vmatpush3.bf16.msra.mxu1 %v1892_v57 }
 0x50e   : > { %1894 = vmatprep.subr.bf16.mxu1 %v2922_v1 }
 0x510   : > { %1875 = vmatpush3.bf16.msra.mxu0 %v1872_v38 }
 0x511   : > { %1896 = vmatpush3.bf16.msra.mxu1 %v1895_v60 }
 0x512   : > { %1897 = vmatprep.subr.bf16.mxu1 %v2922_v1  ;;  %v1093_v1 = vadd.s32 8, %v3633_v3 }
 0x513   : > { %1759 = vmatmul.mubr.f32.vlgmr.msra.gmra.mrb[2].mxu0 %v985_v39 }
 0x514   : > { %vm1096_vm2 = vcmp.lt.s32.totalorder %v1093_v1, %v1094_v13 }
 0x515   : > { %1899 = vmatpush3.bf16.msra.mxu1 %v1898_v63  ;;  %v1559_v11 = vsel %vm1096_vm2, 1.0, %v2924_v2  ;;  %v1135_v2 = vld [vmem:[%s3810_s9] sm:$0x1] }
 0x53a   : > { %s1903_s13 = spop %1902 }
 0x53b   : > { %v1117_v3 = vstv %s1903_s13 }
 0x5e6   : > { %v1760_v5 = vpop.f32.mrb[2].mxu0 }
 0x5e7   : > { %v1078_v7 = vadd.f32 %v1760_v5, %v1005_v4  ;;  %v1072_v8 = vpop.f32.mrb[3].mxu0 }
 0x5e8   : > { %v1073_v9 = vadd.f32 %v1072_v8, %v1005_v4 }
 0x5e9   : > { %v1089_v12 = vadd.f32 %v1557_v6, %v1078_v7 }
 0x5ea   : > { %v1088_v10 = vadd.f32 %v1557_v6, %v1073_v9 }
 0x5eb   : > { %2024 = vtanh.f32 %v1089_v12 }
 0x5ec   : > { %2026 = vtanh.f32 %v1088_v10 }
 0x5f5   : > { %v2025_v15 = vpop.eup %2024 }
 0x5f6   : > { %v2027_v16 = vpop.eup %2026  ;;  %v1105_v17 = vmul.f32 %v2025_v15, %v1559_v11 }
 0x5f7   : > { %v1104_v18 = vmul.f32 %v2027_v16, %v1558_v14 }
 0x5f9   : > { %v1106_v19 = vadd.f32 %v1105_v17, %v1104_v18 }
 0x5fb   : > { %v1107_v20 = vrot.slane %v1106_v19, 4 }
 0x5fd   : > { %v1108_v21 = vadd.f32 %v1107_v20, %v1106_v19 }
 0x5ff   : > { %v1109_v22 = vrot.slane %v1108_v21, 2 }
 0x601   : > { %v1110_v23 = vadd.f32 %v1109_v22, %v1108_v21 }
 0x603   : > { %v1111_v24 = vrot.slane %v1110_v23, 1 }
 0x605   : > { %v1112_v25 = vadd.f32 %v1111_v24, %v1110_v23 }
 0x607   : > { %v1118_v26 = vmul.f32 %v1117_v3, %v1112_v25 }
 0x609   : > { %1794 = vmatmul.mubr.f32.vlgmr.msra.gmra.mrb[2].mxu1 %v1118_v26 }
 0x6dc   : > { %v1202_v27 = vpop.f32.mrb[2].mxu1 }
 0x6dd   : > { %v1203_v28 = vadd.f32 %v1202_v27, %v1135_v2  ;;  %v1795_v29 = vpop.f32.mrb[3].mxu1 }
 0x6df   : > { %2028 = vtanh.f32 %v1203_v28 }
 0x6e9   : > { %v2029_v30 = vpop.eup %2028 }
 0x6ea   : > { %1207 = vst [vmem:[%s3624_s19] sm:$0x1] %v2029_v30 }
 0x6eb   : > { %2775 = shalt.err (!%p2772_p1)
}
 0x6ec   : > { %s2776_s19 = scalar_lea.hbm %s3694_s3, 16  ;;  %s2780_s0 = scalar_lea.hbm %s3811_s17, 64 }
 0x6ed   : > { %p2777_p3 = scmp.ne.s32.totalorder %s3694_s3, %s2776_s19  ;;  %p2781_p7 = scmp.lt.u32.totalorder %s3694_s3, %s3811_s17 }
 0x6ee   : > { %p2782_p2 = scmp.lt.u32.totalorder %s2780_s0, %s2776_s19  ;;  %p2784_p4 = scmp.lt.u32.totalorder %s2776_s19, %s3694_s3 }
 0x6ef   : > { %p2778_p8 = pnand %p2777_p3, %p3813_p5 }
 0x6f0   : > { %p2783_p12 = por %p2782_p2, %p2781_p7 }
 0x6f1   : > { %p2779_p11 = pneg %p2778_p8 }
 0x6f2   : > { %p2785_p6 = por %p2784_p4, %p2783_p12 }
 0x6f4   : > { %p2786_p0 = pnand %p2785_p6, %p2779_p11 }
 0x6f6   : > { %2789 = shalt.err (!%p2786_p0)
}
 0x6f7   : > { %1920 = dma.vmem_to_hbm [thread:$0]  (%p3813_p5), %s3696_s16, 16, %s3694_s3, %s1209_s22  }
 0x6f8 PF: > { %s3814_s25 = sld [smem:[#allocation101_spill]]  ;;  %s3815_s27 = sld [smem:[#allocation99_spill]] }
 0x6f9   : > { %s3816_s20 = sld [smem:[#allocation105_spill]] }
 0x6fe   : > { %p1947_p9 = scmp.ge.s32.totalorder %s3814_s25, 2  ;;  %s1233_s13 = sand.u32 1, %s3815_s27  }
 0x6ff   : > { %p3817_p10 = scmp.ne.s32.totalorder %s3816_s20, 0  ;;  %s1234_s12 = scalar_lea.sflag [#allocation13], %s1233_s13 }
 0x701   : > { %p1936_p13 = pnand %p1947_p9, %p3817_p10 }
 0x703   : > { %2869 = dma.done.wait (!%p1936_p13), %s1234_s12, 16  }
 0x704   : > { %2871 = vsyncadd (!%p1936_p13), %s1234_s12, 4294967280  ;;  %s3818_s20 = sld [smem:[#allocation102_spill]]  ;;  %s3819_s14 = sld [smem:[#allocation100_spill]] }
 0x705   : > { %s3820_s19 = sld [smem:[#allocation103_spill]]  ;;  %s3821_s3 = smov %s2878_s18 }
 0x70a   : > { %p40_p1 = scmp.ge.s32.totalorder %s3818_s20, 6   ;;  %s3822_s18 = smov %s3819_s14 }
 0x70c   :  { %42 = sbr.rel (!%p40_p1) target bundleno = 47 (0x2f), region = 283 }
 0x713   :  { %1238 = vsyncpa [#allocation12], 1 }
 0x714   :  { %1240 = vsyncpa [#allocation12 + $0x1], 1 }
 0x715   :  { %1241 = vsyncpa [#allocation15], 1 }
 0x716   :  { %1242 = vsyncpa [#allocation18], 1 }
 0x717   :  { %1243 = vsyncpa [#allocation13], 1 }
 0x718   :  { %1245 = vsyncpa [#allocation13 + $0x1], 1 }
 0x719   :  { %1246 = vsyncmov [#allocation4] }
 0x71c   :  { %s1247_s26 = vpop.sfrf %1246 }
 0x71d   :  { %p1563_p5 = scmp.ne.s32.totalorder %s1247_s26, 0 }
 0x71f   :  { %1251 = shalt.err (%p1563_p5)  }
 0x720   :  { %1253 = vsyncmov [#allocation4 + $0x1] }
 0x723   :  { %s1254_s9 = vpop.sfrf %1253 }
 0x724   :  { %p1564_p3 = scmp.ne.s32.totalorder %s1254_s9, 0 }
 0x726   :  { %1258 = shalt.err (%p1564_p3)  }
 0x727   :  { %1260 = vsyncmov [#allocation4 + $0x2] }
 0x72a   :  { %s1261_s1 = vpop.sfrf %1260 }
 0x72b   :  { %p1565_p8 = scmp.ne.s32.totalorder %s1261_s1, 0 }
 0x72d   :  { %1265 = shalt.err (%p1565_p8)  }
 0x72e   :  { %1267 = vsyncmov [#allocation4 + $0x3] }
 0x731   :  { %s1268_s16 = vpop.sfrf %1267 }
 0x732   :  { %p1566_p11 = scmp.ne.s32.totalorder %s1268_s16, 0 }
 0x734   :  { %1272 = shalt.err (%p1566_p11)  }
 0x735   :  { %1274 = vsyncmov [#allocation4 + $0x4] }
 0x738   :  { %s1275_s4 = vpop.sfrf %1274 }
 0x739   :  { %p1567_p7 = scmp.ne.s32.totalorder %s1275_s4, 0 }
 0x73b   :  { %1279 = shalt.err (%p1567_p7)  }
 0x73c   :  { %1281 = vsyncmov [#allocation4 + $0x5] }
 0x73f   :  { %s1282_s5 = vpop.sfrf %1281 }
 0x740   :  { %p1568_p2 = scmp.ne.s32.totalorder %s1282_s5, 0 }
 0x742   :  { %1286 = shalt.err (%p1568_p2)  }
 0x743   :  { %1288 = vsyncmov [#allocation4 + $0x6] }
 0x746   :  { %s1289_s7 = vpop.sfrf %1288 }
 0x747   :  { %p1569_p12 = scmp.ne.s32.totalorder %s1289_s7, 0 }
 0x749   :  { %1293 = shalt.err (%p1569_p12)  }
 0x74a   :  { %1295 = vsyncmov [#allocation4 + $0x7] }
 0x74d   :  { %s1296_s10 = vpop.sfrf %1295 }
 0x74e   :  { %p1570_p4 = scmp.ne.s32.totalorder %s1296_s10, 0 }
 0x750   :  { %1300 = shalt.err (%p1570_p4)  }
 0x751   :  { %1301 = vsyncmov [#allocation5] }
 0x754   :  { %s1302_s18 = vpop.sfrf %1301 }
 0x755   :  { %p1571_p6 = scmp.ne.s32.totalorder %s1302_s18, 0 }
 0x757   :  { %1306 = shalt.err (%p1571_p6)  }
 0x758   :  { %1308 = vsyncmov [#allocation5 + $0x1] }
 0x75b   :  { %s1309_s23 = vpop.sfrf %1308 }
 0x75c   :  { %p1572_p0 = scmp.ne.s32.totalorder %s1309_s23, 0 }
 0x75e   :  { %1313 = shalt.err (%p1572_p0)  }
 0x75f   :  { %1315 = vsyncmov [#allocation5 + $0x2] }
 0x762   :  { %s1316_s8 = vpop.sfrf %1315 }
 0x763   :  { %p1573_p9 = scmp.ne.s32.totalorder %s1316_s8, 0 }
 0x765   :  { %1320 = shalt.err (%p1573_p9)  }
 0x766   :  { %1322 = vsyncmov [#allocation5 + $0x3] }
 0x769   :  { %s1323_s17 = vpop.sfrf %1322 }
 0x76a   :  { %p1574_p10 = scmp.ne.s32.totalorder %s1323_s17, 0 }
 0x76c   :  { %1327 = shalt.err (%p1574_p10)  }
 0x76d   :  { %1329 = vsyncmov [#allocation5 + $0x4] }
 0x770   :  { %s1330_s3 = vpop.sfrf %1329 }
 0x771   :  { %p1575_p13 = scmp.ne.s32.totalorder %s1330_s3, 0 }
 0x773   :  { %1334 = shalt.err (%p1575_p13)  }
 0x774   :  { %1336 = vsyncmov [#allocation5 + $0x5] }
 0x777   :  { %s1337_s6 = vpop.sfrf %1336 }
 0x778   :  { %p1576_p1 = scmp.ne.s32.totalorder %s1337_s6, 0 }
 0x77a   :  { %1341 = shalt.err (%p1576_p1)  }
 0x77b   :  { %1343 = vsyncmov [#allocation5 + $0x6] }
 0x77e   :  { %s1344_s22 = vpop.sfrf %1343 }
 0x77f   :  { %p1577_p5 = scmp.ne.s32.totalorder %s1344_s22, 0 }
 0x781   :  { %1348 = shalt.err (%p1577_p5)  }
 0x782   :  { %1350 = vsyncmov [#allocation5 + $0x7] }
 0x785   :  { %s1351_s24 = vpop.sfrf %1350 }
 0x786   :  { %p1578_p3 = scmp.ne.s32.totalorder %s1351_s24, 0 }
 0x788   :  { %1355 = shalt.err (%p1578_p3)  }
 0x789   :  { %1357 = vsyncmov [#allocation5 + $0x8] }
 0x78c   :  { %s1358_s21 = vpop.sfrf %1357 }
 0x78d   :  { %p1579_p8 = scmp.ne.s32.totalorder %s1358_s21, 0 }
 0x78f   :  { %1362 = shalt.err (%p1579_p8)  }
 0x790   :  { %1364 = vsyncmov [#allocation5 + $0x9] }
 0x793   :  { %s1365_s30 = vpop.sfrf %1364 }
 0x794   :  { %p1580_p11 = scmp.ne.s32.totalorder %s1365_s30, 0 }
 0x796   :  { %1369 = shalt.err (%p1580_p11)  }
 0x797   :  { %1371 = vsyncmov [#allocation5 + $0xa] }
 0x79a   :  { %s1372_s11 = vpop.sfrf %1371 }
 0x79b   :  { %p1581_p7 = scmp.ne.s32.totalorder %s1372_s11, 0 }
 0x79d   :  { %1376 = shalt.err (%p1581_p7)  }
 0x79e   :  { %1378 = vsyncmov [#allocation5 + $0xb] }
 0x7a1   :  { %s1379_s19 = vpop.sfrf %1378 }
 0x7a2   :  { %p1582_p2 = scmp.ne.s32.totalorder %s1379_s19, 0 }
 0x7a4   :  { %1383 = shalt.err (%p1582_p2)  }
 0x7a5   :  { %1385 = vsyncmov [#allocation5 + $0xc] }
 0x7a8   :  { %s1386_s2 = vpop.sfrf %1385 }
 0x7a9   :  { %p1583_p12 = scmp.ne.s32.totalorder %s1386_s2, 0 }
 0x7ab   :  { %1390 = shalt.err (%p1583_p12)  }
 0x7ac   :  { %1392 = vsyncmov [#allocation5 + $0xd] }
 0x7af   :  { %s1393_s15 = vpop.sfrf %1392 }
 0x7b0   :  { %p1584_p4 = scmp.ne.s32.totalorder %s1393_s15, 0 }
 0x7b2   :  { %1397 = shalt.err (%p1584_p4)  }
 0x7b3   :  { %1399 = vsyncmov [#allocation5 + $0xe] }
 0x7b6   :  { %s1400_s0 = vpop.sfrf %1399 }
 0x7b7   :  { %p1585_p6 = scmp.ne.s32.totalorder %s1400_s0, 0 }
 0x7b9   :  { %1404 = shalt.err (%p1585_p6)  }
 0x7ba   :  { %1406 = vsyncmov [#allocation5 + $0xf] }
 0x7bd   :  { %s1407_s28 = vpop.sfrf %1406 }
 0x7be   :  { %p1586_p0 = scmp.ne.s32.totalorder %s1407_s28, 0 }
 0x7c0   :  { %1411 = shalt.err (%p1586_p0)  }

</bundles_post_ra>
